<compile_context>
chip_gen: v7x
topology: tpu7x:2x2x1
jax: 0.10.0
libtpu: 0.0.40
codegen_flags: <defaults>
</compile_context>

<pallas_src>
import functools
import math

import jax
import jax.numpy as jnp
from jax.experimental import pallas as pl
from jax.experimental.pallas import tpu as pltpu


VMEM_LIMIT = 32 * 1024 * 1024   # safe on v5e/v6e/v7x; footprint at these shapes is < 1 MiB
MXU_DTYPE = jnp.bfloat16        # matmul operand dtype (accumulation is always f32)
LN_EPS_GUIDE = 1e-5             # torch nn.LayerNorm default (Guide_Block)
LN_EPS_OUT = 1e-6               # AttOutput / Output eps


# ----------------------------- in-kernel math helpers -----------------------------

def _erf_f32(x):
    # float32-accurate erf (Abramowitz & Stegun 7.1.26, |err| < 1.5e-7 ~ f32 eps).
    # TODO(synk): switch to a tanh/EUP-based GELU once exactness vs torch.erf is not required.
    a1, a2, a3, a4, a5 = 0.254829592, -0.284496736, 1.421413741, -1.453152027, 1.061405429
    p = 0.3275911
    sign = jnp.where(x >= 0.0, 1.0, -1.0)
    ax = jnp.abs(x)
    t = 1.0 / (1.0 + p * ax)
    poly = ((((a5 * t + a4) * t + a3) * t + a2) * t + a1) * t
    return sign * (1.0 - poly * jnp.exp(-ax * ax))


def _gelu(x):
    # matches reference: x * 0.5 * (1 + erf(x / 1.41421356))
    return x * 0.5 * (1.0 + _erf_f32(x / 1.41421356))


def _layernorm(y, g, b, eps):
    mean = jnp.mean(y, axis=-1, keepdims=True)
    var = jnp.mean((y - mean) ** 2, axis=-1, keepdims=True)
    return (y - mean) * jax.lax.rsqrt(var + eps) * g + b


def _softmax(s):
    # EUP approximate reciprocal (separate issue slot); ~1e-3-level deviation vs exact div.
    s = s - jnp.max(s, axis=-1, keepdims=True)
    p = jnp.exp(s)
    return p * pl.reciprocal(jnp.sum(p, axis=-1, keepdims=True), approx=True)


def _matmul(a_f32, w_bf16, b_row=None):
    """f32 activations x bf16-stored weights on the MXU with f32 accumulation."""
    y = jnp.dot(a_f32.astype(MXU_DTYPE), w_bf16, preferred_element_type=jnp.float32)
    return y if b_row is None else y + b_row


def _sdpa_single_head(q, k, v, scale):
    """ScaledDotProductAttention (Guide_Block): one head over the full width, no mask."""
    s = jax.lax.dot_general((q * scale).astype(MXU_DTYPE), k.astype(MXU_DTYPE),
                            (((1,), (1,)), ((), ())), preferred_element_type=jnp.float32)
    p = _softmax(s)
    return jnp.dot(p.astype(MXU_DTYPE), v.astype(MXU_DTYPE),
                   preferred_element_type=jnp.float32)


def _mha_out_proj(q, k, v, mask, w_out, n_heads, scale):
    """Masked multi-head attention fused with the output projection.

    Instead of concatenating per-head contexts along the lane axis (XLU relayouts),
    each head's (Sq, D) context is contracted with the matching D rows of w_out and
    accumulated:  concat_h(ctx_h) @ W == sum_h ctx_h @ W[hD:(h+1)D, :].
    """
    sq, e = q.shape
    d = e // n_heads
    acc = jnp.zeros((sq, w_out.shape[-1]), jnp.float32)
    for h in range(n_heads):                                     # static unroll over heads
        lo = h * d
        qh = (q[:, lo:lo + d] * scale).astype(MXU_DTYPE)         # fold 1/sqrt(d) into q
        kh = k[:, lo:lo + d].astype(MXU_DTYPE)
        vh = v[:, lo:lo + d].astype(MXU_DTYPE)
        s = jax.lax.dot_general(qh, kh, (((1,), (1,)), ((), ())),
                                preferred_element_type=jnp.float32)      # (Sq, Sk)
        s = s + mask                                                     # (1, Sk) broadcast
        p = _softmax(s)
        ctx_h = jnp.dot(p.astype(MXU_DTYPE), vh,
                        preferred_element_type=jnp.float32)              # (Sq, D)
        acc = acc + jnp.dot(ctx_h.astype(MXU_DTYPE), w_out[lo:lo + d, :],
                            preferred_element_type=jnp.float32)          # (Sq, E)
    return acc


# ----------------------------- fused Pallas kernels -----------------------------

def _self_guided_kernel(x_ref, m_ref,
                        wqkv_ref, bqkv_ref,
                        wobs_ref, bobs_ref, wmat_ref, bmat_ref, gg_ref, gb_ref,
                        wout_ref, bout_ref, og_ref, ob_ref,
                        o_ref, *, n_heads):
    """SelfGuidedAtt (GuidedAttention + AttOutput) for one batch element, fully fused."""
    e = x_ref.shape[-1]
    x = x_ref[0]                                   # (S, E) f32
    mask = m_ref[0]                                # (1, S) additive

    # Fused QKV projection: one (E, 3E) matmul.
    qkv = _matmul(x, wqkv_ref[...], bqkv_ref[...])
    mq, mk, mv = qkv[:, :e], qkv[:, e:2 * e], qkv[:, 2 * e:]

    # Guide_Block: single-head SDPA over the full embedding width, no mask (reference
    # passes none); dropout(0.2) is identity.
    ctx_g = _sdpa_single_head(mq, mk, mv, 1.0 / math.sqrt(e))
    new_q = _layernorm(jnp.maximum(_matmul(ctx_g, wobs_ref[...], bobs_ref[...]), 0.0),
                       gg_ref[...], gb_ref[...], LN_EPS_GUIDE)
    new_k = _layernorm(jnp.maximum(_matmul(mk, wmat_ref[...], bmat_ref[...]), 0.0),
                       gg_ref[...], gb_ref[...], LN_EPS_GUIDE)

    # Masked multi-head attention fused with the AttOutput dense.
    d = e // n_heads
    proj = _mha_out_proj(new_q, new_k, mv, mask, wout_ref[...], n_heads,
                         1.0 / math.sqrt(d))

    # AttOutput: dense(+bias) -> dropout(identity) -> +residual -> LayerNorm(eps=1e-6).
    o_ref[0] = _layernorm(proj + bout_ref[...] + x, og_ref[...], ob_ref[...], LN_EPS_OUT)


def _cross_ffn_kernel(x_ref, c_ref, m_ref,
                      wq_ref, bq_ref, wkv_ref, bkv_ref,
                      wco_ref, bco_ref, cog_ref, cob_ref,
                      w1_ref, b1_ref, w2_ref, b2_ref, fg_ref, fb_ref,
                      o_ref, *, n_heads):
    """CrossAtt + Intermediate(GELU) + Output for one batch element, fully fused.
    The (Sq, 4E) FFN intermediate never leaves VMEM/vregs."""
    e = x_ref.shape[-1]
    x = x_ref[0]                                   # (Sq, E)
    ctx = c_ref[0]                                 # (Sk, E)
    mask = m_ref[0]                                # (1, Sk)

    q = _matmul(x, wq_ref[...], bq_ref[...])
    kv = _matmul(ctx, wkv_ref[...], bkv_ref[...])  # fused K/V: one (E, 2E) matmul
    k, v = kv[:, :e], kv[:, e:]

    d = e // n_heads
    proj = _mha_out_proj(q, k, v, mask, wco_ref[...], n_heads, 1.0 / math.sqrt(d))
    y_att = _layernorm(proj + bco_ref[...] + x, cog_ref[...], cob_ref[...], LN_EPS_OUT)

    inter = _gelu(_matmul(y_att, w1_ref[...], b1_ref[...]))
    h = _matmul(inter, w2_ref[...], b2_ref[...])
    o_ref[0] = _layernorm(h + y_att, fg_ref[...], fb_ref[...], LN_EPS_OUT)


# ----------------------------- pallas_call wrappers -----------------------------

def _const_spec(arr):
    """Full-array block with a constant index_map (kept resident across grid steps)."""
    nd = arr.ndim
    return pl.BlockSpec(arr.shape, lambda i: (0,) * nd)


def self_guided_att_block(x, mask, p, n_heads):
    """x: (B, S, E) f32, mask: (B, 1, S) additive -> (B, S, E) f32."""
    b, s, e = x.shape
    weights = (p["w_qkv"], p["b_qkv"], p["w_obs"], p["b_obs"], p["w_mat"], p["b_mat"],
               p["g_ln_g"], p["g_ln_b"], p["w_out"], p["b_out"], p["o_ln_g"], p["o_ln_b"])
    return pl.pallas_call(
        functools.partial(_self_guided_kernel, n_heads=n_heads),
        out_shape=jax.ShapeDtypeStruct((b, s, e), jnp.float32),
        grid=(b,),
        in_specs=[pl.BlockSpec((1, s, e), lambda i: (i, 0, 0)),
                  pl.BlockSpec((1, 1, s), lambda i: (i, 0, 0))]
                 + [_const_spec(w) for w in weights],
        out_specs=pl.BlockSpec((1, s, e), lambda i: (i, 0, 0)),
        compiler_params=pltpu.CompilerParams(
            dimension_semantics=("parallel",), vmem_limit_bytes=VMEM_LIMIT),
    )(x, mask, *weights)


def cross_ffn_block(x, ctx, ctx_mask, pc, pf, n_heads):
    """x: (B, Sq, E), ctx: (B, Sk, E), ctx_mask: (B, 1, Sk) -> (B, Sq, E)."""
    b, sq, e = x.shape
    sk = ctx.shape[1]
    weights = (pc["w_q"], pc["b_q"], pc["w_kv"], pc["b_kv"],
               pc["w_out"], pc["b_out"], pc["o_ln_g"], pc["o_ln_b"],
               pf["w1"], pf["b1"], pf["w2"], pf["b2"], pf["ln_g"], pf["ln_b"])
    return pl.pallas_call(
        functools.partial(_cross_ffn_kernel, n_heads=n_heads),
        out_shape=jax.ShapeDtypeStruct((b, sq, e), jnp.float32),
        grid=(b,),
        in_specs=[pl.BlockSpec((1, sq, e), lambda i: (i, 0, 0)),
                  pl.BlockSpec((1, sk, e), lambda i: (i, 0, 0)),
                  pl.BlockSpec((1, 1, sk), lambda i: (i, 0, 0))]
                 + [_const_spec(w) for w in weights],
        out_specs=pl.BlockSpec((1, sq, e), lambda i: (i, 0, 0)),
        compiler_params=pltpu.CompilerParams(
            dimension_semantics=("parallel",), vmem_limit_bytes=VMEM_LIMIT),
    )(x, ctx, ctx_mask, *weights)


# ----------------------------- model forward (4 kernel launches total) -----------------------------

def socml_forward(pp, lang_feats, lang_mask, visn_feats, visn_mask, n_heads):
    """Masks are additive (B, 1, 1, S) as in the PyTorch reference."""
    b = lang_feats.shape[0]
    lmask = lang_mask.reshape(b, 1, lang_mask.shape[-1])
    vmask = visn_mask.reshape(b, 1, visn_mask.shape[-1])
    # 1) guided self attention (separate weights per modality)
    lang = self_guided_att_block(lang_feats, lmask, pp["lang_self_att"], n_heads)
    visn = self_guided_att_block(visn_feats, vmask, pp["visn_self_att"], n_heads)
    # 2) cross attention (SAME weights in both directions) + 3) FFN + output, fused
    lang_out = cross_ffn_block(lang, visn, vmask, pp["cross_attention"], pp["lang_ffn"], n_heads)
    visn_out = cross_ffn_block(visn, lang, lmask, pp["cross_attention"], pp["visn_ffn"], n_heads)
    return lang_out, visn_out


# ----------------------------- deterministic parameter init + preprocessing -----------------------------

def _dense(key, fin, fout):
    kw, kb = jax.random.split(key)
    w = jax.random.normal(kw, (fin, fout), jnp.float32) * 0.02
    b = jax.random.normal(kb, (fout,), jnp.float32) * 0.02
    return w, b


def init_guided_att(key, E):
    ks = jax.random.split(key, 5)
    qw, qb = _dense(ks[0], E, E)
    kw_, kb_ = _dense(ks[1], E, E)
    vw, vb = _dense(ks[2], E, E)
    ow, ob = _dense(ks[3], E, E)
    mw, mb = _dense(ks[4], E, E)
    return dict(q_w=qw, q_b=qb, k_w=kw_, k_b=kb_, v_w=vw, v_b=vb,
                obs_w=ow, obs_b=ob, mat_w=mw, mat_b=mb,
                g_ln_g=jnp.ones((E,), jnp.float32),
                g_ln_b=jnp.zeros((E,), jnp.float32))


def init_att(key, E):
    ks = jax.random.split(key, 3)
    qw, qb = _dense(ks[0], E, E)
    kw_, kb_ = _dense(ks[1], E, E)
    vw, vb = _dense(ks[2], E, E)
    return dict(q_w=qw, q_b=qb, k_w=kw_, k_b=kb_, v_w=vw, v_b=vb)


def init_att_output(key, E):
    dw, db = _dense(key, E, E)
    return dict(dense_w=dw, dense_b=db,
                ln_g=jnp.ones((E,), jnp.float32), ln_b=jnp.zeros((E,), jnp.float32))


def init_intermediate(key, E):
    w, b = _dense(key, E, 4 * E)
    return dict(w=w, b=b)


def init_output(key, E):
    w, b = _dense(key, 4 * E, E)
    return dict(w=w, b=b,
                ln_g=jnp.ones((E,), jnp.float32), ln_b=jnp.zeros((E,), jnp.float32))


def init_params(key, E):
    ks = jax.random.split(key, 10)
    return dict(
        lang_self_att=dict(att=init_guided_att(ks[0], E), out=init_att_output(ks[1], E)),
        visn_self_att=dict(att=init_guided_att(ks[2], E), out=init_att_output(ks[3], E)),
        cross_attention=dict(att=init_att(ks[4], E), out=init_att_output(ks[5], E)),
        lang_inter=init_intermediate(ks[6], E),
        visn_inter=init_intermediate(ks[7], E),
        lang_output=init_output(ks[8], E),
        visn_output=init_output(ks[9], E),
    )


def preprocess_params(raw):
    """One-time preprocessing (outside the jitted forward): fuse QKV / KV weights,
    store weight matrices bf16, reshape biases / LN params to (1, N) f32 rows."""
    bf = lambda w: w.astype(jnp.bfloat16)
    row = lambda v: v.reshape(1, -1).astype(jnp.float32)

    def prep_self(blk):
        a, o = blk["att"], blk["out"]
        return dict(
            w_qkv=bf(jnp.concatenate([a["q_w"], a["k_w"], a["v_w"]], axis=1)),
            b_qkv=row(jnp.concatenate([a["q_b"], a["k_b"], a["v_b"]], axis=0)),
            w_obs=bf(a["obs_w"]), b_obs=row(a["obs_b"]),
            w_mat=bf(a["mat_w"]), b_mat=row(a["mat_b"]),
            g_ln_g=row(a["g_ln_g"]), g_ln_b=row(a["g_ln_b"]),
            w_out=bf(o["dense_w"]), b_out=row(o["dense_b"]),
            o_ln_g=row(o["ln_g"]), o_ln_b=row(o["ln_b"]))

    def prep_cross(blk):
        a, o = blk["att"], blk["out"]
        return dict(
            w_q=bf(a["q_w"]), b_q=row(a["q_b"]),
            w_kv=bf(jnp.concatenate([a["k_w"], a["v_w"]], axis=1)),
            b_kv=row(jnp.concatenate([a["k_b"], a["v_b"]], axis=0)),
            w_out=bf(o["dense_w"]), b_out=row(o["dense_b"]),
            o_ln_g=row(o["ln_g"]), o_ln_b=row(o["ln_b"]))

    def prep_ffn(inter, outp):
        return dict(w1=bf(inter["w"]), b1=row(inter["b"]),
                    w2=bf(outp["w"]), b2=row(outp["b"]),
                    ln_g=row(outp["ln_g"]), ln_b=row(outp["ln_b"]))

    return dict(
        lang_self_att=prep_self(raw["lang_self_att"]),
        visn_self_att=prep_self(raw["visn_self_att"]),
        cross_attention=prep_cross(raw["cross_attention"]),
        lang_ffn=prep_ffn(raw["lang_inter"], raw["lang_output"]),
        visn_ffn=prep_ffn(raw["visn_inter"], raw["visn_output"]),
    )


# ----------------------------- main -----------------------------

if __name__ == "__main__":
    E, H = 32, 4            # embedding_size, n_heads  -> head_dim = 8
    B, S_L, S_V = 2, 8, 16  # batch, lang seq, visn seq

    root = jax.random.PRNGKey(0)
    k_params, k_lang, k_visn = jax.random.split(root, 3)

    raw_params = init_params(k_params, E)
    params = preprocess_params(raw_params)   # fused/bf16 weights, built ONCE outside jit

    lang_feats = jax.random.normal(k_lang, (B, S_L, E), jnp.float32)
    visn_feats = jax.random.normal(k_visn, (B, S_V, E), jnp.float32)

    # Additive attention masks (0 = attend, -1e4 = masked), broadcastable to scores.
    lang_mask = jnp.zeros((B, 1, 1, S_L), jnp.float32).at[:, :, :, -2:].set(-10000.0)
    visn_mask = jnp.zeros((B, 1, 1, S_V), jnp.float32).at[:, :, :, -3:].set(-10000.0)

    fwd = jax.jit(functools.partial(socml_forward, n_heads=H))
    lang_out, visn_out = fwd(params, lang_feats, lang_mask, visn_feats, visn_mask)
    jax.block_until_ready((lang_out, visn_out))

    assert lang_out.shape == (B, S_L, E), lang_out.shape
    assert visn_out.shape == (B, S_V, E), visn_out.shape
    assert bool(jnp.all(jnp.isfinite(lang_out))) and bool(jnp.all(jnp.isfinite(visn_out)))
    print("KERNEL_OK")
</pallas_src>

<mosaic_0001>
module attributes {stable_mosaic.version = 11 : i64} {
  func.func @_cross_ffn_kernel(%arg0: i32, %arg1: memref<1x8x32xf32, #tpu.memory_space<vmem>>, %arg2: memref<1x16x32xf32, #tpu.memory_space<vmem>>, %arg3: memref<1x1x16xf32, #tpu.memory_space<vmem>>, %arg4: memref<32x32xbf16, #tpu.memory_space<vmem>>, %arg5: memref<1x32xf32, #tpu.memory_space<vmem>>, %arg6: memref<32x64xbf16, #tpu.memory_space<vmem>>, %arg7: memref<1x64xf32, #tpu.memory_space<vmem>>, %arg8: memref<32x32xbf16, #tpu.memory_space<vmem>>, %arg9: memref<1x32xf32, #tpu.memory_space<vmem>>, %arg10: memref<1x32xf32, #tpu.memory_space<vmem>>, %arg11: memref<1x32xf32, #tpu.memory_space<vmem>>, %arg12: memref<32x128xbf16, #tpu.memory_space<vmem>>, %arg13: memref<1x128xf32, #tpu.memory_space<vmem>>, %arg14: memref<128x32xbf16, #tpu.memory_space<vmem>>, %arg15: memref<1x32xf32, #tpu.memory_space<vmem>>, %arg16: memref<1x32xf32, #tpu.memory_space<vmem>>, %arg17: memref<1x32xf32, #tpu.memory_space<vmem>>, %arg18: memref<1x8x32xf32, #tpu.memory_space<vmem>>) attributes {dimension_semantics = [#tpu.dimension_semantics<parallel>], iteration_bounds = array<i64: 2>, scalar_prefetch = 0 : i64, scratch_operands = 0 : i64, tpu.core_type = #tpu.core_type<tc>, window_params = [{transform_indices = @transform_0, window_bounds = array<i64: 1, 8, 32>}, {transform_indices = @transform_1, window_bounds = array<i64: 1, 16, 32>}, {transform_indices = @transform_2, window_bounds = array<i64: 1, 1, 16>}, {pipeline_mode = #tpu.pipeline_mode<synchronous>, transform_indices = @transform_3, window_bounds = array<i64: 32, 32>}, {pipeline_mode = #tpu.pipeline_mode<synchronous>, transform_indices = @transform_4, window_bounds = array<i64: 1, 32>}, {pipeline_mode = #tpu.pipeline_mode<synchronous>, transform_indices = @transform_5, window_bounds = array<i64: 32, 64>}, {pipeline_mode = #tpu.pipeline_mode<synchronous>, transform_indices = @transform_6, window_bounds = array<i64: 1, 64>}, {pipeline_mode = #tpu.pipeline_mode<synchronous>, transform_indices = @transform_7, window_bounds = array<i64: 32, 32>}, {pipeline_mode = #tpu.pipeline_mode<synchronous>, transform_indices = @transform_8, window_bounds = array<i64: 1, 32>}, {pipeline_mode = #tpu.pipeline_mode<synchronous>, transform_indices = @transform_9, window_bounds = array<i64: 1, 32>}, {pipeline_mode = #tpu.pipeline_mode<synchronous>, transform_indices = @transform_10, window_bounds = array<i64: 1, 32>}, {pipeline_mode = #tpu.pipeline_mode<synchronous>, transform_indices = @transform_11, window_bounds = array<i64: 32, 128>}, {pipeline_mode = #tpu.pipeline_mode<synchronous>, transform_indices = @transform_12, window_bounds = array<i64: 1, 128>}, {pipeline_mode = #tpu.pipeline_mode<synchronous>, transform_indices = @transform_13, window_bounds = array<i64: 128, 32>}, {pipeline_mode = #tpu.pipeline_mode<synchronous>, transform_indices = @transform_14, window_bounds = array<i64: 1, 32>}, {pipeline_mode = #tpu.pipeline_mode<synchronous>, transform_indices = @transform_15, window_bounds = array<i64: 1, 32>}, {pipeline_mode = #tpu.pipeline_mode<synchronous>, transform_indices = @transform_16, window_bounds = array<i64: 1, 32>}, {transform_indices = @transform_17, window_bounds = array<i64: 1, 8, 32>}]} {
    %c0 = arith.constant 0 : index
    %c0_0 = arith.constant 0 : index
    %c0_1 = arith.constant 0 : index
    %0 = vector.load %arg1[%c0, %c0_0, %c0_1] : memref<1x8x32xf32, #tpu.memory_space<vmem>>, vector<1x8x32xf32>
    %1 = vector.shape_cast %0 : vector<1x8x32xf32> to vector<8x32xf32>
    %c0_2 = arith.constant 0 : index
    %c0_3 = arith.constant 0 : index
    %c0_4 = arith.constant 0 : index
    %2 = vector.load %arg2[%c0_2, %c0_3, %c0_4] : memref<1x16x32xf32, #tpu.memory_space<vmem>>, vector<1x16x32xf32>
    %3 = vector.shape_cast %2 : vector<1x16x32xf32> to vector<16x32xf32>
    %c0_5 = arith.constant 0 : index
    %c0_6 = arith.constant 0 : index
    %c0_7 = arith.constant 0 : index
    %4 = vector.load %arg3[%c0_5, %c0_6, %c0_7] : memref<1x1x16xf32, #tpu.memory_space<vmem>>, vector<1x1x16xf32>
    %5 = vector.shape_cast %4 : vector<1x1x16xf32> to vector<1x16xf32>
    %c0_8 = arith.constant 0 : index
    %c0_9 = arith.constant 0 : index
    %6 = vector.load %arg4[%c0_8, %c0_9] : memref<32x32xbf16, #tpu.memory_space<vmem>>, vector<32x32xbf16>
    %c0_10 = arith.constant 0 : index
    %c0_11 = arith.constant 0 : index
    %7 = vector.load %arg5[%c0_10, %c0_11] : memref<1x32xf32, #tpu.memory_space<vmem>>, vector<1x32xf32>
    %8 = arith.truncf %1 : vector<8x32xf32> to vector<8x32xbf16>
    %cst = arith.constant dense<0.000000e+00> : vector<8x32xf32>
    %9 = tpu.matmul %8, %6, %cst {dimension_numbers = #tpu.dot_dimension_numbers<[1], [0], [0], [1], [0, 0, 1, 1], [], []>} : vector<8x32xbf16>, vector<32x32xbf16>, vector<8x32xf32> -> vector<8x32xf32>
    %10 = vector.broadcast %7 : vector<1x32xf32> to vector<8x32xf32>
    %11 = arith.addf %9, %10 : vector<8x32xf32>
    %c0_12 = arith.constant 0 : index
    %c0_13 = arith.constant 0 : index
    %12 = vector.load %arg6[%c0_12, %c0_13] : memref<32x64xbf16, #tpu.memory_space<vmem>>, vector<32x64xbf16>
    %c0_14 = arith.constant 0 : index
    %c0_15 = arith.constant 0 : index
    %13 = vector.load %arg7[%c0_14, %c0_15] : memref<1x64xf32, #tpu.memory_space<vmem>>, vector<1x64xf32>
    %14 = arith.truncf %3 : vector<16x32xf32> to vector<16x32xbf16>
    %cst_16 = arith.constant dense<0.000000e+00> : vector<16x64xf32>
    %15 = tpu.matmul %14, %12, %cst_16 {dimension_numbers = #tpu.dot_dimension_numbers<[1], [0], [0], [1], [0, 0, 1, 1], [], []>} : vector<16x32xbf16>, vector<32x64xbf16>, vector<16x64xf32> -> vector<16x64xf32>
    %16 = vector.broadcast %13 : vector<1x64xf32> to vector<16x64xf32>
    %17 = arith.addf %15, %16 : vector<16x64xf32>
    %18 = vector.extract_strided_slice %17 {offsets = [0, 0], sizes = [16, 32], strides = [1, 1]} : vector<16x64xf32> to vector<16x32xf32>
    %19 = vector.extract_strided_slice %17 {offsets = [0, 32], sizes = [16, 32], strides = [1, 1]} : vector<16x64xf32> to vector<16x32xf32>
    %c0_17 = arith.constant 0 : index
    %c0_18 = arith.constant 0 : index
    %20 = vector.load %arg8[%c0_17, %c0_18] : memref<32x32xbf16, #tpu.memory_space<vmem>>, vector<32x32xbf16>
    %cst_19 = arith.constant 0.000000e+00 : f32
    %21 = vector.broadcast %cst_19 : f32 to vector<8x32xf32>
    %22 = vector.extract_strided_slice %11 {offsets = [0, 0], sizes = [8, 8], strides = [1, 1]} : vector<8x32xf32> to vector<8x8xf32>
    %cst_20 = arith.constant 0.353553385 : f32
    %23 = vector.broadcast %cst_20 : f32 to vector<8x8xf32>
    %24 = arith.mulf %22, %23 : vector<8x8xf32>
    %25 = arith.truncf %24 : vector<8x8xf32> to vector<8x8xbf16>
    %26 = vector.extract_strided_slice %18 {offsets = [0, 0], sizes = [16, 8], strides = [1, 1]} : vector<16x32xf32> to vector<16x8xf32>
    %27 = arith.truncf %26 : vector<16x8xf32> to vector<16x8xbf16>
    %28 = vector.extract_strided_slice %19 {offsets = [0, 0], sizes = [16, 8], strides = [1, 1]} : vector<16x32xf32> to vector<16x8xf32>
    %29 = arith.truncf %28 : vector<16x8xf32> to vector<16x8xbf16>
    %cst_21 = arith.constant dense<0.000000e+00> : vector<8x16xf32>
    %30 = tpu.matmul %25, %27, %cst_21 {dimension_numbers = #tpu.dot_dimension_numbers<[1], [1], [0], [0], [0, 0, 1, 0], [], []>} : vector<8x8xbf16>, vector<16x8xbf16>, vector<8x16xf32> -> vector<8x16xf32>
    %31 = vector.broadcast %5 : vector<1x16xf32> to vector<8x16xf32>
    %32 = arith.addf %30, %31 : vector<8x16xf32>
    %cst_22 = arith.constant dense<0xFF800000> : vector<8xf32>
    %33 = vector.multi_reduction <maximumf>, %32, %cst_22 [1] : vector<8x16xf32> to vector<8xf32>
    %34 = vector.shape_cast %33 : vector<8xf32> to vector<8x1xf32>
    %35 = vector.broadcast %34 : vector<8x1xf32> to vector<8x16xf32>
    %36 = arith.subf %32, %35 : vector<8x16xf32>
    %37 = math.exp %36 : vector<8x16xf32>
    %cst_23 = arith.constant dense<0.000000e+00> : vector<8xf32>
    %38 = vector.multi_reduction <add>, %37, %cst_23 [1] : vector<8x16xf32> to vector<8xf32>
    %39 = vector.shape_cast %38 : vector<8xf32> to vector<8x1xf32>
    %40 = tpu.reciprocal %39 {approx = true} : vector<8x1xf32> -> vector<8x1xf32>
    %41 = vector.broadcast %40 : vector<8x1xf32> to vector<8x16xf32>
    %42 = arith.mulf %37, %41 : vector<8x16xf32>
    %43 = arith.truncf %42 : vector<8x16xf32> to vector<8x16xbf16>
    %cst_24 = arith.constant dense<0.000000e+00> : vector<8x8xf32>
    %44 = tpu.matmul %43, %29, %cst_24 {dimension_numbers = #tpu.dot_dimension_numbers<[1], [0], [0], [1], [0, 0, 1, 1], [], []>} : vector<8x16xbf16>, vector<16x8xbf16>, vector<8x8xf32> -> vector<8x8xf32>
    %45 = arith.truncf %44 : vector<8x8xf32> to vector<8x8xbf16>
    %46 = vector.extract_strided_slice %20 {offsets = [0, 0], sizes = [8, 32], strides = [1, 1]} : vector<32x32xbf16> to vector<8x32xbf16>
    %cst_25 = arith.constant dense<0.000000e+00> : vector<8x32xf32>
    %47 = tpu.matmul %45, %46, %cst_25 {dimension_numbers = #tpu.dot_dimension_numbers<[1], [0], [0], [1], [0, 0, 1, 1], [], []>} : vector<8x8xbf16>, vector<8x32xbf16>, vector<8x32xf32> -> vector<8x32xf32>
    %48 = arith.addf %21, %47 : vector<8x32xf32>
    %49 = vector.extract_strided_slice %11 {offsets = [0, 8], sizes = [8, 8], strides = [1, 1]} : vector<8x32xf32> to vector<8x8xf32>
    %cst_26 = arith.constant 0.353553385 : f32
    %50 = vector.broadcast %cst_26 : f32 to vector<8x8xf32>
    %51 = arith.mulf %49, %50 : vector<8x8xf32>
    %52 = arith.truncf %51 : vector<8x8xf32> to vector<8x8xbf16>
    %53 = vector.extract_strided_slice %18 {offsets = [0, 8], sizes = [16, 8], strides = [1, 1]} : vector<16x32xf32> to vector<16x8xf32>
    %54 = arith.truncf %53 : vector<16x8xf32> to vector<16x8xbf16>
    %55 = vector.extract_strided_slice %19 {offsets = [0, 8], sizes = [16, 8], strides = [1, 1]} : vector<16x32xf32> to vector<16x8xf32>
    %56 = arith.truncf %55 : vector<16x8xf32> to vector<16x8xbf16>
    %cst_27 = arith.constant dense<0.000000e+00> : vector<8x16xf32>
    %57 = tpu.matmul %52, %54, %cst_27 {dimension_numbers = #tpu.dot_dimension_numbers<[1], [1], [0], [0], [0, 0, 1, 0], [], []>} : vector<8x8xbf16>, vector<16x8xbf16>, vector<8x16xf32> -> vector<8x16xf32>
    %58 = vector.broadcast %5 : vector<1x16xf32> to vector<8x16xf32>
    %59 = arith.addf %57, %58 : vector<8x16xf32>
    %cst_28 = arith.constant dense<0xFF800000> : vector<8xf32>
    %60 = vector.multi_reduction <maximumf>, %59, %cst_28 [1] : vector<8x16xf32> to vector<8xf32>
    %61 = vector.shape_cast %60 : vector<8xf32> to vector<8x1xf32>
    %62 = vector.broadcast %61 : vector<8x1xf32> to vector<8x16xf32>
    %63 = arith.subf %59, %62 : vector<8x16xf32>
    %64 = math.exp %63 : vector<8x16xf32>
    %cst_29 = arith.constant dense<0.000000e+00> : vector<8xf32>
    %65 = vector.multi_reduction <add>, %64, %cst_29 [1] : vector<8x16xf32> to vector<8xf32>
    %66 = vector.shape_cast %65 : vector<8xf32> to vector<8x1xf32>
    %67 = tpu.reciprocal %66 {approx = true} : vector<8x1xf32> -> vector<8x1xf32>
    %68 = vector.broadcast %67 : vector<8x1xf32> to vector<8x16xf32>
    %69 = arith.mulf %64, %68 : vector<8x16xf32>
    %70 = arith.truncf %69 : vector<8x16xf32> to vector<8x16xbf16>
    %cst_30 = arith.constant dense<0.000000e+00> : vector<8x8xf32>
    %71 = tpu.matmul %70, %56, %cst_30 {dimension_numbers = #tpu.dot_dimension_numbers<[1], [0], [0], [1], [0, 0, 1, 1], [], []>} : vector<8x16xbf16>, vector<16x8xbf16>, vector<8x8xf32> -> vector<8x8xf32>
    %72 = arith.truncf %71 : vector<8x8xf32> to vector<8x8xbf16>
    %73 = vector.extract_strided_slice %20 {offsets = [8, 0], sizes = [8, 32], strides = [1, 1]} : vector<32x32xbf16> to vector<8x32xbf16>
    %cst_31 = arith.constant dense<0.000000e+00> : vector<8x32xf32>
    %74 = tpu.matmul %72, %73, %cst_31 {dimension_numbers = #tpu.dot_dimension_numbers<[1], [0], [0], [1], [0, 0, 1, 1], [], []>} : vector<8x8xbf16>, vector<8x32xbf16>, vector<8x32xf32> -> vector<8x32xf32>
    %75 = arith.addf %48, %74 : vector<8x32xf32>
    %76 = vector.extract_strided_slice %11 {offsets = [0, 16], sizes = [8, 8], strides = [1, 1]} : vector<8x32xf32> to vector<8x8xf32>
    %cst_32 = arith.constant 0.353553385 : f32
    %77 = vector.broadcast %cst_32 : f32 to vector<8x8xf32>
    %78 = arith.mulf %76, %77 : vector<8x8xf32>
    %79 = arith.truncf %78 : vector<8x8xf32> to vector<8x8xbf16>
    %80 = vector.extract_strided_slice %18 {offsets = [0, 16], sizes = [16, 8], strides = [1, 1]} : vector<16x32xf32> to vector<16x8xf32>
    %81 = arith.truncf %80 : vector<16x8xf32> to vector<16x8xbf16>
    %82 = vector.extract_strided_slice %19 {offsets = [0, 16], sizes = [16, 8], strides = [1, 1]} : vector<16x32xf32> to vector<16x8xf32>
    %83 = arith.truncf %82 : vector<16x8xf32> to vector<16x8xbf16>
    %cst_33 = arith.constant dense<0.000000e+00> : vector<8x16xf32>
    %84 = tpu.matmul %79, %81, %cst_33 {dimension_numbers = #tpu.dot_dimension_numbers<[1], [1], [0], [0], [0, 0, 1, 0], [], []>} : vector<8x8xbf16>, vector<16x8xbf16>, vector<8x16xf32> -> vector<8x16xf32>
    %85 = vector.broadcast %5 : vector<1x16xf32> to vector<8x16xf32>
    %86 = arith.addf %84, %85 : vector<8x16xf32>
    %cst_34 = arith.constant dense<0xFF800000> : vector<8xf32>
    %87 = vector.multi_reduction <maximumf>, %86, %cst_34 [1] : vector<8x16xf32> to vector<8xf32>
    %88 = vector.shape_cast %87 : vector<8xf32> to vector<8x1xf32>
    %89 = vector.broadcast %88 : vector<8x1xf32> to vector<8x16xf32>
    %90 = arith.subf %86, %89 : vector<8x16xf32>
    %91 = math.exp %90 : vector<8x16xf32>
    %cst_35 = arith.constant dense<0.000000e+00> : vector<8xf32>
    %92 = vector.multi_reduction <add>, %91, %cst_35 [1] : vector<8x16xf32> to vector<8xf32>
    %93 = vector.shape_cast %92 : vector<8xf32> to vector<8x1xf32>
    %94 = tpu.reciprocal %93 {approx = true} : vector<8x1xf32> -> vector<8x1xf32>
    %95 = vector.broadcast %94 : vector<8x1xf32> to vector<8x16xf32>
    %96 = arith.mulf %91, %95 : vector<8x16xf32>
    %97 = arith.truncf %96 : vector<8x16xf32> to vector<8x16xbf16>
    %cst_36 = arith.constant dense<0.000000e+00> : vector<8x8xf32>
    %98 = tpu.matmul %97, %83, %cst_36 {dimension_numbers = #tpu.dot_dimension_numbers<[1], [0], [0], [1], [0, 0, 1, 1], [], []>} : vector<8x16xbf16>, vector<16x8xbf16>, vector<8x8xf32> -> vector<8x8xf32>
    %99 = arith.truncf %98 : vector<8x8xf32> to vector<8x8xbf16>
    %100 = vector.extract_strided_slice %20 {offsets = [16, 0], sizes = [8, 32], strides = [1, 1]} : vector<32x32xbf16> to vector<8x32xbf16>
    %cst_37 = arith.constant dense<0.000000e+00> : vector<8x32xf32>
    %101 = tpu.matmul %99, %100, %cst_37 {dimension_numbers = #tpu.dot_dimension_numbers<[1], [0], [0], [1], [0, 0, 1, 1], [], []>} : vector<8x8xbf16>, vector<8x32xbf16>, vector<8x32xf32> -> vector<8x32xf32>
    %102 = arith.addf %75, %101 : vector<8x32xf32>
    %103 = vector.extract_strided_slice %11 {offsets = [0, 24], sizes = [8, 8], strides = [1, 1]} : vector<8x32xf32> to vector<8x8xf32>
    %cst_38 = arith.constant 0.353553385 : f32
    %104 = vector.broadcast %cst_38 : f32 to vector<8x8xf32>
    %105 = arith.mulf %103, %104 : vector<8x8xf32>
    %106 = arith.truncf %105 : vector<8x8xf32> to vector<8x8xbf16>
    %107 = vector.extract_strided_slice %18 {offsets = [0, 24], sizes = [16, 8], strides = [1, 1]} : vector<16x32xf32> to vector<16x8xf32>
    %108 = arith.truncf %107 : vector<16x8xf32> to vector<16x8xbf16>
    %109 = vector.extract_strided_slice %19 {offsets = [0, 24], sizes = [16, 8], strides = [1, 1]} : vector<16x32xf32> to vector<16x8xf32>
    %110 = arith.truncf %109 : vector<16x8xf32> to vector<16x8xbf16>
    %cst_39 = arith.constant dense<0.000000e+00> : vector<8x16xf32>
    %111 = tpu.matmul %106, %108, %cst_39 {dimension_numbers = #tpu.dot_dimension_numbers<[1], [1], [0], [0], [0, 0, 1, 0], [], []>} : vector<8x8xbf16>, vector<16x8xbf16>, vector<8x16xf32> -> vector<8x16xf32>
    %112 = vector.broadcast %5 : vector<1x16xf32> to vector<8x16xf32>
    %113 = arith.addf %111, %112 : vector<8x16xf32>
    %cst_40 = arith.constant dense<0xFF800000> : vector<8xf32>
    %114 = vector.multi_reduction <maximumf>, %113, %cst_40 [1] : vector<8x16xf32> to vector<8xf32>
    %115 = vector.shape_cast %114 : vector<8xf32> to vector<8x1xf32>
    %116 = vector.broadcast %115 : vector<8x1xf32> to vector<8x16xf32>
    %117 = arith.subf %113, %116 : vector<8x16xf32>
    %118 = math.exp %117 : vector<8x16xf32>
    %cst_41 = arith.constant dense<0.000000e+00> : vector<8xf32>
    %119 = vector.multi_reduction <add>, %118, %cst_41 [1] : vector<8x16xf32> to vector<8xf32>
    %120 = vector.shape_cast %119 : vector<8xf32> to vector<8x1xf32>
    %121 = tpu.reciprocal %120 {approx = true} : vector<8x1xf32> -> vector<8x1xf32>
    %122 = vector.broadcast %121 : vector<8x1xf32> to vector<8x16xf32>
    %123 = arith.mulf %118, %122 : vector<8x16xf32>
    %124 = arith.truncf %123 : vector<8x16xf32> to vector<8x16xbf16>
    %cst_42 = arith.constant dense<0.000000e+00> : vector<8x8xf32>
    %125 = tpu.matmul %124, %110, %cst_42 {dimension_numbers = #tpu.dot_dimension_numbers<[1], [0], [0], [1], [0, 0, 1, 1], [], []>} : vector<8x16xbf16>, vector<16x8xbf16>, vector<8x8xf32> -> vector<8x8xf32>
    %126 = arith.truncf %125 : vector<8x8xf32> to vector<8x8xbf16>
    %127 = vector.extract_strided_slice %20 {offsets = [24, 0], sizes = [8, 32], strides = [1, 1]} : vector<32x32xbf16> to vector<8x32xbf16>
    %cst_43 = arith.constant dense<0.000000e+00> : vector<8x32xf32>
    %128 = tpu.matmul %126, %127, %cst_43 {dimension_numbers = #tpu.dot_dimension_numbers<[1], [0], [0], [1], [0, 0, 1, 1], [], []>} : vector<8x8xbf16>, vector<8x32xbf16>, vector<8x32xf32> -> vector<8x32xf32>
    %129 = arith.addf %102, %128 : vector<8x32xf32>
    %c0_44 = arith.constant 0 : index
    %c0_45 = arith.constant 0 : index
    %130 = vector.load %arg9[%c0_44, %c0_45] : memref<1x32xf32, #tpu.memory_space<vmem>>, vector<1x32xf32>
    %131 = vector.broadcast %130 : vector<1x32xf32> to vector<8x32xf32>
    %132 = arith.addf %129, %131 : vector<8x32xf32>
    %133 = arith.addf %132, %1 : vector<8x32xf32>
    %c0_46 = arith.constant 0 : index
    %c0_47 = arith.constant 0 : index
    %134 = vector.load %arg10[%c0_46, %c0_47] : memref<1x32xf32, #tpu.memory_space<vmem>>, vector<1x32xf32>
    %c0_48 = arith.constant 0 : index
    %c0_49 = arith.constant 0 : index
    %135 = vector.load %arg11[%c0_48, %c0_49] : memref<1x32xf32, #tpu.memory_space<vmem>>, vector<1x32xf32>
    %cst_50 = arith.constant dense<0.000000e+00> : vector<8xf32>
    %136 = vector.multi_reduction <add>, %133, %cst_50 [1] : vector<8x32xf32> to vector<8xf32>
    %137 = vector.shape_cast %136 : vector<8xf32> to vector<8x1xf32>
    %cst_51 = arith.constant 3.200000e+01 : f32
    %138 = vector.broadcast %cst_51 : f32 to vector<8x1xf32>
    %139 = arith.divf %137, %138 : vector<8x1xf32>
    %140 = vector.broadcast %139 : vector<8x1xf32> to vector<8x32xf32>
    %141 = arith.subf %133, %140 : vector<8x32xf32>
    %142 = arith.mulf %141, %141 : vector<8x32xf32>
    %cst_52 = arith.constant dense<0.000000e+00> : vector<8xf32>
    %143 = vector.multi_reduction <add>, %142, %cst_52 [1] : vector<8x32xf32> to vector<8xf32>
    %144 = vector.shape_cast %143 : vector<8xf32> to vector<8x1xf32>
    %cst_53 = arith.constant 3.200000e+01 : f32
    %145 = vector.broadcast %cst_53 : f32 to vector<8x1xf32>
    %146 = arith.divf %144, %145 : vector<8x1xf32>
    %147 = vector.broadcast %139 : vector<8x1xf32> to vector<8x32xf32>
    %148 = arith.subf %133, %147 : vector<8x32xf32>
    %cst_54 = arith.constant 9.99999997E-7 : f32
    %149 = vector.broadcast %cst_54 : f32 to vector<8x1xf32>
    %150 = arith.addf %146, %149 : vector<8x1xf32>
    %151 = math.rsqrt %150 : vector<8x1xf32>
    %152 = vector.broadcast %151 : vector<8x1xf32> to vector<8x32xf32>
    %153 = arith.mulf %148, %152 : vector<8x32xf32>
    %154 = vector.broadcast %134 : vector<1x32xf32> to vector<8x32xf32>
    %155 = arith.mulf %153, %154 : vector<8x32xf32>
    %156 = vector.broadcast %135 : vector<1x32xf32> to vector<8x32xf32>
    %157 = arith.addf %155, %156 : vector<8x32xf32>
    %c0_55 = arith.constant 0 : index
    %c0_56 = arith.constant 0 : index
    %158 = vector.load %arg12[%c0_55, %c0_56] : memref<32x128xbf16, #tpu.memory_space<vmem>>, vector<32x128xbf16>
    %c0_57 = arith.constant 0 : index
    %c0_58 = arith.constant 0 : index
    %159 = vector.load %arg13[%c0_57, %c0_58] : memref<1x128xf32, #tpu.memory_space<vmem>>, vector<1x128xf32>
    %160 = arith.truncf %157 : vector<8x32xf32> to vector<8x32xbf16>
    %cst_59 = arith.constant dense<0.000000e+00> : vector<8x128xf32>
    %161 = tpu.matmul %160, %158, %cst_59 {dimension_numbers = #tpu.dot_dimension_numbers<[1], [0], [0], [1], [0, 0, 1, 1], [], []>} : vector<8x32xbf16>, vector<32x128xbf16>, vector<8x128xf32> -> vector<8x128xf32>
    %162 = vector.broadcast %159 : vector<1x128xf32> to vector<8x128xf32>
    %163 = arith.addf %161, %162 : vector<8x128xf32>
    %cst_60 = arith.constant 5.000000e-01 : f32
    %164 = vector.broadcast %cst_60 : f32 to vector<8x128xf32>
    %165 = arith.mulf %163, %164 : vector<8x128xf32>
    %cst_61 = arith.constant 1.41421354 : f32
    %166 = vector.broadcast %cst_61 : f32 to vector<8x128xf32>
    %167 = arith.divf %163, %166 : vector<8x128xf32>
    %cst_62 = arith.constant 0.000000e+00 : f32
    %168 = vector.broadcast %cst_62 : f32 to vector<8x128xf32>
    %169 = arith.cmpf oge, %167, %168 : vector<8x128xf32>
    %cst_63 = arith.constant 1.000000e+00 : f32
    %cst_64 = arith.constant -1.000000e+00 : f32
    %170 = vector.broadcast %cst_63 : f32 to vector<8x128xf32>
    %171 = vector.broadcast %cst_64 : f32 to vector<8x128xf32>
    %172 = arith.select %169, %170, %171 : vector<8x128xi1>, vector<8x128xf32>
    %173 = math.absf %167 : vector<8x128xf32>
    %cst_65 = arith.constant 0.327591091 : f32
    %174 = vector.broadcast %cst_65 : f32 to vector<8x128xf32>
    %175 = arith.mulf %174, %173 : vector<8x128xf32>
    %cst_66 = arith.constant 1.000000e+00 : f32
    %176 = vector.broadcast %cst_66 : f32 to vector<8x128xf32>
    %177 = arith.addf %176, %175 : vector<8x128xf32>
    %cst_67 = arith.constant 1.000000e+00 : f32
    %178 = vector.broadcast %cst_67 : f32 to vector<8x128xf32>
    %179 = arith.divf %178, %177 : vector<8x128xf32>
    %cst_68 = arith.constant 1.06140542 : f32
    %180 = vector.broadcast %cst_68 : f32 to vector<8x128xf32>
    %181 = arith.mulf %180, %179 : vector<8x128xf32>
    %cst_69 = arith.constant -1.45315206 : f32
    %182 = vector.broadcast %cst_69 : f32 to vector<8x128xf32>
    %183 = arith.addf %181, %182 : vector<8x128xf32>
    %184 = arith.mulf %183, %179 : vector<8x128xf32>
    %cst_70 = arith.constant 1.42141378 : f32
    %185 = vector.broadcast %cst_70 : f32 to vector<8x128xf32>
    %186 = arith.addf %184, %185 : vector<8x128xf32>
    %187 = arith.mulf %186, %179 : vector<8x128xf32>
    %cst_71 = arith.constant -0.284496725 : f32
    %188 = vector.broadcast %cst_71 : f32 to vector<8x128xf32>
    %189 = arith.addf %187, %188 : vector<8x128xf32>
    %190 = arith.mulf %189, %179 : vector<8x128xf32>
    %cst_72 = arith.constant 0.254829586 : f32
    %191 = vector.broadcast %cst_72 : f32 to vector<8x128xf32>
    %192 = arith.addf %190, %191 : vector<8x128xf32>
    %193 = arith.mulf %192, %179 : vector<8x128xf32>
    %cst_73 = arith.constant 0.000000e+00 : f32
    %194 = vector.broadcast %cst_73 : f32 to vector<8x128xf32>
    %195 = arith.subf %194, %173 : vector<8x128xf32>
    %196 = arith.mulf %195, %173 : vector<8x128xf32>
    %197 = math.exp %196 : vector<8x128xf32>
    %198 = arith.mulf %193, %197 : vector<8x128xf32>
    %cst_74 = arith.constant 1.000000e+00 : f32
    %199 = vector.broadcast %cst_74 : f32 to vector<8x128xf32>
    %200 = arith.subf %199, %198 : vector<8x128xf32>
    %201 = arith.mulf %172, %200 : vector<8x128xf32>
    %cst_75 = arith.constant 1.000000e+00 : f32
    %202 = vector.broadcast %cst_75 : f32 to vector<8x128xf32>
    %203 = arith.addf %202, %201 : vector<8x128xf32>
    %204 = arith.mulf %165, %203 : vector<8x128xf32>
    %c0_76 = arith.constant 0 : index
    %c0_77 = arith.constant 0 : index
    %205 = vector.load %arg14[%c0_76, %c0_77] : memref<128x32xbf16, #tpu.memory_space<vmem>>, vector<128x32xbf16>
    %c0_78 = arith.constant 0 : index
    %c0_79 = arith.constant 0 : index
    %206 = vector.load %arg15[%c0_78, %c0_79] : memref<1x32xf32, #tpu.memory_space<vmem>>, vector<1x32xf32>
    %207 = arith.truncf %204 : vector<8x128xf32> to vector<8x128xbf16>
    %cst_80 = arith.constant dense<0.000000e+00> : vector<8x32xf32>
    %208 = tpu.matmul %207, %205, %cst_80 {dimension_numbers = #tpu.dot_dimension_numbers<[1], [0], [0], [1], [0, 0, 1, 1], [], []>} : vector<8x128xbf16>, vector<128x32xbf16>, vector<8x32xf32> -> vector<8x32xf32>
    %209 = vector.broadcast %206 : vector<1x32xf32> to vector<8x32xf32>
    %210 = arith.addf %208, %209 : vector<8x32xf32>
    %211 = arith.addf %210, %157 : vector<8x32xf32>
    %c0_81 = arith.constant 0 : index
    %c0_82 = arith.constant 0 : index
    %212 = vector.load %arg16[%c0_81, %c0_82] : memref<1x32xf32, #tpu.memory_space<vmem>>, vector<1x32xf32>
    %c0_83 = arith.constant 0 : index
    %c0_84 = arith.constant 0 : index
    %213 = vector.load %arg17[%c0_83, %c0_84] : memref<1x32xf32, #tpu.memory_space<vmem>>, vector<1x32xf32>
    %cst_85 = arith.constant dense<0.000000e+00> : vector<8xf32>
    %214 = vector.multi_reduction <add>, %211, %cst_85 [1] : vector<8x32xf32> to vector<8xf32>
    %215 = vector.shape_cast %214 : vector<8xf32> to vector<8x1xf32>
    %cst_86 = arith.constant 3.200000e+01 : f32
    %216 = vector.broadcast %cst_86 : f32 to vector<8x1xf32>
    %217 = arith.divf %215, %216 : vector<8x1xf32>
    %218 = vector.broadcast %217 : vector<8x1xf32> to vector<8x32xf32>
    %219 = arith.subf %211, %218 : vector<8x32xf32>
    %220 = arith.mulf %219, %219 : vector<8x32xf32>
    %cst_87 = arith.constant dense<0.000000e+00> : vector<8xf32>
    %221 = vector.multi_reduction <add>, %220, %cst_87 [1] : vector<8x32xf32> to vector<8xf32>
    %222 = vector.shape_cast %221 : vector<8xf32> to vector<8x1xf32>
    %cst_88 = arith.constant 3.200000e+01 : f32
    %223 = vector.broadcast %cst_88 : f32 to vector<8x1xf32>
    %224 = arith.divf %222, %223 : vector<8x1xf32>
    %225 = vector.broadcast %217 : vector<8x1xf32> to vector<8x32xf32>
    %226 = arith.subf %211, %225 : vector<8x32xf32>
    %cst_89 = arith.constant 9.99999997E-7 : f32
    %227 = vector.broadcast %cst_89 : f32 to vector<8x1xf32>
    %228 = arith.addf %224, %227 : vector<8x1xf32>
    %229 = math.rsqrt %228 : vector<8x1xf32>
    %230 = vector.broadcast %229 : vector<8x1xf32> to vector<8x32xf32>
    %231 = arith.mulf %226, %230 : vector<8x32xf32>
    %232 = vector.broadcast %212 : vector<1x32xf32> to vector<8x32xf32>
    %233 = arith.mulf %231, %232 : vector<8x32xf32>
    %234 = vector.broadcast %213 : vector<1x32xf32> to vector<8x32xf32>
    %235 = arith.addf %233, %234 : vector<8x32xf32>
    %c0_90 = arith.constant 0 : index
    %c0_91 = arith.constant 0 : index
    %c0_92 = arith.constant 0 : index
    %236 = vector.load %arg18[%c0_90, %c0_91, %c0_92] : memref<1x8x32xf32, #tpu.memory_space<vmem>>, vector<1x8x32xf32>
    %237 = vector.shape_cast %236 : vector<1x8x32xf32> to vector<8x32xf32>
    %238 = vector.shape_cast %235 : vector<8x32xf32> to vector<1x8x32xf32>
    tpu.vector_store %arg18[%c0_90, %c0_91, %c0_92], %238 {strides = array<i32>} : memref<1x8x32xf32, #tpu.memory_space<vmem>>, vector<1x8x32xf32>,
    return
  }
  func.func @transform_0(%arg0: i32) -> (i32, i32, i32) {
    %c0_i32 = arith.constant 0 : i32
    %c0_i32_0 = arith.constant 0 : i32
    %c0_i32_1 = arith.constant 0 : i32
    return %arg0, %c0_i32, %c0_i32_0 : i32, i32, i32
  }
  func.func @transform_1(%arg0: i32) -> (i32, i32, i32) {
    %c0_i32 = arith.constant 0 : i32
    %c0_i32_0 = arith.constant 0 : i32
    %c0_i32_1 = arith.constant 0 : i32
    return %arg0, %c0_i32, %c0_i32_0 : i32, i32, i32
  }
  func.func @transform_2(%arg0: i32) -> (i32, i32, i32) {
    %c0_i32 = arith.constant 0 : i32
    %c0_i32_0 = arith.constant 0 : i32
    %c0_i32_1 = arith.constant 0 : i32
    return %arg0, %c0_i32, %c0_i32_0 : i32, i32, i32
  }
  func.func @transform_3(%arg0: i32) -> (i32, i32) {
    %c0_i32 = arith.constant 0 : i32
    %c0_i32_0 = arith.constant 0 : i32
    %c0_i32_1 = arith.constant 0 : i32
    return %c0_i32, %c0_i32_0 : i32, i32
  }
  func.func @transform_4(%arg0: i32) -> (i32, i32) {
    %c0_i32 = arith.constant 0 : i32
    %c0_i32_0 = arith.constant 0 : i32
    %c0_i32_1 = arith.constant 0 : i32
    return %c0_i32, %c0_i32_0 : i32, i32
  }
  func.func @transform_5(%arg0: i32) -> (i32, i32) {
    %c0_i32 = arith.constant 0 : i32
    %c0_i32_0 = arith.constant 0 : i32
    %c0_i32_1 = arith.constant 0 : i32
    return %c0_i32, %c0_i32_0 : i32, i32
  }
  func.func @transform_6(%arg0: i32) -> (i32, i32) {
    %c0_i32 = arith.constant 0 : i32
    %c0_i32_0 = arith.constant 0 : i32
    %c0_i32_1 = arith.constant 0 : i32
    return %c0_i32, %c0_i32_0 : i32, i32
  }
  func.func @transform_7(%arg0: i32) -> (i32, i32) {
    %c0_i32 = arith.constant 0 : i32
    %c0_i32_0 = arith.constant 0 : i32
    %c0_i32_1 = arith.constant 0 : i32
    return %c0_i32, %c0_i32_0 : i32, i32
  }
  func.func @transform_8(%arg0: i32) -> (i32, i32) {
    %c0_i32 = arith.constant 0 : i32
    %c0_i32_0 = arith.constant 0 : i32
    %c0_i32_1 = arith.constant 0 : i32
    return %c0_i32, %c0_i32_0 : i32, i32
  }
  func.func @transform_9(%arg0: i32) -> (i32, i32) {
    %c0_i32 = arith.constant 0 : i32
    %c0_i32_0 = arith.constant 0 : i32
    %c0_i32_1 = arith.constant 0 : i32
    return %c0_i32, %c0_i32_0 : i32, i32
  }
  func.func @transform_10(%arg0: i32) -> (i32, i32) {
    %c0_i32 = arith.constant 0 : i32
    %c0_i32_0 = arith.constant 0 : i32
    %c0_i32_1 = arith.constant 0 : i32
    return %c0_i32, %c0_i32_0 : i32, i32
  }
  func.func @transform_11(%arg0: i32) -> (i32, i32) {
    %c0_i32 = arith.constant 0 : i32
    %c0_i32_0 = arith.constant 0 : i32
    %c0_i32_1 = arith.constant 0 : i32
    return %c0_i32, %c0_i32_0 : i32, i32
  }
  func.func @transform_12(%arg0: i32) -> (i32, i32) {
    %c0_i32 = arith.constant 0 : i32
    %c0_i32_0 = arith.constant 0 : i32
    %c0_i32_1 = arith.constant 0 : i32
    return %c0_i32, %c0_i32_0 : i32, i32
  }
  func.func @transform_13(%arg0: i32) -> (i32, i32) {
    %c0_i32 = arith.constant 0 : i32
    %c0_i32_0 = arith.constant 0 : i32
    %c0_i32_1 = arith.constant 0 : i32
    return %c0_i32, %c0_i32_0 : i32, i32
  }
  func.func @transform_14(%arg0: i32) -> (i32, i32) {
    %c0_i32 = arith.constant 0 : i32
    %c0_i32_0 = arith.constant 0 : i32
    %c0_i32_1 = arith.constant 0 : i32
    return %c0_i32, %c0_i32_0 : i32, i32
  }
  func.func @transform_15(%arg0: i32) -> (i32, i32) {
    %c0_i32 = arith.constant 0 : i32
    %c0_i32_0 = arith.constant 0 : i32
    %c0_i32_1 = arith.constant 0 : i32
    return %c0_i32, %c0_i32_0 : i32, i32
  }
  func.func @transform_16(%arg0: i32) -> (i32, i32) {
    %c0_i32 = arith.constant 0 : i32
    %c0_i32_0 = arith.constant 0 : i32
    %c0_i32_1 = arith.constant 0 : i32
    return %c0_i32, %c0_i32_0 : i32, i32
  }
  func.func @transform_17(%arg0: i32) -> (i32, i32, i32) {
    %c0_i32 = arith.constant 0 : i32
    %c0_i32_0 = arith.constant 0 : i32
    %c0_i32_1 = arith.constant 0 : i32
    return %arg0, %c0_i32, %c0_i32_0 : i32, i32, i32
  }
}

module attributes {stable_mosaic.version = 11 : i64} {
  func.func @_self_guided_kernel(%arg0: i32, %arg1: memref<1x16x32xf32, #tpu.memory_space<vmem>>, %arg2: memref<1x1x16xf32, #tpu.memory_space<vmem>>, %arg3: memref<32x96xbf16, #tpu.memory_space<vmem>>, %arg4: memref<1x96xf32, #tpu.memory_space<vmem>>, %arg5: memref<32x32xbf16, #tpu.memory_space<vmem>>, %arg6: memref<1x32xf32, #tpu.memory_space<vmem>>, %arg7: memref<32x32xbf16, #tpu.memory_space<vmem>>, %arg8: memref<1x32xf32, #tpu.memory_space<vmem>>, %arg9: memref<1x32xf32, #tpu.memory_space<vmem>>, %arg10: memref<1x32xf32, #tpu.memory_space<vmem>>, %arg11: memref<32x32xbf16, #tpu.memory_space<vmem>>, %arg12: memref<1x32xf32, #tpu.memory_space<vmem>>, %arg13: memref<1x32xf32, #tpu.memory_space<vmem>>, %arg14: memref<1x32xf32, #tpu.memory_space<vmem>>, %arg15: memref<1x16x32xf32, #tpu.memory_space<vmem>>) attributes {dimension_semantics = [#tpu.dimension_semantics<parallel>], iteration_bounds = array<i64: 2>, scalar_prefetch = 0 : i64, scratch_operands = 0 : i64, tpu.core_type = #tpu.core_type<tc>, window_params = [{transform_indices = @transform_0, window_bounds = array<i64: 1, 16, 32>}, {transform_indices = @transform_1, window_bounds = array<i64: 1, 1, 16>}, {pipeline_mode = #tpu.pipeline_mode<synchronous>, transform_indices = @transform_2, window_bounds = array<i64: 32, 96>}, {pipeline_mode = #tpu.pipeline_mode<synchronous>, transform_indices = @transform_3, window_bounds = array<i64: 1, 96>}, {pipeline_mode = #tpu.pipeline_mode<synchronous>, transform_indices = @transform_4, window_bounds = array<i64: 32, 32>}, {pipeline_mode = #tpu.pipeline_mode<synchronous>, transform_indices = @transform_5, window_bounds = array<i64: 1, 32>}, {pipeline_mode = #tpu.pipeline_mode<synchronous>, transform_indices = @transform_6, window_bounds = array<i64: 32, 32>}, {pipeline_mode = #tpu.pipeline_mode<synchronous>, transform_indices = @transform_7, window_bounds = array<i64: 1, 32>}, {pipeline_mode = #tpu.pipeline_mode<synchronous>, transform_indices = @transform_8, window_bounds = array<i64: 1, 32>}, {pipeline_mode = #tpu.pipeline_mode<synchronous>, transform_indices = @transform_9, window_bounds = array<i64: 1, 32>}, {pipeline_mode = #tpu.pipeline_mode<synchronous>, transform_indices = @transform_10, window_bounds = array<i64: 32, 32>}, {pipeline_mode = #tpu.pipeline_mode<synchronous>, transform_indices = @transform_11, window_bounds = array<i64: 1, 32>}, {pipeline_mode = #tpu.pipeline_mode<synchronous>, transform_indices = @transform_12, window_bounds = array<i64: 1, 32>}, {pipeline_mode = #tpu.pipeline_mode<synchronous>, transform_indices = @transform_13, window_bounds = array<i64: 1, 32>}, {transform_indices = @transform_14, window_bounds = array<i64: 1, 16, 32>}]} {
    %c0 = arith.constant 0 : index
    %c0_0 = arith.constant 0 : index
    %c0_1 = arith.constant 0 : index
    %0 = vector.load %arg1[%c0, %c0_0, %c0_1] : memref<1x16x32xf32, #tpu.memory_space<vmem>>, vector<1x16x32xf32>
    %1 = vector.shape_cast %0 : vector<1x16x32xf32> to vector<16x32xf32>
    %c0_2 = arith.constant 0 : index
    %c0_3 = arith.constant 0 : index
    %c0_4 = arith.constant 0 : index
    %2 = vector.load %arg2[%c0_2, %c0_3, %c0_4] : memref<1x1x16xf32, #tpu.memory_space<vmem>>, vector<1x1x16xf32>
    %3 = vector.shape_cast %2 : vector<1x1x16xf32> to vector<1x16xf32>
    %c0_5 = arith.constant 0 : index
    %c0_6 = arith.constant 0 : index
    %4 = vector.load %arg3[%c0_5, %c0_6] : memref<32x96xbf16, #tpu.memory_space<vmem>>, vector<32x96xbf16>
    %c0_7 = arith.constant 0 : index
    %c0_8 = arith.constant 0 : index
    %5 = vector.load %arg4[%c0_7, %c0_8] : memref<1x96xf32, #tpu.memory_space<vmem>>, vector<1x96xf32>
    %6 = arith.truncf %1 : vector<16x32xf32> to vector<16x32xbf16>
    %cst = arith.constant dense<0.000000e+00> : vector<16x96xf32>
    %7 = tpu.matmul %6, %4, %cst {dimension_numbers = #tpu.dot_dimension_numbers<[1], [0], [0], [1], [0, 0, 1, 1], [], []>} : vector<16x32xbf16>, vector<32x96xbf16>, vector<16x96xf32> -> vector<16x96xf32>
    %8 = vector.broadcast %5 : vector<1x96xf32> to vector<16x96xf32>
    %9 = arith.addf %7, %8 : vector<16x96xf32>
    %10 = vector.extract_strided_slice %9 {offsets = [0, 0], sizes = [16, 32], strides = [1, 1]} : vector<16x96xf32> to vector<16x32xf32>
    %11 = vector.extract_strided_slice %9 {offsets = [0, 32], sizes = [16, 32], strides = [1, 1]} : vector<16x96xf32> to vector<16x32xf32>
    %12 = vector.extract_strided_slice %9 {offsets = [0, 64], sizes = [16, 32], strides = [1, 1]} : vector<16x96xf32> to vector<16x32xf32>
    %cst_9 = arith.constant 0.176776692 : f32
    %13 = vector.broadcast %cst_9 : f32 to vector<16x32xf32>
    %14 = arith.mulf %10, %13 : vector<16x32xf32>
    %15 = arith.truncf %14 : vector<16x32xf32> to vector<16x32xbf16>
    %16 = arith.truncf %11 : vector<16x32xf32> to vector<16x32xbf16>
    %cst_10 = arith.constant dense<0.000000e+00> : vector<16x16xf32>
    %17 = tpu.matmul %15, %16, %cst_10 {dimension_numbers = #tpu.dot_dimension_numbers<[1], [1], [0], [0], [0, 0, 1, 0], [], []>} : vector<16x32xbf16>, vector<16x32xbf16>, vector<16x16xf32> -> vector<16x16xf32>
    %cst_11 = arith.constant dense<0xFF800000> : vector<16xf32>
    %18 = vector.multi_reduction <maximumf>, %17, %cst_11 [1] : vector<16x16xf32> to vector<16xf32>
    %19 = vector.shape_cast %18 : vector<16xf32> to vector<16x1xf32>
    %20 = vector.broadcast %19 : vector<16x1xf32> to vector<16x16xf32>
    %21 = arith.subf %17, %20 : vector<16x16xf32>
    %22 = math.exp %21 : vector<16x16xf32>
    %cst_12 = arith.constant dense<0.000000e+00> : vector<16xf32>
    %23 = vector.multi_reduction <add>, %22, %cst_12 [1] : vector<16x16xf32> to vector<16xf32>
    %24 = vector.shape_cast %23 : vector<16xf32> to vector<16x1xf32>
    %25 = tpu.reciprocal %24 {approx = true} : vector<16x1xf32> -> vector<16x1xf32>
    %26 = vector.broadcast %25 : vector<16x1xf32> to vector<16x16xf32>
    %27 = arith.mulf %22, %26 : vector<16x16xf32>
    %28 = arith.truncf %27 : vector<16x16xf32> to vector<16x16xbf16>
    %29 = arith.truncf %12 : vector<16x32xf32> to vector<16x32xbf16>
    %cst_13 = arith.constant dense<0.000000e+00> : vector<16x32xf32>
    %30 = tpu.matmul %28, %29, %cst_13 {dimension_numbers = #tpu.dot_dimension_numbers<[1], [0], [0], [1], [0, 0, 1, 1], [], []>} : vector<16x16xbf16>, vector<16x32xbf16>, vector<16x32xf32> -> vector<16x32xf32>
    %c0_14 = arith.constant 0 : index
    %c0_15 = arith.constant 0 : index
    %31 = vector.load %arg5[%c0_14, %c0_15] : memref<32x32xbf16, #tpu.memory_space<vmem>>, vector<32x32xbf16>
    %c0_16 = arith.constant 0 : index
    %c0_17 = arith.constant 0 : index
    %32 = vector.load %arg6[%c0_16, %c0_17] : memref<1x32xf32, #tpu.memory_space<vmem>>, vector<1x32xf32>
    %33 = arith.truncf %30 : vector<16x32xf32> to vector<16x32xbf16>
    %cst_18 = arith.constant dense<0.000000e+00> : vector<16x32xf32>
    %34 = tpu.matmul %33, %31, %cst_18 {dimension_numbers = #tpu.dot_dimension_numbers<[1], [0], [0], [1], [0, 0, 1, 1], [], []>} : vector<16x32xbf16>, vector<32x32xbf16>, vector<16x32xf32> -> vector<16x32xf32>
    %35 = vector.broadcast %32 : vector<1x32xf32> to vector<16x32xf32>
    %36 = arith.addf %34, %35 : vector<16x32xf32>
    %cst_19 = arith.constant 0.000000e+00 : f32
    %37 = vector.broadcast %cst_19 : f32 to vector<16x32xf32>
    %38 = arith.maximumf %36, %37 : vector<16x32xf32>
    %c0_20 = arith.constant 0 : index
    %c0_21 = arith.constant 0 : index
    %39 = vector.load %arg9[%c0_20, %c0_21] : memref<1x32xf32, #tpu.memory_space<vmem>>, vector<1x32xf32>
    %c0_22 = arith.constant 0 : index
    %c0_23 = arith.constant 0 : index
    %40 = vector.load %arg10[%c0_22, %c0_23] : memref<1x32xf32, #tpu.memory_space<vmem>>, vector<1x32xf32>
    %cst_24 = arith.constant dense<0.000000e+00> : vector<16xf32>
    %41 = vector.multi_reduction <add>, %38, %cst_24 [1] : vector<16x32xf32> to vector<16xf32>
    %42 = vector.shape_cast %41 : vector<16xf32> to vector<16x1xf32>
    %cst_25 = arith.constant 3.200000e+01 : f32
    %43 = vector.broadcast %cst_25 : f32 to vector<16x1xf32>
    %44 = arith.divf %42, %43 : vector<16x1xf32>
    %45 = vector.broadcast %44 : vector<16x1xf32> to vector<16x32xf32>
    %46 = arith.subf %38, %45 : vector<16x32xf32>
    %47 = arith.mulf %46, %46 : vector<16x32xf32>
    %cst_26 = arith.constant dense<0.000000e+00> : vector<16xf32>
    %48 = vector.multi_reduction <add>, %47, %cst_26 [1] : vector<16x32xf32> to vector<16xf32>
    %49 = vector.shape_cast %48 : vector<16xf32> to vector<16x1xf32>
    %cst_27 = arith.constant 3.200000e+01 : f32
    %50 = vector.broadcast %cst_27 : f32 to vector<16x1xf32>
    %51 = arith.divf %49, %50 : vector<16x1xf32>
    %52 = vector.broadcast %44 : vector<16x1xf32> to vector<16x32xf32>
    %53 = arith.subf %38, %52 : vector<16x32xf32>
    %cst_28 = arith.constant 9.99999974E-6 : f32
    %54 = vector.broadcast %cst_28 : f32 to vector<16x1xf32>
    %55 = arith.addf %51, %54 : vector<16x1xf32>
    %56 = math.rsqrt %55 : vector<16x1xf32>
    %57 = vector.broadcast %56 : vector<16x1xf32> to vector<16x32xf32>
    %58 = arith.mulf %53, %57 : vector<16x32xf32>
    %59 = vector.broadcast %39 : vector<1x32xf32> to vector<16x32xf32>
    %60 = arith.mulf %58, %59 : vector<16x32xf32>
    %61 = vector.broadcast %40 : vector<1x32xf32> to vector<16x32xf32>
    %62 = arith.addf %60, %61 : vector<16x32xf32>
    %c0_29 = arith.constant 0 : index
    %c0_30 = arith.constant 0 : index
    %63 = vector.load %arg7[%c0_29, %c0_30] : memref<32x32xbf16, #tpu.memory_space<vmem>>, vector<32x32xbf16>
    %c0_31 = arith.constant 0 : index
    %c0_32 = arith.constant 0 : index
    %64 = vector.load %arg8[%c0_31, %c0_32] : memref<1x32xf32, #tpu.memory_space<vmem>>, vector<1x32xf32>
    %65 = arith.truncf %11 : vector<16x32xf32> to vector<16x32xbf16>
    %cst_33 = arith.constant dense<0.000000e+00> : vector<16x32xf32>
    %66 = tpu.matmul %65, %63, %cst_33 {dimension_numbers = #tpu.dot_dimension_numbers<[1], [0], [0], [1], [0, 0, 1, 1], [], []>} : vector<16x32xbf16>, vector<32x32xbf16>, vector<16x32xf32> -> vector<16x32xf32>
    %67 = vector.broadcast %64 : vector<1x32xf32> to vector<16x32xf32>
    %68 = arith.addf %66, %67 : vector<16x32xf32>
    %cst_34 = arith.constant 0.000000e+00 : f32
    %69 = vector.broadcast %cst_34 : f32 to vector<16x32xf32>
    %70 = arith.maximumf %68, %69 : vector<16x32xf32>
    %c0_35 = arith.constant 0 : index
    %c0_36 = arith.constant 0 : index
    %71 = vector.load %arg9[%c0_35, %c0_36] : memref<1x32xf32, #tpu.memory_space<vmem>>, vector<1x32xf32>
    %c0_37 = arith.constant 0 : index
    %c0_38 = arith.constant 0 : index
    %72 = vector.load %arg10[%c0_37, %c0_38] : memref<1x32xf32, #tpu.memory_space<vmem>>, vector<1x32xf32>
    %cst_39 = arith.constant dense<0.000000e+00> : vector<16xf32>
    %73 = vector.multi_reduction <add>, %70, %cst_39 [1] : vector<16x32xf32> to vector<16xf32>
    %74 = vector.shape_cast %73 : vector<16xf32> to vector<16x1xf32>
    %cst_40 = arith.constant 3.200000e+01 : f32
    %75 = vector.broadcast %cst_40 : f32 to vector<16x1xf32>
    %76 = arith.divf %74, %75 : vector<16x1xf32>
    %77 = vector.broadcast %76 : vector<16x1xf32> to vector<16x32xf32>
    %78 = arith.subf %70, %77 : vector<16x32xf32>
    %79 = arith.mulf %78, %78 : vector<16x32xf32>
    %cst_41 = arith.constant dense<0.000000e+00> : vector<16xf32>
    %80 = vector.multi_reduction <add>, %79, %cst_41 [1] : vector<16x32xf32> to vector<16xf32>
    %81 = vector.shape_cast %80 : vector<16xf32> to vector<16x1xf32>
    %cst_42 = arith.constant 3.200000e+01 : f32
    %82 = vector.broadcast %cst_42 : f32 to vector<16x1xf32>
    %83 = arith.divf %81, %82 : vector<16x1xf32>
    %84 = vector.broadcast %76 : vector<16x1xf32> to vector<16x32xf32>
    %85 = arith.subf %70, %84 : vector<16x32xf32>
    %cst_43 = arith.constant 9.99999974E-6 : f32
    %86 = vector.broadcast %cst_43 : f32 to vector<16x1xf32>
    %87 = arith.addf %83, %86 : vector<16x1xf32>
    %88 = math.rsqrt %87 : vector<16x1xf32>
    %89 = vector.broadcast %88 : vector<16x1xf32> to vector<16x32xf32>
    %90 = arith.mulf %85, %89 : vector<16x32xf32>
    %91 = vector.broadcast %71 : vector<1x32xf32> to vector<16x32xf32>
    %92 = arith.mulf %90, %91 : vector<16x32xf32>
    %93 = vector.broadcast %72 : vector<1x32xf32> to vector<16x32xf32>
    %94 = arith.addf %92, %93 : vector<16x32xf32>
    %c0_44 = arith.constant 0 : index
    %c0_45 = arith.constant 0 : index
    %95 = vector.load %arg11[%c0_44, %c0_45] : memref<32x32xbf16, #tpu.memory_space<vmem>>, vector<32x32xbf16>
    %cst_46 = arith.constant 0.000000e+00 : f32
    %96 = vector.broadcast %cst_46 : f32 to vector<16x32xf32>
    %97 = vector.extract_strided_slice %62 {offsets = [0, 0], sizes = [16, 8], strides = [1, 1]} : vector<16x32xf32> to vector<16x8xf32>
    %cst_47 = arith.constant 0.353553385 : f32
    %98 = vector.broadcast %cst_47 : f32 to vector<16x8xf32>
    %99 = arith.mulf %97, %98 : vector<16x8xf32>
    %100 = arith.truncf %99 : vector<16x8xf32> to vector<16x8xbf16>
    %101 = vector.extract_strided_slice %94 {offsets = [0, 0], sizes = [16, 8], strides = [1, 1]} : vector<16x32xf32> to vector<16x8xf32>
    %102 = arith.truncf %101 : vector<16x8xf32> to vector<16x8xbf16>
    %103 = vector.extract_strided_slice %12 {offsets = [0, 0], sizes = [16, 8], strides = [1, 1]} : vector<16x32xf32> to vector<16x8xf32>
    %104 = arith.truncf %103 : vector<16x8xf32> to vector<16x8xbf16>
    %cst_48 = arith.constant dense<0.000000e+00> : vector<16x16xf32>
    %105 = tpu.matmul %100, %102, %cst_48 {dimension_numbers = #tpu.dot_dimension_numbers<[1], [1], [0], [0], [0, 0, 1, 0], [], []>} : vector<16x8xbf16>, vector<16x8xbf16>, vector<16x16xf32> -> vector<16x16xf32>
    %106 = vector.broadcast %3 : vector<1x16xf32> to vector<16x16xf32>
    %107 = arith.addf %105, %106 : vector<16x16xf32>
    %cst_49 = arith.constant dense<0xFF800000> : vector<16xf32>
    %108 = vector.multi_reduction <maximumf>, %107, %cst_49 [1] : vector<16x16xf32> to vector<16xf32>
    %109 = vector.shape_cast %108 : vector<16xf32> to vector<16x1xf32>
    %110 = vector.broadcast %109 : vector<16x1xf32> to vector<16x16xf32>
    %111 = arith.subf %107, %110 : vector<16x16xf32>
    %112 = math.exp %111 : vector<16x16xf32>
    %cst_50 = arith.constant dense<0.000000e+00> : vector<16xf32>
    %113 = vector.multi_reduction <add>, %112, %cst_50 [1] : vector<16x16xf32> to vector<16xf32>
    %114 = vector.shape_cast %113 : vector<16xf32> to vector<16x1xf32>
    %115 = tpu.reciprocal %114 {approx = true} : vector<16x1xf32> -> vector<16x1xf32>
    %116 = vector.broadcast %115 : vector<16x1xf32> to vector<16x16xf32>
    %117 = arith.mulf %112, %116 : vector<16x16xf32>
    %118 = arith.truncf %117 : vector<16x16xf32> to vector<16x16xbf16>
    %cst_51 = arith.constant dense<0.000000e+00> : vector<16x8xf32>
    %119 = tpu.matmul %118, %104, %cst_51 {dimension_numbers = #tpu.dot_dimension_numbers<[1], [0], [0], [1], [0, 0, 1, 1], [], []>} : vector<16x16xbf16>, vector<16x8xbf16>, vector<16x8xf32> -> vector<16x8xf32>
    %120 = arith.truncf %119 : vector<16x8xf32> to vector<16x8xbf16>
    %121 = vector.extract_strided_slice %95 {offsets = [0, 0], sizes = [8, 32], strides = [1, 1]} : vector<32x32xbf16> to vector<8x32xbf16>
    %cst_52 = arith.constant dense<0.000000e+00> : vector<16x32xf32>
    %122 = tpu.matmul %120, %121, %cst_52 {dimension_numbers = #tpu.dot_dimension_numbers<[1], [0], [0], [1], [0, 0, 1, 1], [], []>} : vector<16x8xbf16>, vector<8x32xbf16>, vector<16x32xf32> -> vector<16x32xf32>
    %123 = arith.addf %96, %122 : vector<16x32xf32>
    %124 = vector.extract_strided_slice %62 {offsets = [0, 8], sizes = [16, 8], strides = [1, 1]} : vector<16x32xf32> to vector<16x8xf32>
    %cst_53 = arith.constant 0.353553385 : f32
    %125 = vector.broadcast %cst_53 : f32 to vector<16x8xf32>
    %126 = arith.mulf %124, %125 : vector<16x8xf32>
    %127 = arith.truncf %126 : vector<16x8xf32> to vector<16x8xbf16>
    %128 = vector.extract_strided_slice %94 {offsets = [0, 8], sizes = [16, 8], strides = [1, 1]} : vector<16x32xf32> to vector<16x8xf32>
    %129 = arith.truncf %128 : vector<16x8xf32> to vector<16x8xbf16>
    %130 = vector.extract_strided_slice %12 {offsets = [0, 8], sizes = [16, 8], strides = [1, 1]} : vector<16x32xf32> to vector<16x8xf32>
    %131 = arith.truncf %130 : vector<16x8xf32> to vector<16x8xbf16>
    %cst_54 = arith.constant dense<0.000000e+00> : vector<16x16xf32>
    %132 = tpu.matmul %127, %129, %cst_54 {dimension_numbers = #tpu.dot_dimension_numbers<[1], [1], [0], [0], [0, 0, 1, 0], [], []>} : vector<16x8xbf16>, vector<16x8xbf16>, vector<16x16xf32> -> vector<16x16xf32>
    %133 = vector.broadcast %3 : vector<1x16xf32> to vector<16x16xf32>
    %134 = arith.addf %132, %133 : vector<16x16xf32>
    %cst_55 = arith.constant dense<0xFF800000> : vector<16xf32>
    %135 = vector.multi_reduction <maximumf>, %134, %cst_55 [1] : vector<16x16xf32> to vector<16xf32>
    %136 = vector.shape_cast %135 : vector<16xf32> to vector<16x1xf32>
    %137 = vector.broadcast %136 : vector<16x1xf32> to vector<16x16xf32>
    %138 = arith.subf %134, %137 : vector<16x16xf32>
    %139 = math.exp %138 : vector<16x16xf32>
    %cst_56 = arith.constant dense<0.000000e+00> : vector<16xf32>
    %140 = vector.multi_reduction <add>, %139, %cst_56 [1] : vector<16x16xf32> to vector<16xf32>
    %141 = vector.shape_cast %140 : vector<16xf32> to vector<16x1xf32>
    %142 = tpu.reciprocal %141 {approx = true} : vector<16x1xf32> -> vector<16x1xf32>
    %143 = vector.broadcast %142 : vector<16x1xf32> to vector<16x16xf32>
    %144 = arith.mulf %139, %143 : vector<16x16xf32>
    %145 = arith.truncf %144 : vector<16x16xf32> to vector<16x16xbf16>
    %cst_57 = arith.constant dense<0.000000e+00> : vector<16x8xf32>
    %146 = tpu.matmul %145, %131, %cst_57 {dimension_numbers = #tpu.dot_dimension_numbers<[1], [0], [0], [1], [0, 0, 1, 1], [], []>} : vector<16x16xbf16>, vector<16x8xbf16>, vector<16x8xf32> -> vector<16x8xf32>
    %147 = arith.truncf %146 : vector<16x8xf32> to vector<16x8xbf16>
    %148 = vector.extract_strided_slice %95 {offsets = [8, 0], sizes = [8, 32], strides = [1, 1]} : vector<32x32xbf16> to vector<8x32xbf16>
    %cst_58 = arith.constant dense<0.000000e+00> : vector<16x32xf32>
    %149 = tpu.matmul %147, %148, %cst_58 {dimension_numbers = #tpu.dot_dimension_numbers<[1], [0], [0], [1], [0, 0, 1, 1], [], []>} : vector<16x8xbf16>, vector<8x32xbf16>, vector<16x32xf32> -> vector<16x32xf32>
    %150 = arith.addf %123, %149 : vector<16x32xf32>
    %151 = vector.extract_strided_slice %62 {offsets = [0, 16], sizes = [16, 8], strides = [1, 1]} : vector<16x32xf32> to vector<16x8xf32>
    %cst_59 = arith.constant 0.353553385 : f32
    %152 = vector.broadcast %cst_59 : f32 to vector<16x8xf32>
    %153 = arith.mulf %151, %152 : vector<16x8xf32>
    %154 = arith.truncf %153 : vector<16x8xf32> to vector<16x8xbf16>
    %155 = vector.extract_strided_slice %94 {offsets = [0, 16], sizes = [16, 8], strides = [1, 1]} : vector<16x32xf32> to vector<16x8xf32>
    %156 = arith.truncf %155 : vector<16x8xf32> to vector<16x8xbf16>
    %157 = vector.extract_strided_slice %12 {offsets = [0, 16], sizes = [16, 8], strides = [1, 1]} : vector<16x32xf32> to vector<16x8xf32>
    %158 = arith.truncf %157 : vector<16x8xf32> to vector<16x8xbf16>
    %cst_60 = arith.constant dense<0.000000e+00> : vector<16x16xf32>
    %159 = tpu.matmul %154, %156, %cst_60 {dimension_numbers = #tpu.dot_dimension_numbers<[1], [1], [0], [0], [0, 0, 1, 0], [], []>} : vector<16x8xbf16>, vector<16x8xbf16>, vector<16x16xf32> -> vector<16x16xf32>
    %160 = vector.broadcast %3 : vector<1x16xf32> to vector<16x16xf32>
    %161 = arith.addf %159, %160 : vector<16x16xf32>
    %cst_61 = arith.constant dense<0xFF800000> : vector<16xf32>
    %162 = vector.multi_reduction <maximumf>, %161, %cst_61 [1] : vector<16x16xf32> to vector<16xf32>
    %163 = vector.shape_cast %162 : vector<16xf32> to vector<16x1xf32>
    %164 = vector.broadcast %163 : vector<16x1xf32> to vector<16x16xf32>
    %165 = arith.subf %161, %164 : vector<16x16xf32>
    %166 = math.exp %165 : vector<16x16xf32>
    %cst_62 = arith.constant dense<0.000000e+00> : vector<16xf32>
    %167 = vector.multi_reduction <add>, %166, %cst_62 [1] : vector<16x16xf32> to vector<16xf32>
    %168 = vector.shape_cast %167 : vector<16xf32> to vector<16x1xf32>
    %169 = tpu.reciprocal %168 {approx = true} : vector<16x1xf32> -> vector<16x1xf32>
    %170 = vector.broadcast %169 : vector<16x1xf32> to vector<16x16xf32>
    %171 = arith.mulf %166, %170 : vector<16x16xf32>
    %172 = arith.truncf %171 : vector<16x16xf32> to vector<16x16xbf16>
    %cst_63 = arith.constant dense<0.000000e+00> : vector<16x8xf32>
    %173 = tpu.matmul %172, %158, %cst_63 {dimension_numbers = #tpu.dot_dimension_numbers<[1], [0], [0], [1], [0, 0, 1, 1], [], []>} : vector<16x16xbf16>, vector<16x8xbf16>, vector<16x8xf32> -> vector<16x8xf32>
    %174 = arith.truncf %173 : vector<16x8xf32> to vector<16x8xbf16>
    %175 = vector.extract_strided_slice %95 {offsets = [16, 0], sizes = [8, 32], strides = [1, 1]} : vector<32x32xbf16> to vector<8x32xbf16>
    %cst_64 = arith.constant dense<0.000000e+00> : vector<16x32xf32>
    %176 = tpu.matmul %174, %175, %cst_64 {dimension_numbers = #tpu.dot_dimension_numbers<[1], [0], [0], [1], [0, 0, 1, 1], [], []>} : vector<16x8xbf16>, vector<8x32xbf16>, vector<16x32xf32> -> vector<16x32xf32>
    %177 = arith.addf %150, %176 : vector<16x32xf32>
    %178 = vector.extract_strided_slice %62 {offsets = [0, 24], sizes = [16, 8], strides = [1, 1]} : vector<16x32xf32> to vector<16x8xf32>
    %cst_65 = arith.constant 0.353553385 : f32
    %179 = vector.broadcast %cst_65 : f32 to vector<16x8xf32>
    %180 = arith.mulf %178, %179 : vector<16x8xf32>
    %181 = arith.truncf %180 : vector<16x8xf32> to vector<16x8xbf16>
    %182 = vector.extract_strided_slice %94 {offsets = [0, 24], sizes = [16, 8], strides = [1, 1]} : vector<16x32xf32> to vector<16x8xf32>
    %183 = arith.truncf %182 : vector<16x8xf32> to vector<16x8xbf16>
    %184 = vector.extract_strided_slice %12 {offsets = [0, 24], sizes = [16, 8], strides = [1, 1]} : vector<16x32xf32> to vector<16x8xf32>
    %185 = arith.truncf %184 : vector<16x8xf32> to vector<16x8xbf16>
    %cst_66 = arith.constant dense<0.000000e+00> : vector<16x16xf32>
    %186 = tpu.matmul %181, %183, %cst_66 {dimension_numbers = #tpu.dot_dimension_numbers<[1], [1], [0], [0], [0, 0, 1, 0], [], []>} : vector<16x8xbf16>, vector<16x8xbf16>, vector<16x16xf32> -> vector<16x16xf32>
    %187 = vector.broadcast %3 : vector<1x16xf32> to vector<16x16xf32>
    %188 = arith.addf %186, %187 : vector<16x16xf32>
    %cst_67 = arith.constant dense<0xFF800000> : vector<16xf32>
    %189 = vector.multi_reduction <maximumf>, %188, %cst_67 [1] : vector<16x16xf32> to vector<16xf32>
    %190 = vector.shape_cast %189 : vector<16xf32> to vector<16x1xf32>
    %191 = vector.broadcast %190 : vector<16x1xf32> to vector<16x16xf32>
    %192 = arith.subf %188, %191 : vector<16x16xf32>
    %193 = math.exp %192 : vector<16x16xf32>
    %cst_68 = arith.constant dense<0.000000e+00> : vector<16xf32>
    %194 = vector.multi_reduction <add>, %193, %cst_68 [1] : vector<16x16xf32> to vector<16xf32>
    %195 = vector.shape_cast %194 : vector<16xf32> to vector<16x1xf32>
    %196 = tpu.reciprocal %195 {approx = true} : vector<16x1xf32> -> vector<16x1xf32>
    %197 = vector.broadcast %196 : vector<16x1xf32> to vector<16x16xf32>
    %198 = arith.mulf %193, %197 : vector<16x16xf32>
    %199 = arith.truncf %198 : vector<16x16xf32> to vector<16x16xbf16>
    %cst_69 = arith.constant dense<0.000000e+00> : vector<16x8xf32>
    %200 = tpu.matmul %199, %185, %cst_69 {dimension_numbers = #tpu.dot_dimension_numbers<[1], [0], [0], [1], [0, 0, 1, 1], [], []>} : vector<16x16xbf16>, vector<16x8xbf16>, vector<16x8xf32> -> vector<16x8xf32>
    %201 = arith.truncf %200 : vector<16x8xf32> to vector<16x8xbf16>
    %202 = vector.extract_strided_slice %95 {offsets = [24, 0], sizes = [8, 32], strides = [1, 1]} : vector<32x32xbf16> to vector<8x32xbf16>
    %cst_70 = arith.constant dense<0.000000e+00> : vector<16x32xf32>
    %203 = tpu.matmul %201, %202, %cst_70 {dimension_numbers = #tpu.dot_dimension_numbers<[1], [0], [0], [1], [0, 0, 1, 1], [], []>} : vector<16x8xbf16>, vector<8x32xbf16>, vector<16x32xf32> -> vector<16x32xf32>
    %204 = arith.addf %177, %203 : vector<16x32xf32>
    %c0_71 = arith.constant 0 : index
    %c0_72 = arith.constant 0 : index
    %205 = vector.load %arg12[%c0_71, %c0_72] : memref<1x32xf32, #tpu.memory_space<vmem>>, vector<1x32xf32>
    %206 = vector.broadcast %205 : vector<1x32xf32> to vector<16x32xf32>
    %207 = arith.addf %204, %206 : vector<16x32xf32>
    %208 = arith.addf %207, %1 : vector<16x32xf32>
    %c0_73 = arith.constant 0 : index
    %c0_74 = arith.constant 0 : index
    %209 = vector.load %arg13[%c0_73, %c0_74] : memref<1x32xf32, #tpu.memory_space<vmem>>, vector<1x32xf32>
    %c0_75 = arith.constant 0 : index
    %c0_76 = arith.constant 0 : index
    %210 = vector.load %arg14[%c0_75, %c0_76] : memref<1x32xf32, #tpu.memory_space<vmem>>, vector<1x32xf32>
    %cst_77 = arith.constant dense<0.000000e+00> : vector<16xf32>
    %211 = vector.multi_reduction <add>, %208, %cst_77 [1] : vector<16x32xf32> to vector<16xf32>
    %212 = vector.shape_cast %211 : vector<16xf32> to vector<16x1xf32>
    %cst_78 = arith.constant 3.200000e+01 : f32
    %213 = vector.broadcast %cst_78 : f32 to vector<16x1xf32>
    %214 = arith.divf %212, %213 : vector<16x1xf32>
    %215 = vector.broadcast %214 : vector<16x1xf32> to vector<16x32xf32>
    %216 = arith.subf %208, %215 : vector<16x32xf32>
    %217 = arith.mulf %216, %216 : vector<16x32xf32>
    %cst_79 = arith.constant dense<0.000000e+00> : vector<16xf32>
    %218 = vector.multi_reduction <add>, %217, %cst_79 [1] : vector<16x32xf32> to vector<16xf32>
    %219 = vector.shape_cast %218 : vector<16xf32> to vector<16x1xf32>
    %cst_80 = arith.constant 3.200000e+01 : f32
    %220 = vector.broadcast %cst_80 : f32 to vector<16x1xf32>
    %221 = arith.divf %219, %220 : vector<16x1xf32>
    %222 = vector.broadcast %214 : vector<16x1xf32> to vector<16x32xf32>
    %223 = arith.subf %208, %222 : vector<16x32xf32>
    %cst_81 = arith.constant 9.99999997E-7 : f32
    %224 = vector.broadcast %cst_81 : f32 to vector<16x1xf32>
    %225 = arith.addf %221, %224 : vector<16x1xf32>
    %226 = math.rsqrt %225 : vector<16x1xf32>
    %227 = vector.broadcast %226 : vector<16x1xf32> to vector<16x32xf32>
    %228 = arith.mulf %223, %227 : vector<16x32xf32>
    %229 = vector.broadcast %209 : vector<1x32xf32> to vector<16x32xf32>
    %230 = arith.mulf %228, %229 : vector<16x32xf32>
    %231 = vector.broadcast %210 : vector<1x32xf32> to vector<16x32xf32>
    %232 = arith.addf %230, %231 : vector<16x32xf32>
    %c0_82 = arith.constant 0 : index
    %c0_83 = arith.constant 0 : index
    %c0_84 = arith.constant 0 : index
    %233 = vector.load %arg15[%c0_82, %c0_83, %c0_84] : memref<1x16x32xf32, #tpu.memory_space<vmem>>, vector<1x16x32xf32>
    %234 = vector.shape_cast %233 : vector<1x16x32xf32> to vector<16x32xf32>
    %235 = vector.shape_cast %232 : vector<16x32xf32> to vector<1x16x32xf32>
    tpu.vector_store %arg15[%c0_82, %c0_83, %c0_84], %235 {strides = array<i32>} : memref<1x16x32xf32, #tpu.memory_space<vmem>>, vector<1x16x32xf32>,
    return
  }
  func.func @transform_0(%arg0: i32) -> (i32, i32, i32) {
    %c0_i32 = arith.constant 0 : i32
    %c0_i32_0 = arith.constant 0 : i32
    %c0_i32_1 = arith.constant 0 : i32
    return %arg0, %c0_i32, %c0_i32_0 : i32, i32, i32
  }
  func.func @transform_1(%arg0: i32) -> (i32, i32, i32) {
    %c0_i32 = arith.constant 0 : i32
    %c0_i32_0 = arith.constant 0 : i32
    %c0_i32_1 = arith.constant 0 : i32
    return %arg0, %c0_i32, %c0_i32_0 : i32, i32, i32
  }
  func.func @transform_2(%arg0: i32) -> (i32, i32) {
    %c0_i32 = arith.constant 0 : i32
    %c0_i32_0 = arith.constant 0 : i32
    %c0_i32_1 = arith.constant 0 : i32
    return %c0_i32, %c0_i32_0 : i32, i32
  }
  func.func @transform_3(%arg0: i32) -> (i32, i32) {
    %c0_i32 = arith.constant 0 : i32
    %c0_i32_0 = arith.constant 0 : i32
    %c0_i32_1 = arith.constant 0 : i32
    return %c0_i32, %c0_i32_0 : i32, i32
  }
  func.func @transform_4(%arg0: i32) -> (i32, i32) {
    %c0_i32 = arith.constant 0 : i32
    %c0_i32_0 = arith.constant 0 : i32
    %c0_i32_1 = arith.constant 0 : i32
    return %c0_i32, %c0_i32_0 : i32, i32
  }
  func.func @transform_5(%arg0: i32) -> (i32, i32) {
    %c0_i32 = arith.constant 0 : i32
    %c0_i32_0 = arith.constant 0 : i32
    %c0_i32_1 = arith.constant 0 : i32
    return %c0_i32, %c0_i32_0 : i32, i32
  }
  func.func @transform_6(%arg0: i32) -> (i32, i32) {
    %c0_i32 = arith.constant 0 : i32
    %c0_i32_0 = arith.constant 0 : i32
    %c0_i32_1 = arith.constant 0 : i32
    return %c0_i32, %c0_i32_0 : i32, i32
  }
  func.func @transform_7(%arg0: i32) -> (i32, i32) {
    %c0_i32 = arith.constant 0 : i32
    %c0_i32_0 = arith.constant 0 : i32
    %c0_i32_1 = arith.constant 0 : i32
    return %c0_i32, %c0_i32_0 : i32, i32
  }
  func.func @transform_8(%arg0: i32) -> (i32, i32) {
    %c0_i32 = arith.constant 0 : i32
    %c0_i32_0 = arith.constant 0 : i32
    %c0_i32_1 = arith.constant 0 : i32
    return %c0_i32, %c0_i32_0 : i32, i32
  }
  func.func @transform_9(%arg0: i32) -> (i32, i32) {
    %c0_i32 = arith.constant 0 : i32
    %c0_i32_0 = arith.constant 0 : i32
    %c0_i32_1 = arith.constant 0 : i32
    return %c0_i32, %c0_i32_0 : i32, i32
  }
  func.func @transform_10(%arg0: i32) -> (i32, i32) {
    %c0_i32 = arith.constant 0 : i32
    %c0_i32_0 = arith.constant 0 : i32
    %c0_i32_1 = arith.constant 0 : i32
    return %c0_i32, %c0_i32_0 : i32, i32
  }
  func.func @transform_11(%arg0: i32) -> (i32, i32) {
    %c0_i32 = arith.constant 0 : i32
    %c0_i32_0 = arith.constant 0 : i32
    %c0_i32_1 = arith.constant 0 : i32
    return %c0_i32, %c0_i32_0 : i32, i32
  }
  func.func @transform_12(%arg0: i32) -> (i32, i32) {
    %c0_i32 = arith.constant 0 : i32
    %c0_i32_0 = arith.constant 0 : i32
    %c0_i32_1 = arith.constant 0 : i32
    return %c0_i32, %c0_i32_0 : i32, i32
  }
  func.func @transform_13(%arg0: i32) -> (i32, i32) {
    %c0_i32 = arith.constant 0 : i32
    %c0_i32_0 = arith.constant 0 : i32
    %c0_i32_1 = arith.constant 0 : i32
    return %c0_i32, %c0_i32_0 : i32, i32
  }
  func.func @transform_14(%arg0: i32) -> (i32, i32, i32) {
    %c0_i32 = arith.constant 0 : i32
    %c0_i32_0 = arith.constant 0 : i32
    %c0_i32_1 = arith.constant 0 : i32
    return %arg0, %c0_i32, %c0_i32_0 : i32, i32, i32
  }
}

module attributes {stable_mosaic.version = 11 : i64} {
  func.func @_self_guided_kernel(%arg0: i32, %arg1: memref<1x8x32xf32, #tpu.memory_space<vmem>>, %arg2: memref<1x1x8xf32, #tpu.memory_space<vmem>>, %arg3: memref<32x96xbf16, #tpu.memory_space<vmem>>, %arg4: memref<1x96xf32, #tpu.memory_space<vmem>>, %arg5: memref<32x32xbf16, #tpu.memory_space<vmem>>, %arg6: memref<1x32xf32, #tpu.memory_space<vmem>>, %arg7: memref<32x32xbf16, #tpu.memory_space<vmem>>, %arg8: memref<1x32xf32, #tpu.memory_space<vmem>>, %arg9: memref<1x32xf32, #tpu.memory_space<vmem>>, %arg10: memref<1x32xf32, #tpu.memory_space<vmem>>, %arg11: memref<32x32xbf16, #tpu.memory_space<vmem>>, %arg12: memref<1x32xf32, #tpu.memory_space<vmem>>, %arg13: memref<1x32xf32, #tpu.memory_space<vmem>>, %arg14: memref<1x32xf32, #tpu.memory_space<vmem>>, %arg15: memref<1x8x32xf32, #tpu.memory_space<vmem>>) attributes {dimension_semantics = [#tpu.dimension_semantics<parallel>], iteration_bounds = array<i64: 2>, scalar_prefetch = 0 : i64, scratch_operands = 0 : i64, tpu.core_type = #tpu.core_type<tc>, window_params = [{transform_indices = @transform_0, window_bounds = array<i64: 1, 8, 32>}, {transform_indices = @transform_1, window_bounds = array<i64: 1, 1, 8>}, {pipeline_mode = #tpu.pipeline_mode<synchronous>, transform_indices = @transform_2, window_bounds = array<i64: 32, 96>}, {pipeline_mode = #tpu.pipeline_mode<synchronous>, transform_indices = @transform_3, window_bounds = array<i64: 1, 96>}, {pipeline_mode = #tpu.pipeline_mode<synchronous>, transform_indices = @transform_4, window_bounds = array<i64: 32, 32>}, {pipeline_mode = #tpu.pipeline_mode<synchronous>, transform_indices = @transform_5, window_bounds = array<i64: 1, 32>}, {pipeline_mode = #tpu.pipeline_mode<synchronous>, transform_indices = @transform_6, window_bounds = array<i64: 32, 32>}, {pipeline_mode = #tpu.pipeline_mode<synchronous>, transform_indices = @transform_7, window_bounds = array<i64: 1, 32>}, {pipeline_mode = #tpu.pipeline_mode<synchronous>, transform_indices = @transform_8, window_bounds = array<i64: 1, 32>}, {pipeline_mode = #tpu.pipeline_mode<synchronous>, transform_indices = @transform_9, window_bounds = array<i64: 1, 32>}, {pipeline_mode = #tpu.pipeline_mode<synchronous>, transform_indices = @transform_10, window_bounds = array<i64: 32, 32>}, {pipeline_mode = #tpu.pipeline_mode<synchronous>, transform_indices = @transform_11, window_bounds = array<i64: 1, 32>}, {pipeline_mode = #tpu.pipeline_mode<synchronous>, transform_indices = @transform_12, window_bounds = array<i64: 1, 32>}, {pipeline_mode = #tpu.pipeline_mode<synchronous>, transform_indices = @transform_13, window_bounds = array<i64: 1, 32>}, {transform_indices = @transform_14, window_bounds = array<i64: 1, 8, 32>}]} {
    %c0 = arith.constant 0 : index
    %c0_0 = arith.constant 0 : index
    %c0_1 = arith.constant 0 : index
    %0 = vector.load %arg1[%c0, %c0_0, %c0_1] : memref<1x8x32xf32, #tpu.memory_space<vmem>>, vector<1x8x32xf32>
    %1 = vector.shape_cast %0 : vector<1x8x32xf32> to vector<8x32xf32>
    %c0_2 = arith.constant 0 : index
    %c0_3 = arith.constant 0 : index
    %c0_4 = arith.constant 0 : index
    %2 = vector.load %arg2[%c0_2, %c0_3, %c0_4] : memref<1x1x8xf32, #tpu.memory_space<vmem>>, vector<1x1x8xf32>
    %3 = vector.shape_cast %2 : vector<1x1x8xf32> to vector<1x8xf32>
    %c0_5 = arith.constant 0 : index
    %c0_6 = arith.constant 0 : index
    %4 = vector.load %arg3[%c0_5, %c0_6] : memref<32x96xbf16, #tpu.memory_space<vmem>>, vector<32x96xbf16>
    %c0_7 = arith.constant 0 : index
    %c0_8 = arith.constant 0 : index
    %5 = vector.load %arg4[%c0_7, %c0_8] : memref<1x96xf32, #tpu.memory_space<vmem>>, vector<1x96xf32>
    %6 = arith.truncf %1 : vector<8x32xf32> to vector<8x32xbf16>
    %cst = arith.constant dense<0.000000e+00> : vector<8x96xf32>
    %7 = tpu.matmul %6, %4, %cst {dimension_numbers = #tpu.dot_dimension_numbers<[1], [0], [0], [1], [0, 0, 1, 1], [], []>} : vector<8x32xbf16>, vector<32x96xbf16>, vector<8x96xf32> -> vector<8x96xf32>
    %8 = vector.broadcast %5 : vector<1x96xf32> to vector<8x96xf32>
    %9 = arith.addf %7, %8 : vector<8x96xf32>
    %10 = vector.extract_strided_slice %9 {offsets = [0, 0], sizes = [8, 32], strides = [1, 1]} : vector<8x96xf32> to vector<8x32xf32>
    %11 = vector.extract_strided_slice %9 {offsets = [0, 32], sizes = [8, 32], strides = [1, 1]} : vector<8x96xf32> to vector<8x32xf32>
    %12 = vector.extract_strided_slice %9 {offsets = [0, 64], sizes = [8, 32], strides = [1, 1]} : vector<8x96xf32> to vector<8x32xf32>
    %cst_9 = arith.constant 0.176776692 : f32
    %13 = vector.broadcast %cst_9 : f32 to vector<8x32xf32>
    %14 = arith.mulf %10, %13 : vector<8x32xf32>
    %15 = arith.truncf %14 : vector<8x32xf32> to vector<8x32xbf16>
    %16 = arith.truncf %11 : vector<8x32xf32> to vector<8x32xbf16>
    %cst_10 = arith.constant dense<0.000000e+00> : vector<8x8xf32>
    %17 = tpu.matmul %15, %16, %cst_10 {dimension_numbers = #tpu.dot_dimension_numbers<[1], [1], [0], [0], [0, 0, 1, 0], [], []>} : vector<8x32xbf16>, vector<8x32xbf16>, vector<8x8xf32> -> vector<8x8xf32>
    %cst_11 = arith.constant dense<0xFF800000> : vector<8xf32>
    %18 = vector.multi_reduction <maximumf>, %17, %cst_11 [1] : vector<8x8xf32> to vector<8xf32>
    %19 = vector.shape_cast %18 : vector<8xf32> to vector<8x1xf32>
    %20 = vector.broadcast %19 : vector<8x1xf32> to vector<8x8xf32>
    %21 = arith.subf %17, %20 : vector<8x8xf32>
    %22 = math.exp %21 : vector<8x8xf32>
    %cst_12 = arith.constant dense<0.000000e+00> : vector<8xf32>
    %23 = vector.multi_reduction <add>, %22, %cst_12 [1] : vector<8x8xf32> to vector<8xf32>
    %24 = vector.shape_cast %23 : vector<8xf32> to vector<8x1xf32>
    %25 = tpu.reciprocal %24 {approx = true} : vector<8x1xf32> -> vector<8x1xf32>
    %26 = vector.broadcast %25 : vector<8x1xf32> to vector<8x8xf32>
    %27 = arith.mulf %22, %26 : vector<8x8xf32>
    %28 = arith.truncf %27 : vector<8x8xf32> to vector<8x8xbf16>
    %29 = arith.truncf %12 : vector<8x32xf32> to vector<8x32xbf16>
    %cst_13 = arith.constant dense<0.000000e+00> : vector<8x32xf32>
    %30 = tpu.matmul %28, %29, %cst_13 {dimension_numbers = #tpu.dot_dimension_numbers<[1], [0], [0], [1], [0, 0, 1, 1], [], []>} : vector<8x8xbf16>, vector<8x32xbf16>, vector<8x32xf32> -> vector<8x32xf32>
    %c0_14 = arith.constant 0 : index
    %c0_15 = arith.constant 0 : index
    %31 = vector.load %arg5[%c0_14, %c0_15] : memref<32x32xbf16, #tpu.memory_space<vmem>>, vector<32x32xbf16>
    %c0_16 = arith.constant 0 : index
    %c0_17 = arith.constant 0 : index
    %32 = vector.load %arg6[%c0_16, %c0_17] : memref<1x32xf32, #tpu.memory_space<vmem>>, vector<1x32xf32>
    %33 = arith.truncf %30 : vector<8x32xf32> to vector<8x32xbf16>
    %cst_18 = arith.constant dense<0.000000e+00> : vector<8x32xf32>
    %34 = tpu.matmul %33, %31, %cst_18 {dimension_numbers = #tpu.dot_dimension_numbers<[1], [0], [0], [1], [0, 0, 1, 1], [], []>} : vector<8x32xbf16>, vector<32x32xbf16>, vector<8x32xf32> -> vector<8x32xf32>
    %35 = vector.broadcast %32 : vector<1x32xf32> to vector<8x32xf32>
    %36 = arith.addf %34, %35 : vector<8x32xf32>
    %cst_19 = arith.constant 0.000000e+00 : f32
    %37 = vector.broadcast %cst_19 : f32 to vector<8x32xf32>
    %38 = arith.maximumf %36, %37 : vector<8x32xf32>
    %c0_20 = arith.constant 0 : index
    %c0_21 = arith.constant 0 : index
    %39 = vector.load %arg9[%c0_20, %c0_21] : memref<1x32xf32, #tpu.memory_space<vmem>>, vector<1x32xf32>
    %c0_22 = arith.constant 0 : index
    %c0_23 = arith.constant 0 : index
    %40 = vector.load %arg10[%c0_22, %c0_23] : memref<1x32xf32, #tpu.memory_space<vmem>>, vector<1x32xf32>
    %cst_24 = arith.constant dense<0.000000e+00> : vector<8xf32>
    %41 = vector.multi_reduction <add>, %38, %cst_24 [1] : vector<8x32xf32> to vector<8xf32>
    %42 = vector.shape_cast %41 : vector<8xf32> to vector<8x1xf32>
    %cst_25 = arith.constant 3.200000e+01 : f32
    %43 = vector.broadcast %cst_25 : f32 to vector<8x1xf32>
    %44 = arith.divf %42, %43 : vector<8x1xf32>
    %45 = vector.broadcast %44 : vector<8x1xf32> to vector<8x32xf32>
    %46 = arith.subf %38, %45 : vector<8x32xf32>
    %47 = arith.mulf %46, %46 : vector<8x32xf32>
    %cst_26 = arith.constant dense<0.000000e+00> : vector<8xf32>
    %48 = vector.multi_reduction <add>, %47, %cst_26 [1] : vector<8x32xf32> to vector<8xf32>
    %49 = vector.shape_cast %48 : vector<8xf32> to vector<8x1xf32>
    %cst_27 = arith.constant 3.200000e+01 : f32
    %50 = vector.broadcast %cst_27 : f32 to vector<8x1xf32>
    %51 = arith.divf %49, %50 : vector<8x1xf32>
    %52 = vector.broadcast %44 : vector<8x1xf32> to vector<8x32xf32>
    %53 = arith.subf %38, %52 : vector<8x32xf32>
    %cst_28 = arith.constant 9.99999974E-6 : f32
    %54 = vector.broadcast %cst_28 : f32 to vector<8x1xf32>
    %55 = arith.addf %51, %54 : vector<8x1xf32>
    %56 = math.rsqrt %55 : vector<8x1xf32>
    %57 = vector.broadcast %56 : vector<8x1xf32> to vector<8x32xf32>
    %58 = arith.mulf %53, %57 : vector<8x32xf32>
    %59 = vector.broadcast %39 : vector<1x32xf32> to vector<8x32xf32>
    %60 = arith.mulf %58, %59 : vector<8x32xf32>
    %61 = vector.broadcast %40 : vector<1x32xf32> to vector<8x32xf32>
    %62 = arith.addf %60, %61 : vector<8x32xf32>
    %c0_29 = arith.constant 0 : index
    %c0_30 = arith.constant 0 : index
    %63 = vector.load %arg7[%c0_29, %c0_30] : memref<32x32xbf16, #tpu.memory_space<vmem>>, vector<32x32xbf16>
    %c0_31 = arith.constant 0 : index
    %c0_32 = arith.constant 0 : index
    %64 = vector.load %arg8[%c0_31, %c0_32] : memref<1x32xf32, #tpu.memory_space<vmem>>, vector<1x32xf32>
    %65 = arith.truncf %11 : vector<8x32xf32> to vector<8x32xbf16>
    %cst_33 = arith.constant dense<0.000000e+00> : vector<8x32xf32>
    %66 = tpu.matmul %65, %63, %cst_33 {dimension_numbers = #tpu.dot_dimension_numbers<[1], [0], [0], [1], [0, 0, 1, 1], [], []>} : vector<8x32xbf16>, vector<32x32xbf16>, vector<8x32xf32> -> vector<8x32xf32>
    %67 = vector.broadcast %64 : vector<1x32xf32> to vector<8x32xf32>
    %68 = arith.addf %66, %67 : vector<8x32xf32>
    %cst_34 = arith.constant 0.000000e+00 : f32
    %69 = vector.broadcast %cst_34 : f32 to vector<8x32xf32>
    %70 = arith.maximumf %68, %69 : vector<8x32xf32>
    %c0_35 = arith.constant 0 : index
    %c0_36 = arith.constant 0 : index
    %71 = vector.load %arg9[%c0_35, %c0_36] : memref<1x32xf32, #tpu.memory_space<vmem>>, vector<1x32xf32>
    %c0_37 = arith.constant 0 : index
    %c0_38 = arith.constant 0 : index
    %72 = vector.load %arg10[%c0_37, %c0_38] : memref<1x32xf32, #tpu.memory_space<vmem>>, vector<1x32xf32>
    %cst_39 = arith.constant dense<0.000000e+00> : vector<8xf32>
    %73 = vector.multi_reduction <add>, %70, %cst_39 [1] : vector<8x32xf32> to vector<8xf32>
    %74 = vector.shape_cast %73 : vector<8xf32> to vector<8x1xf32>
    %cst_40 = arith.constant 3.200000e+01 : f32
    %75 = vector.broadcast %cst_40 : f32 to vector<8x1xf32>
    %76 = arith.divf %74, %75 : vector<8x1xf32>
    %77 = vector.broadcast %76 : vector<8x1xf32> to vector<8x32xf32>
    %78 = arith.subf %70, %77 : vector<8x32xf32>
    %79 = arith.mulf %78, %78 : vector<8x32xf32>
    %cst_41 = arith.constant dense<0.000000e+00> : vector<8xf32>
    %80 = vector.multi_reduction <add>, %79, %cst_41 [1] : vector<8x32xf32> to vector<8xf32>
    %81 = vector.shape_cast %80 : vector<8xf32> to vector<8x1xf32>
    %cst_42 = arith.constant 3.200000e+01 : f32
    %82 = vector.broadcast %cst_42 : f32 to vector<8x1xf32>
    %83 = arith.divf %81, %82 : vector<8x1xf32>
    %84 = vector.broadcast %76 : vector<8x1xf32> to vector<8x32xf32>
    %85 = arith.subf %70, %84 : vector<8x32xf32>
    %cst_43 = arith.constant 9.99999974E-6 : f32
    %86 = vector.broadcast %cst_43 : f32 to vector<8x1xf32>
    %87 = arith.addf %83, %86 : vector<8x1xf32>
    %88 = math.rsqrt %87 : vector<8x1xf32>
    %89 = vector.broadcast %88 : vector<8x1xf32> to vector<8x32xf32>
    %90 = arith.mulf %85, %89 : vector<8x32xf32>
    %91 = vector.broadcast %71 : vector<1x32xf32> to vector<8x32xf32>
    %92 = arith.mulf %90, %91 : vector<8x32xf32>
    %93 = vector.broadcast %72 : vector<1x32xf32> to vector<8x32xf32>
    %94 = arith.addf %92, %93 : vector<8x32xf32>
    %c0_44 = arith.constant 0 : index
    %c0_45 = arith.constant 0 : index
    %95 = vector.load %arg11[%c0_44, %c0_45] : memref<32x32xbf16, #tpu.memory_space<vmem>>, vector<32x32xbf16>
    %cst_46 = arith.constant 0.000000e+00 : f32
    %96 = vector.broadcast %cst_46 : f32 to vector<8x32xf32>
    %97 = vector.extract_strided_slice %62 {offsets = [0, 0], sizes = [8, 8], strides = [1, 1]} : vector<8x32xf32> to vector<8x8xf32>
    %cst_47 = arith.constant 0.353553385 : f32
    %98 = vector.broadcast %cst_47 : f32 to vector<8x8xf32>
    %99 = arith.mulf %97, %98 : vector<8x8xf32>
    %100 = arith.truncf %99 : vector<8x8xf32> to vector<8x8xbf16>
    %101 = vector.extract_strided_slice %94 {offsets = [0, 0], sizes = [8, 8], strides = [1, 1]} : vector<8x32xf32> to vector<8x8xf32>
    %102 = arith.truncf %101 : vector<8x8xf32> to vector<8x8xbf16>
    %103 = vector.extract_strided_slice %12 {offsets = [0, 0], sizes = [8, 8], strides = [1, 1]} : vector<8x32xf32> to vector<8x8xf32>
    %104 = arith.truncf %103 : vector<8x8xf32> to vector<8x8xbf16>
    %cst_48 = arith.constant dense<0.000000e+00> : vector<8x8xf32>
    %105 = tpu.matmul %100, %102, %cst_48 {dimension_numbers = #tpu.dot_dimension_numbers<[1], [1], [0], [0], [0, 0, 1, 0], [], []>} : vector<8x8xbf16>, vector<8x8xbf16>, vector<8x8xf32> -> vector<8x8xf32>
    %106 = vector.broadcast %3 : vector<1x8xf32> to vector<8x8xf32>
    %107 = arith.addf %105, %106 : vector<8x8xf32>
    %cst_49 = arith.constant dense<0xFF800000> : vector<8xf32>
    %108 = vector.multi_reduction <maximumf>, %107, %cst_49 [1] : vector<8x8xf32> to vector<8xf32>
    %109 = vector.shape_cast %108 : vector<8xf32> to vector<8x1xf32>
    %110 = vector.broadcast %109 : vector<8x1xf32> to vector<8x8xf32>
    %111 = arith.subf %107, %110 : vector<8x8xf32>
    %112 = math.exp %111 : vector<8x8xf32>
    %cst_50 = arith.constant dense<0.000000e+00> : vector<8xf32>
    %113 = vector.multi_reduction <add>, %112, %cst_50 [1] : vector<8x8xf32> to vector<8xf32>
    %114 = vector.shape_cast %113 : vector<8xf32> to vector<8x1xf32>
    %115 = tpu.reciprocal %114 {approx = true} : vector<8x1xf32> -> vector<8x1xf32>
    %116 = vector.broadcast %115 : vector<8x1xf32> to vector<8x8xf32>
    %117 = arith.mulf %112, %116 : vector<8x8xf32>
    %118 = arith.truncf %117 : vector<8x8xf32> to vector<8x8xbf16>
    %cst_51 = arith.constant dense<0.000000e+00> : vector<8x8xf32>
    %119 = tpu.matmul %118, %104, %cst_51 {dimension_numbers = #tpu.dot_dimension_numbers<[1], [0], [0], [1], [0, 0, 1, 1], [], []>} : vector<8x8xbf16>, vector<8x8xbf16>, vector<8x8xf32> -> vector<8x8xf32>
    %120 = arith.truncf %119 : vector<8x8xf32> to vector<8x8xbf16>
    %121 = vector.extract_strided_slice %95 {offsets = [0, 0], sizes = [8, 32], strides = [1, 1]} : vector<32x32xbf16> to vector<8x32xbf16>
    %cst_52 = arith.constant dense<0.000000e+00> : vector<8x32xf32>
    %122 = tpu.matmul %120, %121, %cst_52 {dimension_numbers = #tpu.dot_dimension_numbers<[1], [0], [0], [1], [0, 0, 1, 1], [], []>} : vector<8x8xbf16>, vector<8x32xbf16>, vector<8x32xf32> -> vector<8x32xf32>
    %123 = arith.addf %96, %122 : vector<8x32xf32>
    %124 = vector.extract_strided_slice %62 {offsets = [0, 8], sizes = [8, 8], strides = [1, 1]} : vector<8x32xf32> to vector<8x8xf32>
    %cst_53 = arith.constant 0.353553385 : f32
    %125 = vector.broadcast %cst_53 : f32 to vector<8x8xf32>
    %126 = arith.mulf %124, %125 : vector<8x8xf32>
    %127 = arith.truncf %126 : vector<8x8xf32> to vector<8x8xbf16>
    %128 = vector.extract_strided_slice %94 {offsets = [0, 8], sizes = [8, 8], strides = [1, 1]} : vector<8x32xf32> to vector<8x8xf32>
    %129 = arith.truncf %128 : vector<8x8xf32> to vector<8x8xbf16>
    %130 = vector.extract_strided_slice %12 {offsets = [0, 8], sizes = [8, 8], strides = [1, 1]} : vector<8x32xf32> to vector<8x8xf32>
    %131 = arith.truncf %130 : vector<8x8xf32> to vector<8x8xbf16>
    %cst_54 = arith.constant dense<0.000000e+00> : vector<8x8xf32>
    %132 = tpu.matmul %127, %129, %cst_54 {dimension_numbers = #tpu.dot_dimension_numbers<[1], [1], [0], [0], [0, 0, 1, 0], [], []>} : vector<8x8xbf16>, vector<8x8xbf16>, vector<8x8xf32> -> vector<8x8xf32>
    %133 = vector.broadcast %3 : vector<1x8xf32> to vector<8x8xf32>
    %134 = arith.addf %132, %133 : vector<8x8xf32>
    %cst_55 = arith.constant dense<0xFF800000> : vector<8xf32>
    %135 = vector.multi_reduction <maximumf>, %134, %cst_55 [1] : vector<8x8xf32> to vector<8xf32>
    %136 = vector.shape_cast %135 : vector<8xf32> to vector<8x1xf32>
    %137 = vector.broadcast %136 : vector<8x1xf32> to vector<8x8xf32>
    %138 = arith.subf %134, %137 : vector<8x8xf32>
    %139 = math.exp %138 : vector<8x8xf32>
    %cst_56 = arith.constant dense<0.000000e+00> : vector<8xf32>
    %140 = vector.multi_reduction <add>, %139, %cst_56 [1] : vector<8x8xf32> to vector<8xf32>
    %141 = vector.shape_cast %140 : vector<8xf32> to vector<8x1xf32>
    %142 = tpu.reciprocal %141 {approx = true} : vector<8x1xf32> -> vector<8x1xf32>
    %143 = vector.broadcast %142 : vector<8x1xf32> to vector<8x8xf32>
    %144 = arith.mulf %139, %143 : vector<8x8xf32>
    %145 = arith.truncf %144 : vector<8x8xf32> to vector<8x8xbf16>
    %cst_57 = arith.constant dense<0.000000e+00> : vector<8x8xf32>
    %146 = tpu.matmul %145, %131, %cst_57 {dimension_numbers = #tpu.dot_dimension_numbers<[1], [0], [0], [1], [0, 0, 1, 1], [], []>} : vector<8x8xbf16>, vector<8x8xbf16>, vector<8x8xf32> -> vector<8x8xf32>
    %147 = arith.truncf %146 : vector<8x8xf32> to vector<8x8xbf16>
    %148 = vector.extract_strided_slice %95 {offsets = [8, 0], sizes = [8, 32], strides = [1, 1]} : vector<32x32xbf16> to vector<8x32xbf16>
    %cst_58 = arith.constant dense<0.000000e+00> : vector<8x32xf32>
    %149 = tpu.matmul %147, %148, %cst_58 {dimension_numbers = #tpu.dot_dimension_numbers<[1], [0], [0], [1], [0, 0, 1, 1], [], []>} : vector<8x8xbf16>, vector<8x32xbf16>, vector<8x32xf32> -> vector<8x32xf32>
    %150 = arith.addf %123, %149 : vector<8x32xf32>
    %151 = vector.extract_strided_slice %62 {offsets = [0, 16], sizes = [8, 8], strides = [1, 1]} : vector<8x32xf32> to vector<8x8xf32>
    %cst_59 = arith.constant 0.353553385 : f32
    %152 = vector.broadcast %cst_59 : f32 to vector<8x8xf32>
    %153 = arith.mulf %151, %152 : vector<8x8xf32>
    %154 = arith.truncf %153 : vector<8x8xf32> to vector<8x8xbf16>
    %155 = vector.extract_strided_slice %94 {offsets = [0, 16], sizes = [8, 8], strides = [1, 1]} : vector<8x32xf32> to vector<8x8xf32>
    %156 = arith.truncf %155 : vector<8x8xf32> to vector<8x8xbf16>
    %157 = vector.extract_strided_slice %12 {offsets = [0, 16], sizes = [8, 8], strides = [1, 1]} : vector<8x32xf32> to vector<8x8xf32>
    %158 = arith.truncf %157 : vector<8x8xf32> to vector<8x8xbf16>
    %cst_60 = arith.constant dense<0.000000e+00> : vector<8x8xf32>
    %159 = tpu.matmul %154, %156, %cst_60 {dimension_numbers = #tpu.dot_dimension_numbers<[1], [1], [0], [0], [0, 0, 1, 0], [], []>} : vector<8x8xbf16>, vector<8x8xbf16>, vector<8x8xf32> -> vector<8x8xf32>
    %160 = vector.broadcast %3 : vector<1x8xf32> to vector<8x8xf32>
    %161 = arith.addf %159, %160 : vector<8x8xf32>
    %cst_61 = arith.constant dense<0xFF800000> : vector<8xf32>
    %162 = vector.multi_reduction <maximumf>, %161, %cst_61 [1] : vector<8x8xf32> to vector<8xf32>
    %163 = vector.shape_cast %162 : vector<8xf32> to vector<8x1xf32>
    %164 = vector.broadcast %163 : vector<8x1xf32> to vector<8x8xf32>
    %165 = arith.subf %161, %164 : vector<8x8xf32>
    %166 = math.exp %165 : vector<8x8xf32>
    %cst_62 = arith.constant dense<0.000000e+00> : vector<8xf32>
    %167 = vector.multi_reduction <add>, %166, %cst_62 [1] : vector<8x8xf32> to vector<8xf32>
    %168 = vector.shape_cast %167 : vector<8xf32> to vector<8x1xf32>
    %169 = tpu.reciprocal %168 {approx = true} : vector<8x1xf32> -> vector<8x1xf32>
    %170 = vector.broadcast %169 : vector<8x1xf32> to vector<8x8xf32>
    %171 = arith.mulf %166, %170 : vector<8x8xf32>
    %172 = arith.truncf %171 : vector<8x8xf32> to vector<8x8xbf16>
    %cst_63 = arith.constant dense<0.000000e+00> : vector<8x8xf32>
    %173 = tpu.matmul %172, %158, %cst_63 {dimension_numbers = #tpu.dot_dimension_numbers<[1], [0], [0], [1], [0, 0, 1, 1], [], []>} : vector<8x8xbf16>, vector<8x8xbf16>, vector<8x8xf32> -> vector<8x8xf32>
    %174 = arith.truncf %173 : vector<8x8xf32> to vector<8x8xbf16>
    %175 = vector.extract_strided_slice %95 {offsets = [16, 0], sizes = [8, 32], strides = [1, 1]} : vector<32x32xbf16> to vector<8x32xbf16>
    %cst_64 = arith.constant dense<0.000000e+00> : vector<8x32xf32>
    %176 = tpu.matmul %174, %175, %cst_64 {dimension_numbers = #tpu.dot_dimension_numbers<[1], [0], [0], [1], [0, 0, 1, 1], [], []>} : vector<8x8xbf16>, vector<8x32xbf16>, vector<8x32xf32> -> vector<8x32xf32>
    %177 = arith.addf %150, %176 : vector<8x32xf32>
    %178 = vector.extract_strided_slice %62 {offsets = [0, 24], sizes = [8, 8], strides = [1, 1]} : vector<8x32xf32> to vector<8x8xf32>
    %cst_65 = arith.constant 0.353553385 : f32
    %179 = vector.broadcast %cst_65 : f32 to vector<8x8xf32>
    %180 = arith.mulf %178, %179 : vector<8x8xf32>
    %181 = arith.truncf %180 : vector<8x8xf32> to vector<8x8xbf16>
    %182 = vector.extract_strided_slice %94 {offsets = [0, 24], sizes = [8, 8], strides = [1, 1]} : vector<8x32xf32> to vector<8x8xf32>
    %183 = arith.truncf %182 : vector<8x8xf32> to vector<8x8xbf16>
    %184 = vector.extract_strided_slice %12 {offsets = [0, 24], sizes = [8, 8], strides = [1, 1]} : vector<8x32xf32> to vector<8x8xf32>
    %185 = arith.truncf %184 : vector<8x8xf32> to vector<8x8xbf16>
    %cst_66 = arith.constant dense<0.000000e+00> : vector<8x8xf32>
    %186 = tpu.matmul %181, %183, %cst_66 {dimension_numbers = #tpu.dot_dimension_numbers<[1], [1], [0], [0], [0, 0, 1, 0], [], []>} : vector<8x8xbf16>, vector<8x8xbf16>, vector<8x8xf32> -> vector<8x8xf32>
    %187 = vector.broadcast %3 : vector<1x8xf32> to vector<8x8xf32>
    %188 = arith.addf %186, %187 : vector<8x8xf32>
    %cst_67 = arith.constant dense<0xFF800000> : vector<8xf32>
    %189 = vector.multi_reduction <maximumf>, %188, %cst_67 [1] : vector<8x8xf32> to vector<8xf32>
    %190 = vector.shape_cast %189 : vector<8xf32> to vector<8x1xf32>
    %191 = vector.broadcast %190 : vector<8x1xf32> to vector<8x8xf32>
    %192 = arith.subf %188, %191 : vector<8x8xf32>
    %193 = math.exp %192 : vector<8x8xf32>
    %cst_68 = arith.constant dense<0.000000e+00> : vector<8xf32>
    %194 = vector.multi_reduction <add>, %193, %cst_68 [1] : vector<8x8xf32> to vector<8xf32>
    %195 = vector.shape_cast %194 : vector<8xf32> to vector<8x1xf32>
    %196 = tpu.reciprocal %195 {approx = true} : vector<8x1xf32> -> vector<8x1xf32>
    %197 = vector.broadcast %196 : vector<8x1xf32> to vector<8x8xf32>
    %198 = arith.mulf %193, %197 : vector<8x8xf32>
    %199 = arith.truncf %198 : vector<8x8xf32> to vector<8x8xbf16>
    %cst_69 = arith.constant dense<0.000000e+00> : vector<8x8xf32>
    %200 = tpu.matmul %199, %185, %cst_69 {dimension_numbers = #tpu.dot_dimension_numbers<[1], [0], [0], [1], [0, 0, 1, 1], [], []>} : vector<8x8xbf16>, vector<8x8xbf16>, vector<8x8xf32> -> vector<8x8xf32>
    %201 = arith.truncf %200 : vector<8x8xf32> to vector<8x8xbf16>
    %202 = vector.extract_strided_slice %95 {offsets = [24, 0], sizes = [8, 32], strides = [1, 1]} : vector<32x32xbf16> to vector<8x32xbf16>
    %cst_70 = arith.constant dense<0.000000e+00> : vector<8x32xf32>
    %203 = tpu.matmul %201, %202, %cst_70 {dimension_numbers = #tpu.dot_dimension_numbers<[1], [0], [0], [1], [0, 0, 1, 1], [], []>} : vector<8x8xbf16>, vector<8x32xbf16>, vector<8x32xf32> -> vector<8x32xf32>
    %204 = arith.addf %177, %203 : vector<8x32xf32>
    %c0_71 = arith.constant 0 : index
    %c0_72 = arith.constant 0 : index
    %205 = vector.load %arg12[%c0_71, %c0_72] : memref<1x32xf32, #tpu.memory_space<vmem>>, vector<1x32xf32>
    %206 = vector.broadcast %205 : vector<1x32xf32> to vector<8x32xf32>
    %207 = arith.addf %204, %206 : vector<8x32xf32>
    %208 = arith.addf %207, %1 : vector<8x32xf32>
    %c0_73 = arith.constant 0 : index
    %c0_74 = arith.constant 0 : index
    %209 = vector.load %arg13[%c0_73, %c0_74] : memref<1x32xf32, #tpu.memory_space<vmem>>, vector<1x32xf32>
    %c0_75 = arith.constant 0 : index
    %c0_76 = arith.constant 0 : index
    %210 = vector.load %arg14[%c0_75, %c0_76] : memref<1x32xf32, #tpu.memory_space<vmem>>, vector<1x32xf32>
    %cst_77 = arith.constant dense<0.000000e+00> : vector<8xf32>
    %211 = vector.multi_reduction <add>, %208, %cst_77 [1] : vector<8x32xf32> to vector<8xf32>
    %212 = vector.shape_cast %211 : vector<8xf32> to vector<8x1xf32>
    %cst_78 = arith.constant 3.200000e+01 : f32
    %213 = vector.broadcast %cst_78 : f32 to vector<8x1xf32>
    %214 = arith.divf %212, %213 : vector<8x1xf32>
    %215 = vector.broadcast %214 : vector<8x1xf32> to vector<8x32xf32>
    %216 = arith.subf %208, %215 : vector<8x32xf32>
    %217 = arith.mulf %216, %216 : vector<8x32xf32>
    %cst_79 = arith.constant dense<0.000000e+00> : vector<8xf32>
    %218 = vector.multi_reduction <add>, %217, %cst_79 [1] : vector<8x32xf32> to vector<8xf32>
    %219 = vector.shape_cast %218 : vector<8xf32> to vector<8x1xf32>
    %cst_80 = arith.constant 3.200000e+01 : f32
    %220 = vector.broadcast %cst_80 : f32 to vector<8x1xf32>
    %221 = arith.divf %219, %220 : vector<8x1xf32>
    %222 = vector.broadcast %214 : vector<8x1xf32> to vector<8x32xf32>
    %223 = arith.subf %208, %222 : vector<8x32xf32>
    %cst_81 = arith.constant 9.99999997E-7 : f32
    %224 = vector.broadcast %cst_81 : f32 to vector<8x1xf32>
    %225 = arith.addf %221, %224 : vector<8x1xf32>
    %226 = math.rsqrt %225 : vector<8x1xf32>
    %227 = vector.broadcast %226 : vector<8x1xf32> to vector<8x32xf32>
    %228 = arith.mulf %223, %227 : vector<8x32xf32>
    %229 = vector.broadcast %209 : vector<1x32xf32> to vector<8x32xf32>
    %230 = arith.mulf %228, %229 : vector<8x32xf32>
    %231 = vector.broadcast %210 : vector<1x32xf32> to vector<8x32xf32>
    %232 = arith.addf %230, %231 : vector<8x32xf32>
    %c0_82 = arith.constant 0 : index
    %c0_83 = arith.constant 0 : index
    %c0_84 = arith.constant 0 : index
    %233 = vector.load %arg15[%c0_82, %c0_83, %c0_84] : memref<1x8x32xf32, #tpu.memory_space<vmem>>, vector<1x8x32xf32>
    %234 = vector.shape_cast %233 : vector<1x8x32xf32> to vector<8x32xf32>
    %235 = vector.shape_cast %232 : vector<8x32xf32> to vector<1x8x32xf32>
    tpu.vector_store %arg15[%c0_82, %c0_83, %c0_84], %235 {strides = array<i32>} : memref<1x8x32xf32, #tpu.memory_space<vmem>>, vector<1x8x32xf32>,
    return
  }
  func.func @transform_0(%arg0: i32) -> (i32, i32, i32) {
    %c0_i32 = arith.constant 0 : i32
    %c0_i32_0 = arith.constant 0 : i32
    %c0_i32_1 = arith.constant 0 : i32
    return %arg0, %c0_i32, %c0_i32_0 : i32, i32, i32
  }
  func.func @transform_1(%arg0: i32) -> (i32, i32, i32) {
    %c0_i32 = arith.constant 0 : i32
    %c0_i32_0 = arith.constant 0 : i32
    %c0_i32_1 = arith.constant 0 : i32
    return %arg0, %c0_i32, %c0_i32_0 : i32, i32, i32
  }
  func.func @transform_2(%arg0: i32) -> (i32, i32) {
    %c0_i32 = arith.constant 0 : i32
    %c0_i32_0 = arith.constant 0 : i32
    %c0_i32_1 = arith.constant 0 : i32
    return %c0_i32, %c0_i32_0 : i32, i32
  }
  func.func @transform_3(%arg0: i32) -> (i32, i32) {
    %c0_i32 = arith.constant 0 : i32
    %c0_i32_0 = arith.constant 0 : i32
    %c0_i32_1 = arith.constant 0 : i32
    return %c0_i32, %c0_i32_0 : i32, i32
  }
  func.func @transform_4(%arg0: i32) -> (i32, i32) {
    %c0_i32 = arith.constant 0 : i32
    %c0_i32_0 = arith.constant 0 : i32
    %c0_i32_1 = arith.constant 0 : i32
    return %c0_i32, %c0_i32_0 : i32, i32
  }
  func.func @transform_5(%arg0: i32) -> (i32, i32) {
    %c0_i32 = arith.constant 0 : i32
    %c0_i32_0 = arith.constant 0 : i32
    %c0_i32_1 = arith.constant 0 : i32
    return %c0_i32, %c0_i32_0 : i32, i32
  }
  func.func @transform_6(%arg0: i32) -> (i32, i32) {
    %c0_i32 = arith.constant 0 : i32
    %c0_i32_0 = arith.constant 0 : i32
    %c0_i32_1 = arith.constant 0 : i32
    return %c0_i32, %c0_i32_0 : i32, i32
  }
  func.func @transform_7(%arg0: i32) -> (i32, i32) {
    %c0_i32 = arith.constant 0 : i32
    %c0_i32_0 = arith.constant 0 : i32
    %c0_i32_1 = arith.constant 0 : i32
    return %c0_i32, %c0_i32_0 : i32, i32
  }
  func.func @transform_8(%arg0: i32) -> (i32, i32) {
    %c0_i32 = arith.constant 0 : i32
    %c0_i32_0 = arith.constant 0 : i32
    %c0_i32_1 = arith.constant 0 : i32
    return %c0_i32, %c0_i32_0 : i32, i32
  }
  func.func @transform_9(%arg0: i32) -> (i32, i32) {
    %c0_i32 = arith.constant 0 : i32
    %c0_i32_0 = arith.constant 0 : i32
    %c0_i32_1 = arith.constant 0 : i32
    return %c0_i32, %c0_i32_0 : i32, i32
  }
  func.func @transform_10(%arg0: i32) -> (i32, i32) {
    %c0_i32 = arith.constant 0 : i32
    %c0_i32_0 = arith.constant 0 : i32
    %c0_i32_1 = arith.constant 0 : i32
    return %c0_i32, %c0_i32_0 : i32, i32
  }
  func.func @transform_11(%arg0: i32) -> (i32, i32) {
    %c0_i32 = arith.constant 0 : i32
    %c0_i32_0 = arith.constant 0 : i32
    %c0_i32_1 = arith.constant 0 : i32
    return %c0_i32, %c0_i32_0 : i32, i32
  }
  func.func @transform_12(%arg0: i32) -> (i32, i32) {
    %c0_i32 = arith.constant 0 : i32
    %c0_i32_0 = arith.constant 0 : i32
    %c0_i32_1 = arith.constant 0 : i32
    return %c0_i32, %c0_i32_0 : i32, i32
  }
  func.func @transform_13(%arg0: i32) -> (i32, i32) {
    %c0_i32 = arith.constant 0 : i32
    %c0_i32_0 = arith.constant 0 : i32
    %c0_i32_1 = arith.constant 0 : i32
    return %c0_i32, %c0_i32_0 : i32, i32
  }
  func.func @transform_14(%arg0: i32) -> (i32, i32, i32) {
    %c0_i32 = arith.constant 0 : i32
    %c0_i32_0 = arith.constant 0 : i32
    %c0_i32_1 = arith.constant 0 : i32
    return %arg0, %c0_i32, %c0_i32_0 : i32, i32, i32
  }
}

module attributes {stable_mosaic.version = 11 : i64} {
  func.func @_cross_ffn_kernel(%arg0: i32, %arg1: memref<1x16x32xf32, #tpu.memory_space<vmem>>, %arg2: memref<1x8x32xf32, #tpu.memory_space<vmem>>, %arg3: memref<1x1x8xf32, #tpu.memory_space<vmem>>, %arg4: memref<32x32xbf16, #tpu.memory_space<vmem>>, %arg5: memref<1x32xf32, #tpu.memory_space<vmem>>, %arg6: memref<32x64xbf16, #tpu.memory_space<vmem>>, %arg7: memref<1x64xf32, #tpu.memory_space<vmem>>, %arg8: memref<32x32xbf16, #tpu.memory_space<vmem>>, %arg9: memref<1x32xf32, #tpu.memory_space<vmem>>, %arg10: memref<1x32xf32, #tpu.memory_space<vmem>>, %arg11: memref<1x32xf32, #tpu.memory_space<vmem>>, %arg12: memref<32x128xbf16, #tpu.memory_space<vmem>>, %arg13: memref<1x128xf32, #tpu.memory_space<vmem>>, %arg14: memref<128x32xbf16, #tpu.memory_space<vmem>>, %arg15: memref<1x32xf32, #tpu.memory_space<vmem>>, %arg16: memref<1x32xf32, #tpu.memory_space<vmem>>, %arg17: memref<1x32xf32, #tpu.memory_space<vmem>>, %arg18: memref<1x16x32xf32, #tpu.memory_space<vmem>>) attributes {dimension_semantics = [#tpu.dimension_semantics<parallel>], iteration_bounds = array<i64: 2>, scalar_prefetch = 0 : i64, scratch_operands = 0 : i64, tpu.core_type = #tpu.core_type<tc>, window_params = [{transform_indices = @transform_0, window_bounds = array<i64: 1, 16, 32>}, {transform_indices = @transform_1, window_bounds = array<i64: 1, 8, 32>}, {transform_indices = @transform_2, window_bounds = array<i64: 1, 1, 8>}, {pipeline_mode = #tpu.pipeline_mode<synchronous>, transform_indices = @transform_3, window_bounds = array<i64: 32, 32>}, {pipeline_mode = #tpu.pipeline_mode<synchronous>, transform_indices = @transform_4, window_bounds = array<i64: 1, 32>}, {pipeline_mode = #tpu.pipeline_mode<synchronous>, transform_indices = @transform_5, window_bounds = array<i64: 32, 64>}, {pipeline_mode = #tpu.pipeline_mode<synchronous>, transform_indices = @transform_6, window_bounds = array<i64: 1, 64>}, {pipeline_mode = #tpu.pipeline_mode<synchronous>, transform_indices = @transform_7, window_bounds = array<i64: 32, 32>}, {pipeline_mode = #tpu.pipeline_mode<synchronous>, transform_indices = @transform_8, window_bounds = array<i64: 1, 32>}, {pipeline_mode = #tpu.pipeline_mode<synchronous>, transform_indices = @transform_9, window_bounds = array<i64: 1, 32>}, {pipeline_mode = #tpu.pipeline_mode<synchronous>, transform_indices = @transform_10, window_bounds = array<i64: 1, 32>}, {pipeline_mode = #tpu.pipeline_mode<synchronous>, transform_indices = @transform_11, window_bounds = array<i64: 32, 128>}, {pipeline_mode = #tpu.pipeline_mode<synchronous>, transform_indices = @transform_12, window_bounds = array<i64: 1, 128>}, {pipeline_mode = #tpu.pipeline_mode<synchronous>, transform_indices = @transform_13, window_bounds = array<i64: 128, 32>}, {pipeline_mode = #tpu.pipeline_mode<synchronous>, transform_indices = @transform_14, window_bounds = array<i64: 1, 32>}, {pipeline_mode = #tpu.pipeline_mode<synchronous>, transform_indices = @transform_15, window_bounds = array<i64: 1, 32>}, {pipeline_mode = #tpu.pipeline_mode<synchronous>, transform_indices = @transform_16, window_bounds = array<i64: 1, 32>}, {transform_indices = @transform_17, window_bounds = array<i64: 1, 16, 32>}]} {
    %c0 = arith.constant 0 : index
    %c0_0 = arith.constant 0 : index
    %c0_1 = arith.constant 0 : index
    %0 = vector.load %arg1[%c0, %c0_0, %c0_1] : memref<1x16x32xf32, #tpu.memory_space<vmem>>, vector<1x16x32xf32>
    %1 = vector.shape_cast %0 : vector<1x16x32xf32> to vector<16x32xf32>
    %c0_2 = arith.constant 0 : index
    %c0_3 = arith.constant 0 : index
    %c0_4 = arith.constant 0 : index
    %2 = vector.load %arg2[%c0_2, %c0_3, %c0_4] : memref<1x8x32xf32, #tpu.memory_space<vmem>>, vector<1x8x32xf32>
    %3 = vector.shape_cast %2 : vector<1x8x32xf32> to vector<8x32xf32>
    %c0_5 = arith.constant 0 : index
    %c0_6 = arith.constant 0 : index
    %c0_7 = arith.constant 0 : index
    %4 = vector.load %arg3[%c0_5, %c0_6, %c0_7] : memref<1x1x8xf32, #tpu.memory_space<vmem>>, vector<1x1x8xf32>
    %5 = vector.shape_cast %4 : vector<1x1x8xf32> to vector<1x8xf32>
    %c0_8 = arith.constant 0 : index
    %c0_9 = arith.constant 0 : index
    %6 = vector.load %arg4[%c0_8, %c0_9] : memref<32x32xbf16, #tpu.memory_space<vmem>>, vector<32x32xbf16>
    %c0_10 = arith.constant 0 : index
    %c0_11 = arith.constant 0 : index
    %7 = vector.load %arg5[%c0_10, %c0_11] : memref<1x32xf32, #tpu.memory_space<vmem>>, vector<1x32xf32>
    %8 = arith.truncf %1 : vector<16x32xf32> to vector<16x32xbf16>
    %cst = arith.constant dense<0.000000e+00> : vector<16x32xf32>
    %9 = tpu.matmul %8, %6, %cst {dimension_numbers = #tpu.dot_dimension_numbers<[1], [0], [0], [1], [0, 0, 1, 1], [], []>} : vector<16x32xbf16>, vector<32x32xbf16>, vector<16x32xf32> -> vector<16x32xf32>
    %10 = vector.broadcast %7 : vector<1x32xf32> to vector<16x32xf32>
    %11 = arith.addf %9, %10 : vector<16x32xf32>
    %c0_12 = arith.constant 0 : index
    %c0_13 = arith.constant 0 : index
    %12 = vector.load %arg6[%c0_12, %c0_13] : memref<32x64xbf16, #tpu.memory_space<vmem>>, vector<32x64xbf16>
    %c0_14 = arith.constant 0 : index
    %c0_15 = arith.constant 0 : index
    %13 = vector.load %arg7[%c0_14, %c0_15] : memref<1x64xf32, #tpu.memory_space<vmem>>, vector<1x64xf32>
    %14 = arith.truncf %3 : vector<8x32xf32> to vector<8x32xbf16>
    %cst_16 = arith.constant dense<0.000000e+00> : vector<8x64xf32>
    %15 = tpu.matmul %14, %12, %cst_16 {dimension_numbers = #tpu.dot_dimension_numbers<[1], [0], [0], [1], [0, 0, 1, 1], [], []>} : vector<8x32xbf16>, vector<32x64xbf16>, vector<8x64xf32> -> vector<8x64xf32>
    %16 = vector.broadcast %13 : vector<1x64xf32> to vector<8x64xf32>
    %17 = arith.addf %15, %16 : vector<8x64xf32>
    %18 = vector.extract_strided_slice %17 {offsets = [0, 0], sizes = [8, 32], strides = [1, 1]} : vector<8x64xf32> to vector<8x32xf32>
    %19 = vector.extract_strided_slice %17 {offsets = [0, 32], sizes = [8, 32], strides = [1, 1]} : vector<8x64xf32> to vector<8x32xf32>
    %c0_17 = arith.constant 0 : index
    %c0_18 = arith.constant 0 : index
    %20 = vector.load %arg8[%c0_17, %c0_18] : memref<32x32xbf16, #tpu.memory_space<vmem>>, vector<32x32xbf16>
    %cst_19 = arith.constant 0.000000e+00 : f32
    %21 = vector.broadcast %cst_19 : f32 to vector<16x32xf32>
    %22 = vector.extract_strided_slice %11 {offsets = [0, 0], sizes = [16, 8], strides = [1, 1]} : vector<16x32xf32> to vector<16x8xf32>
    %cst_20 = arith.constant 0.353553385 : f32
    %23 = vector.broadcast %cst_20 : f32 to vector<16x8xf32>
    %24 = arith.mulf %22, %23 : vector<16x8xf32>
    %25 = arith.truncf %24 : vector<16x8xf32> to vector<16x8xbf16>
    %26 = vector.extract_strided_slice %18 {offsets = [0, 0], sizes = [8, 8], strides = [1, 1]} : vector<8x32xf32> to vector<8x8xf32>
    %27 = arith.truncf %26 : vector<8x8xf32> to vector<8x8xbf16>
    %28 = vector.extract_strided_slice %19 {offsets = [0, 0], sizes = [8, 8], strides = [1, 1]} : vector<8x32xf32> to vector<8x8xf32>
    %29 = arith.truncf %28 : vector<8x8xf32> to vector<8x8xbf16>
    %cst_21 = arith.constant dense<0.000000e+00> : vector<16x8xf32>
    %30 = tpu.matmul %25, %27, %cst_21 {dimension_numbers = #tpu.dot_dimension_numbers<[1], [1], [0], [0], [0, 0, 1, 0], [], []>} : vector<16x8xbf16>, vector<8x8xbf16>, vector<16x8xf32> -> vector<16x8xf32>
    %31 = vector.broadcast %5 : vector<1x8xf32> to vector<16x8xf32>
    %32 = arith.addf %30, %31 : vector<16x8xf32>
    %cst_22 = arith.constant dense<0xFF800000> : vector<16xf32>
    %33 = vector.multi_reduction <maximumf>, %32, %cst_22 [1] : vector<16x8xf32> to vector<16xf32>
    %34 = vector.shape_cast %33 : vector<16xf32> to vector<16x1xf32>
    %35 = vector.broadcast %34 : vector<16x1xf32> to vector<16x8xf32>
    %36 = arith.subf %32, %35 : vector<16x8xf32>
    %37 = math.exp %36 : vector<16x8xf32>
    %cst_23 = arith.constant dense<0.000000e+00> : vector<16xf32>
    %38 = vector.multi_reduction <add>, %37, %cst_23 [1] : vector<16x8xf32> to vector<16xf32>
    %39 = vector.shape_cast %38 : vector<16xf32> to vector<16x1xf32>
    %40 = tpu.reciprocal %39 {approx = true} : vector<16x1xf32> -> vector<16x1xf32>
    %41 = vector.broadcast %40 : vector<16x1xf32> to vector<16x8xf32>
    %42 = arith.mulf %37, %41 : vector<16x8xf32>
    %43 = arith.truncf %42 : vector<16x8xf32> to vector<16x8xbf16>
    %cst_24 = arith.constant dense<0.000000e+00> : vector<16x8xf32>
    %44 = tpu.matmul %43, %29, %cst_24 {dimension_numbers = #tpu.dot_dimension_numbers<[1], [0], [0], [1], [0, 0, 1, 1], [], []>} : vector<16x8xbf16>, vector<8x8xbf16>, vector<16x8xf32> -> vector<16x8xf32>
    %45 = arith.truncf %44 : vector<16x8xf32> to vector<16x8xbf16>
    %46 = vector.extract_strided_slice %20 {offsets = [0, 0], sizes = [8, 32], strides = [1, 1]} : vector<32x32xbf16> to vector<8x32xbf16>
    %cst_25 = arith.constant dense<0.000000e+00> : vector<16x32xf32>
    %47 = tpu.matmul %45, %46, %cst_25 {dimension_numbers = #tpu.dot_dimension_numbers<[1], [0], [0], [1], [0, 0, 1, 1], [], []>} : vector<16x8xbf16>, vector<8x32xbf16>, vector<16x32xf32> -> vector<16x32xf32>
    %48 = arith.addf %21, %47 : vector<16x32xf32>
    %49 = vector.extract_strided_slice %11 {offsets = [0, 8], sizes = [16, 8], strides = [1, 1]} : vector<16x32xf32> to vector<16x8xf32>
    %cst_26 = arith.constant 0.353553385 : f32
    %50 = vector.broadcast %cst_26 : f32 to vector<16x8xf32>
    %51 = arith.mulf %49, %50 : vector<16x8xf32>
    %52 = arith.truncf %51 : vector<16x8xf32> to vector<16x8xbf16>
    %53 = vector.extract_strided_slice %18 {offsets = [0, 8], sizes = [8, 8], strides = [1, 1]} : vector<8x32xf32> to vector<8x8xf32>
    %54 = arith.truncf %53 : vector<8x8xf32> to vector<8x8xbf16>
    %55 = vector.extract_strided_slice %19 {offsets = [0, 8], sizes = [8, 8], strides = [1, 1]} : vector<8x32xf32> to vector<8x8xf32>
    %56 = arith.truncf %55 : vector<8x8xf32> to vector<8x8xbf16>
    %cst_27 = arith.constant dense<0.000000e+00> : vector<16x8xf32>
    %57 = tpu.matmul %52, %54, %cst_27 {dimension_numbers = #tpu.dot_dimension_numbers<[1], [1], [0], [0], [0, 0, 1, 0], [], []>} : vector<16x8xbf16>, vector<8x8xbf16>, vector<16x8xf32> -> vector<16x8xf32>
    %58 = vector.broadcast %5 : vector<1x8xf32> to vector<16x8xf32>
    %59 = arith.addf %57, %58 : vector<16x8xf32>
    %cst_28 = arith.constant dense<0xFF800000> : vector<16xf32>
    %60 = vector.multi_reduction <maximumf>, %59, %cst_28 [1] : vector<16x8xf32> to vector<16xf32>
    %61 = vector.shape_cast %60 : vector<16xf32> to vector<16x1xf32>
    %62 = vector.broadcast %61 : vector<16x1xf32> to vector<16x8xf32>
    %63 = arith.subf %59, %62 : vector<16x8xf32>
    %64 = math.exp %63 : vector<16x8xf32>
    %cst_29 = arith.constant dense<0.000000e+00> : vector<16xf32>
    %65 = vector.multi_reduction <add>, %64, %cst_29 [1] : vector<16x8xf32> to vector<16xf32>
    %66 = vector.shape_cast %65 : vector<16xf32> to vector<16x1xf32>
    %67 = tpu.reciprocal %66 {approx = true} : vector<16x1xf32> -> vector<16x1xf32>
    %68 = vector.broadcast %67 : vector<16x1xf32> to vector<16x8xf32>
    %69 = arith.mulf %64, %68 : vector<16x8xf32>
    %70 = arith.truncf %69 : vector<16x8xf32> to vector<16x8xbf16>
    %cst_30 = arith.constant dense<0.000000e+00> : vector<16x8xf32>
    %71 = tpu.matmul %70, %56, %cst_30 {dimension_numbers = #tpu.dot_dimension_numbers<[1], [0], [0], [1], [0, 0, 1, 1], [], []>} : vector<16x8xbf16>, vector<8x8xbf16>, vector<16x8xf32> -> vector<16x8xf32>
    %72 = arith.truncf %71 : vector<16x8xf32> to vector<16x8xbf16>
    %73 = vector.extract_strided_slice %20 {offsets = [8, 0], sizes = [8, 32], strides = [1, 1]} : vector<32x32xbf16> to vector<8x32xbf16>
    %cst_31 = arith.constant dense<0.000000e+00> : vector<16x32xf32>
    %74 = tpu.matmul %72, %73, %cst_31 {dimension_numbers = #tpu.dot_dimension_numbers<[1], [0], [0], [1], [0, 0, 1, 1], [], []>} : vector<16x8xbf16>, vector<8x32xbf16>, vector<16x32xf32> -> vector<16x32xf32>
    %75 = arith.addf %48, %74 : vector<16x32xf32>
    %76 = vector.extract_strided_slice %11 {offsets = [0, 16], sizes = [16, 8], strides = [1, 1]} : vector<16x32xf32> to vector<16x8xf32>
    %cst_32 = arith.constant 0.353553385 : f32
    %77 = vector.broadcast %cst_32 : f32 to vector<16x8xf32>
    %78 = arith.mulf %76, %77 : vector<16x8xf32>
    %79 = arith.truncf %78 : vector<16x8xf32> to vector<16x8xbf16>
    %80 = vector.extract_strided_slice %18 {offsets = [0, 16], sizes = [8, 8], strides = [1, 1]} : vector<8x32xf32> to vector<8x8xf32>
    %81 = arith.truncf %80 : vector<8x8xf32> to vector<8x8xbf16>
    %82 = vector.extract_strided_slice %19 {offsets = [0, 16], sizes = [8, 8], strides = [1, 1]} : vector<8x32xf32> to vector<8x8xf32>
    %83 = arith.truncf %82 : vector<8x8xf32> to vector<8x8xbf16>
    %cst_33 = arith.constant dense<0.000000e+00> : vector<16x8xf32>
    %84 = tpu.matmul %79, %81, %cst_33 {dimension_numbers = #tpu.dot_dimension_numbers<[1], [1], [0], [0], [0, 0, 1, 0], [], []>} : vector<16x8xbf16>, vector<8x8xbf16>, vector<16x8xf32> -> vector<16x8xf32>
    %85 = vector.broadcast %5 : vector<1x8xf32> to vector<16x8xf32>
    %86 = arith.addf %84, %85 : vector<16x8xf32>
    %cst_34 = arith.constant dense<0xFF800000> : vector<16xf32>
    %87 = vector.multi_reduction <maximumf>, %86, %cst_34 [1] : vector<16x8xf32> to vector<16xf32>
    %88 = vector.shape_cast %87 : vector<16xf32> to vector<16x1xf32>
    %89 = vector.broadcast %88 : vector<16x1xf32> to vector<16x8xf32>
    %90 = arith.subf %86, %89 : vector<16x8xf32>
    %91 = math.exp %90 : vector<16x8xf32>
    %cst_35 = arith.constant dense<0.000000e+00> : vector<16xf32>
    %92 = vector.multi_reduction <add>, %91, %cst_35 [1] : vector<16x8xf32> to vector<16xf32>
    %93 = vector.shape_cast %92 : vector<16xf32> to vector<16x1xf32>
    %94 = tpu.reciprocal %93 {approx = true} : vector<16x1xf32> -> vector<16x1xf32>
    %95 = vector.broadcast %94 : vector<16x1xf32> to vector<16x8xf32>
    %96 = arith.mulf %91, %95 : vector<16x8xf32>
    %97 = arith.truncf %96 : vector<16x8xf32> to vector<16x8xbf16>
    %cst_36 = arith.constant dense<0.000000e+00> : vector<16x8xf32>
    %98 = tpu.matmul %97, %83, %cst_36 {dimension_numbers = #tpu.dot_dimension_numbers<[1], [0], [0], [1], [0, 0, 1, 1], [], []>} : vector<16x8xbf16>, vector<8x8xbf16>, vector<16x8xf32> -> vector<16x8xf32>
    %99 = arith.truncf %98 : vector<16x8xf32> to vector<16x8xbf16>
    %100 = vector.extract_strided_slice %20 {offsets = [16, 0], sizes = [8, 32], strides = [1, 1]} : vector<32x32xbf16> to vector<8x32xbf16>
    %cst_37 = arith.constant dense<0.000000e+00> : vector<16x32xf32>
    %101 = tpu.matmul %99, %100, %cst_37 {dimension_numbers = #tpu.dot_dimension_numbers<[1], [0], [0], [1], [0, 0, 1, 1], [], []>} : vector<16x8xbf16>, vector<8x32xbf16>, vector<16x32xf32> -> vector<16x32xf32>
    %102 = arith.addf %75, %101 : vector<16x32xf32>
    %103 = vector.extract_strided_slice %11 {offsets = [0, 24], sizes = [16, 8], strides = [1, 1]} : vector<16x32xf32> to vector<16x8xf32>
    %cst_38 = arith.constant 0.353553385 : f32
    %104 = vector.broadcast %cst_38 : f32 to vector<16x8xf32>
    %105 = arith.mulf %103, %104 : vector<16x8xf32>
    %106 = arith.truncf %105 : vector<16x8xf32> to vector<16x8xbf16>
    %107 = vector.extract_strided_slice %18 {offsets = [0, 24], sizes = [8, 8], strides = [1, 1]} : vector<8x32xf32> to vector<8x8xf32>
    %108 = arith.truncf %107 : vector<8x8xf32> to vector<8x8xbf16>
    %109 = vector.extract_strided_slice %19 {offsets = [0, 24], sizes = [8, 8], strides = [1, 1]} : vector<8x32xf32> to vector<8x8xf32>
    %110 = arith.truncf %109 : vector<8x8xf32> to vector<8x8xbf16>
    %cst_39 = arith.constant dense<0.000000e+00> : vector<16x8xf32>
    %111 = tpu.matmul %106, %108, %cst_39 {dimension_numbers = #tpu.dot_dimension_numbers<[1], [1], [0], [0], [0, 0, 1, 0], [], []>} : vector<16x8xbf16>, vector<8x8xbf16>, vector<16x8xf32> -> vector<16x8xf32>
    %112 = vector.broadcast %5 : vector<1x8xf32> to vector<16x8xf32>
    %113 = arith.addf %111, %112 : vector<16x8xf32>
    %cst_40 = arith.constant dense<0xFF800000> : vector<16xf32>
    %114 = vector.multi_reduction <maximumf>, %113, %cst_40 [1] : vector<16x8xf32> to vector<16xf32>
    %115 = vector.shape_cast %114 : vector<16xf32> to vector<16x1xf32>
    %116 = vector.broadcast %115 : vector<16x1xf32> to vector<16x8xf32>
    %117 = arith.subf %113, %116 : vector<16x8xf32>
    %118 = math.exp %117 : vector<16x8xf32>
    %cst_41 = arith.constant dense<0.000000e+00> : vector<16xf32>
    %119 = vector.multi_reduction <add>, %118, %cst_41 [1] : vector<16x8xf32> to vector<16xf32>
    %120 = vector.shape_cast %119 : vector<16xf32> to vector<16x1xf32>
    %121 = tpu.reciprocal %120 {approx = true} : vector<16x1xf32> -> vector<16x1xf32>
    %122 = vector.broadcast %121 : vector<16x1xf32> to vector<16x8xf32>
    %123 = arith.mulf %118, %122 : vector<16x8xf32>
    %124 = arith.truncf %123 : vector<16x8xf32> to vector<16x8xbf16>
    %cst_42 = arith.constant dense<0.000000e+00> : vector<16x8xf32>
    %125 = tpu.matmul %124, %110, %cst_42 {dimension_numbers = #tpu.dot_dimension_numbers<[1], [0], [0], [1], [0, 0, 1, 1], [], []>} : vector<16x8xbf16>, vector<8x8xbf16>, vector<16x8xf32> -> vector<16x8xf32>
    %126 = arith.truncf %125 : vector<16x8xf32> to vector<16x8xbf16>
    %127 = vector.extract_strided_slice %20 {offsets = [24, 0], sizes = [8, 32], strides = [1, 1]} : vector<32x32xbf16> to vector<8x32xbf16>
    %cst_43 = arith.constant dense<0.000000e+00> : vector<16x32xf32>
    %128 = tpu.matmul %126, %127, %cst_43 {dimension_numbers = #tpu.dot_dimension_numbers<[1], [0], [0], [1], [0, 0, 1, 1], [], []>} : vector<16x8xbf16>, vector<8x32xbf16>, vector<16x32xf32> -> vector<16x32xf32>
    %129 = arith.addf %102, %128 : vector<16x32xf32>
    %c0_44 = arith.constant 0 : index
    %c0_45 = arith.constant 0 : index
    %130 = vector.load %arg9[%c0_44, %c0_45] : memref<1x32xf32, #tpu.memory_space<vmem>>, vector<1x32xf32>
    %131 = vector.broadcast %130 : vector<1x32xf32> to vector<16x32xf32>
    %132 = arith.addf %129, %131 : vector<16x32xf32>
    %133 = arith.addf %132, %1 : vector<16x32xf32>
    %c0_46 = arith.constant 0 : index
    %c0_47 = arith.constant 0 : index
    %134 = vector.load %arg10[%c0_46, %c0_47] : memref<1x32xf32, #tpu.memory_space<vmem>>, vector<1x32xf32>
    %c0_48 = arith.constant 0 : index
    %c0_49 = arith.constant 0 : index
    %135 = vector.load %arg11[%c0_48, %c0_49] : memref<1x32xf32, #tpu.memory_space<vmem>>, vector<1x32xf32>
    %cst_50 = arith.constant dense<0.000000e+00> : vector<16xf32>
    %136 = vector.multi_reduction <add>, %133, %cst_50 [1] : vector<16x32xf32> to vector<16xf32>
    %137 = vector.shape_cast %136 : vector<16xf32> to vector<16x1xf32>
    %cst_51 = arith.constant 3.200000e+01 : f32
    %138 = vector.broadcast %cst_51 : f32 to vector<16x1xf32>
    %139 = arith.divf %137, %138 : vector<16x1xf32>
    %140 = vector.broadcast %139 : vector<16x1xf32> to vector<16x32xf32>
    %141 = arith.subf %133, %140 : vector<16x32xf32>
    %142 = arith.mulf %141, %141 : vector<16x32xf32>
    %cst_52 = arith.constant dense<0.000000e+00> : vector<16xf32>
    %143 = vector.multi_reduction <add>, %142, %cst_52 [1] : vector<16x32xf32> to vector<16xf32>
    %144 = vector.shape_cast %143 : vector<16xf32> to vector<16x1xf32>
    %cst_53 = arith.constant 3.200000e+01 : f32
    %145 = vector.broadcast %cst_53 : f32 to vector<16x1xf32>
    %146 = arith.divf %144, %145 : vector<16x1xf32>
    %147 = vector.broadcast %139 : vector<16x1xf32> to vector<16x32xf32>
    %148 = arith.subf %133, %147 : vector<16x32xf32>
    %cst_54 = arith.constant 9.99999997E-7 : f32
    %149 = vector.broadcast %cst_54 : f32 to vector<16x1xf32>
    %150 = arith.addf %146, %149 : vector<16x1xf32>
    %151 = math.rsqrt %150 : vector<16x1xf32>
    %152 = vector.broadcast %151 : vector<16x1xf32> to vector<16x32xf32>
    %153 = arith.mulf %148, %152 : vector<16x32xf32>
    %154 = vector.broadcast %134 : vector<1x32xf32> to vector<16x32xf32>
    %155 = arith.mulf %153, %154 : vector<16x32xf32>
    %156 = vector.broadcast %135 : vector<1x32xf32> to vector<16x32xf32>
    %157 = arith.addf %155, %156 : vector<16x32xf32>
    %c0_55 = arith.constant 0 : index
    %c0_56 = arith.constant 0 : index
    %158 = vector.load %arg12[%c0_55, %c0_56] : memref<32x128xbf16, #tpu.memory_space<vmem>>, vector<32x128xbf16>
    %c0_57 = arith.constant 0 : index
    %c0_58 = arith.constant 0 : index
    %159 = vector.load %arg13[%c0_57, %c0_58] : memref<1x128xf32, #tpu.memory_space<vmem>>, vector<1x128xf32>
    %160 = arith.truncf %157 : vector<16x32xf32> to vector<16x32xbf16>
    %cst_59 = arith.constant dense<0.000000e+00> : vector<16x128xf32>
    %161 = tpu.matmul %160, %158, %cst_59 {dimension_numbers = #tpu.dot_dimension_numbers<[1], [0], [0], [1], [0, 0, 1, 1], [], []>} : vector<16x32xbf16>, vector<32x128xbf16>, vector<16x128xf32> -> vector<16x128xf32>
    %162 = vector.broadcast %159 : vector<1x128xf32> to vector<16x128xf32>
    %163 = arith.addf %161, %162 : vector<16x128xf32>
    %cst_60 = arith.constant 5.000000e-01 : f32
    %164 = vector.broadcast %cst_60 : f32 to vector<16x128xf32>
    %165 = arith.mulf %163, %164 : vector<16x128xf32>
    %cst_61 = arith.constant 1.41421354 : f32
    %166 = vector.broadcast %cst_61 : f32 to vector<16x128xf32>
    %167 = arith.divf %163, %166 : vector<16x128xf32>
    %cst_62 = arith.constant 0.000000e+00 : f32
    %168 = vector.broadcast %cst_62 : f32 to vector<16x128xf32>
    %169 = arith.cmpf oge, %167, %168 : vector<16x128xf32>
    %cst_63 = arith.constant 1.000000e+00 : f32
    %cst_64 = arith.constant -1.000000e+00 : f32
    %170 = vector.broadcast %cst_63 : f32 to vector<16x128xf32>
    %171 = vector.broadcast %cst_64 : f32 to vector<16x128xf32>
    %172 = arith.select %169, %170, %171 : vector<16x128xi1>, vector<16x128xf32>
    %173 = math.absf %167 : vector<16x128xf32>
    %cst_65 = arith.constant 0.327591091 : f32
    %174 = vector.broadcast %cst_65 : f32 to vector<16x128xf32>
    %175 = arith.mulf %174, %173 : vector<16x128xf32>
    %cst_66 = arith.constant 1.000000e+00 : f32
    %176 = vector.broadcast %cst_66 : f32 to vector<16x128xf32>
    %177 = arith.addf %176, %175 : vector<16x128xf32>
    %cst_67 = arith.constant 1.000000e+00 : f32
    %178 = vector.broadcast %cst_67 : f32 to vector<16x128xf32>
    %179 = arith.divf %178, %177 : vector<16x128xf32>
    %cst_68 = arith.constant 1.06140542 : f32
    %180 = vector.broadcast %cst_68 : f32 to vector<16x128xf32>
    %181 = arith.mulf %180, %179 : vector<16x128xf32>
    %cst_69 = arith.constant -1.45315206 : f32
    %182 = vector.broadcast %cst_69 : f32 to vector<16x128xf32>
    %183 = arith.addf %181, %182 : vector<16x128xf32>
    %184 = arith.mulf %183, %179 : vector<16x128xf32>
    %cst_70 = arith.constant 1.42141378 : f32
    %185 = vector.broadcast %cst_70 : f32 to vector<16x128xf32>
    %186 = arith.addf %184, %185 : vector<16x128xf32>
    %187 = arith.mulf %186, %179 : vector<16x128xf32>
    %cst_71 = arith.constant -0.284496725 : f32
    %188 = vector.broadcast %cst_71 : f32 to vector<16x128xf32>
    %189 = arith.addf %187, %188 : vector<16x128xf32>
    %190 = arith.mulf %189, %179 : vector<16x128xf32>
    %cst_72 = arith.constant 0.254829586 : f32
    %191 = vector.broadcast %cst_72 : f32 to vector<16x128xf32>
    %192 = arith.addf %190, %191 : vector<16x128xf32>
    %193 = arith.mulf %192, %179 : vector<16x128xf32>
    %cst_73 = arith.constant 0.000000e+00 : f32
    %194 = vector.broadcast %cst_73 : f32 to vector<16x128xf32>
    %195 = arith.subf %194, %173 : vector<16x128xf32>
    %196 = arith.mulf %195, %173 : vector<16x128xf32>
    %197 = math.exp %196 : vector<16x128xf32>
    %198 = arith.mulf %193, %197 : vector<16x128xf32>
    %cst_74 = arith.constant 1.000000e+00 : f32
    %199 = vector.broadcast %cst_74 : f32 to vector<16x128xf32>
    %200 = arith.subf %199, %198 : vector<16x128xf32>
    %201 = arith.mulf %172, %200 : vector<16x128xf32>
    %cst_75 = arith.constant 1.000000e+00 : f32
    %202 = vector.broadcast %cst_75 : f32 to vector<16x128xf32>
    %203 = arith.addf %202, %201 : vector<16x128xf32>
    %204 = arith.mulf %165, %203 : vector<16x128xf32>
    %c0_76 = arith.constant 0 : index
    %c0_77 = arith.constant 0 : index
    %205 = vector.load %arg14[%c0_76, %c0_77] : memref<128x32xbf16, #tpu.memory_space<vmem>>, vector<128x32xbf16>
    %c0_78 = arith.constant 0 : index
    %c0_79 = arith.constant 0 : index
    %206 = vector.load %arg15[%c0_78, %c0_79] : memref<1x32xf32, #tpu.memory_space<vmem>>, vector<1x32xf32>
    %207 = arith.truncf %204 : vector<16x128xf32> to vector<16x128xbf16>
    %cst_80 = arith.constant dense<0.000000e+00> : vector<16x32xf32>
    %208 = tpu.matmul %207, %205, %cst_80 {dimension_numbers = #tpu.dot_dimension_numbers<[1], [0], [0], [1], [0, 0, 1, 1], [], []>} : vector<16x128xbf16>, vector<128x32xbf16>, vector<16x32xf32> -> vector<16x32xf32>
    %209 = vector.broadcast %206 : vector<1x32xf32> to vector<16x32xf32>
    %210 = arith.addf %208, %209 : vector<16x32xf32>
    %211 = arith.addf %210, %157 : vector<16x32xf32>
    %c0_81 = arith.constant 0 : index
    %c0_82 = arith.constant 0 : index
    %212 = vector.load %arg16[%c0_81, %c0_82] : memref<1x32xf32, #tpu.memory_space<vmem>>, vector<1x32xf32>
    %c0_83 = arith.constant 0 : index
    %c0_84 = arith.constant 0 : index
    %213 = vector.load %arg17[%c0_83, %c0_84] : memref<1x32xf32, #tpu.memory_space<vmem>>, vector<1x32xf32>
    %cst_85 = arith.constant dense<0.000000e+00> : vector<16xf32>
    %214 = vector.multi_reduction <add>, %211, %cst_85 [1] : vector<16x32xf32> to vector<16xf32>
    %215 = vector.shape_cast %214 : vector<16xf32> to vector<16x1xf32>
    %cst_86 = arith.constant 3.200000e+01 : f32
    %216 = vector.broadcast %cst_86 : f32 to vector<16x1xf32>
    %217 = arith.divf %215, %216 : vector<16x1xf32>
    %218 = vector.broadcast %217 : vector<16x1xf32> to vector<16x32xf32>
    %219 = arith.subf %211, %218 : vector<16x32xf32>
    %220 = arith.mulf %219, %219 : vector<16x32xf32>
    %cst_87 = arith.constant dense<0.000000e+00> : vector<16xf32>
    %221 = vector.multi_reduction <add>, %220, %cst_87 [1] : vector<16x32xf32> to vector<16xf32>
    %222 = vector.shape_cast %221 : vector<16xf32> to vector<16x1xf32>
    %cst_88 = arith.constant 3.200000e+01 : f32
    %223 = vector.broadcast %cst_88 : f32 to vector<16x1xf32>
    %224 = arith.divf %222, %223 : vector<16x1xf32>
    %225 = vector.broadcast %217 : vector<16x1xf32> to vector<16x32xf32>
    %226 = arith.subf %211, %225 : vector<16x32xf32>
    %cst_89 = arith.constant 9.99999997E-7 : f32
    %227 = vector.broadcast %cst_89 : f32 to vector<16x1xf32>
    %228 = arith.addf %224, %227 : vector<16x1xf32>
    %229 = math.rsqrt %228 : vector<16x1xf32>
    %230 = vector.broadcast %229 : vector<16x1xf32> to vector<16x32xf32>
    %231 = arith.mulf %226, %230 : vector<16x32xf32>
    %232 = vector.broadcast %212 : vector<1x32xf32> to vector<16x32xf32>
    %233 = arith.mulf %231, %232 : vector<16x32xf32>
    %234 = vector.broadcast %213 : vector<1x32xf32> to vector<16x32xf32>
    %235 = arith.addf %233, %234 : vector<16x32xf32>
    %c0_90 = arith.constant 0 : index
    %c0_91 = arith.constant 0 : index
    %c0_92 = arith.constant 0 : index
    %236 = vector.load %arg18[%c0_90, %c0_91, %c0_92] : memref<1x16x32xf32, #tpu.memory_space<vmem>>, vector<1x16x32xf32>
    %237 = vector.shape_cast %236 : vector<1x16x32xf32> to vector<16x32xf32>
    %238 = vector.shape_cast %235 : vector<16x32xf32> to vector<1x16x32xf32>
    tpu.vector_store %arg18[%c0_90, %c0_91, %c0_92], %238 {strides = array<i32>} : memref<1x16x32xf32, #tpu.memory_space<vmem>>, vector<1x16x32xf32>,
    return
  }
  func.func @transform_0(%arg0: i32) -> (i32, i32, i32) {
    %c0_i32 = arith.constant 0 : i32
    %c0_i32_0 = arith.constant 0 : i32
    %c0_i32_1 = arith.constant 0 : i32
    return %arg0, %c0_i32, %c0_i32_0 : i32, i32, i32
  }
  func.func @transform_1(%arg0: i32) -> (i32, i32, i32) {
    %c0_i32 = arith.constant 0 : i32
    %c0_i32_0 = arith.constant 0 : i32
    %c0_i32_1 = arith.constant 0 : i32
    return %arg0, %c0_i32, %c0_i32_0 : i32, i32, i32
  }
  func.func @transform_2(%arg0: i32) -> (i32, i32, i32) {
    %c0_i32 = arith.constant 0 : i32
    %c0_i32_0 = arith.constant 0 : i32
    %c0_i32_1 = arith.constant 0 : i32
    return %arg0, %c0_i32, %c0_i32_0 : i32, i32, i32
  }
  func.func @transform_3(%arg0: i32) -> (i32, i32) {
    %c0_i32 = arith.constant 0 : i32
    %c0_i32_0 = arith.constant 0 : i32
    %c0_i32_1 = arith.constant 0 : i32
    return %c0_i32, %c0_i32_0 : i32, i32
  }
  func.func @transform_4(%arg0: i32) -> (i32, i32) {
    %c0_i32 = arith.constant 0 : i32
    %c0_i32_0 = arith.constant 0 : i32
    %c0_i32_1 = arith.constant 0 : i32
    return %c0_i32, %c0_i32_0 : i32, i32
  }
  func.func @transform_5(%arg0: i32) -> (i32, i32) {
    %c0_i32 = arith.constant 0 : i32
    %c0_i32_0 = arith.constant 0 : i32
    %c0_i32_1 = arith.constant 0 : i32
    return %c0_i32, %c0_i32_0 : i32, i32
  }
  func.func @transform_6(%arg0: i32) -> (i32, i32) {
    %c0_i32 = arith.constant 0 : i32
    %c0_i32_0 = arith.constant 0 : i32
    %c0_i32_1 = arith.constant 0 : i32
    return %c0_i32, %c0_i32_0 : i32, i32
  }
  func.func @transform_7(%arg0: i32) -> (i32, i32) {
    %c0_i32 = arith.constant 0 : i32
    %c0_i32_0 = arith.constant 0 : i32
    %c0_i32_1 = arith.constant 0 : i32
    return %c0_i32, %c0_i32_0 : i32, i32
  }
  func.func @transform_8(%arg0: i32) -> (i32, i32) {
    %c0_i32 = arith.constant 0 : i32
    %c0_i32_0 = arith.constant 0 : i32
    %c0_i32_1 = arith.constant 0 : i32
    return %c0_i32, %c0_i32_0 : i32, i32
  }
  func.func @transform_9(%arg0: i32) -> (i32, i32) {
    %c0_i32 = arith.constant 0 : i32
    %c0_i32_0 = arith.constant 0 : i32
    %c0_i32_1 = arith.constant 0 : i32
    return %c0_i32, %c0_i32_0 : i32, i32
  }
  func.func @transform_10(%arg0: i32) -> (i32, i32) {
    %c0_i32 = arith.constant 0 : i32
    %c0_i32_0 = arith.constant 0 : i32
    %c0_i32_1 = arith.constant 0 : i32
    return %c0_i32, %c0_i32_0 : i32, i32
  }
  func.func @transform_11(%arg0: i32) -> (i32, i32) {
    %c0_i32 = arith.constant 0 : i32
    %c0_i32_0 = arith.constant 0 : i32
    %c0_i32_1 = arith.constant 0 : i32
    return %c0_i32, %c0_i32_0 : i32, i32
  }
  func.func @transform_12(%arg0: i32) -> (i32, i32) {
    %c0_i32 = arith.constant 0 : i32
    %c0_i32_0 = arith.constant 0 : i32
    %c0_i32_1 = arith.constant 0 : i32
    return %c0_i32, %c0_i32_0 : i32, i32
  }
  func.func @transform_13(%arg0: i32) -> (i32, i32) {
    %c0_i32 = arith.constant 0 : i32
    %c0_i32_0 = arith.constant 0 : i32
    %c0_i32_1 = arith.constant 0 : i32
    return %c0_i32, %c0_i32_0 : i32, i32
  }
  func.func @transform_14(%arg0: i32) -> (i32, i32) {
    %c0_i32 = arith.constant 0 : i32
    %c0_i32_0 = arith.constant 0 : i32
    %c0_i32_1 = arith.constant 0 : i32
    return %c0_i32, %c0_i32_0 : i32, i32
  }
  func.func @transform_15(%arg0: i32) -> (i32, i32) {
    %c0_i32 = arith.constant 0 : i32
    %c0_i32_0 = arith.constant 0 : i32
    %c0_i32_1 = arith.constant 0 : i32
    return %c0_i32, %c0_i32_0 : i32, i32
  }
  func.func @transform_16(%arg0: i32) -> (i32, i32) {
    %c0_i32 = arith.constant 0 : i32
    %c0_i32_0 = arith.constant 0 : i32
    %c0_i32_1 = arith.constant 0 : i32
    return %c0_i32, %c0_i32_0 : i32, i32
  }
  func.func @transform_17(%arg0: i32) -> (i32, i32, i32) {
    %c0_i32 = arith.constant 0 : i32
    %c0_i32_0 = arith.constant 0 : i32
    %c0_i32_1 = arith.constant 0 : i32
    return %arg0, %c0_i32, %c0_i32_0 : i32, i32, i32
  }
}

</mosaic_0001>

<bundles_post_ra>
// kernel: socml_forward.6
= control target key start
LH: loop header
LB: loop body
LE: loop exit
PB: predicated region body
PF: predicated region fallthrough
CT: control target
= control target key end

     0   :  { %s2509_s0 = inlined_call_operand.vmem [shape: f32[2,8,32], index: 0, kind: input, shape index: {}]   ;;  %s2510_s1 = inlined_call_operand.vmem [shape: f32[2,16,32], index: 1, kind: input, shape index: {}]   ;;  %s2511_s2 = inlined_call_operand.vmem [shape: f32[2,1,16], index: 2, kind: input, shape index: {}]   ;;  %s2512_s3 = inlined_call_operand.vmem [shape: bf16[32,32], index: 3, kind: input, shape index: {}]   ;;  %s2513_s4 = inlined_call_operand.vmem [shape: f32[1,32], index: 4, kind: input, shape index: {}]   ;;  %s2514_s5 = inlined_call_operand.vmem [shape: bf16[32,64], index: 5, kind: input, shape index: {}]   ;;  %s2515_s6 = inlined_call_operand.vmem [shape: f32[1,64], index: 6, kind: input, shape index: {}]   ;;  %s2516_s7 = inlined_call_operand.vmem [shape: bf16[32,32], index: 7, kind: input, shape index: {}]   ;;  %s2517_s8 = inlined_call_operand.vmem [shape: f32[1,32], index: 8, kind: input, shape index: {}]   ;;  %s2518_s9 = inlined_call_operand.vmem [shape: f32[1,32], index: 9, kind: input, shape index: {}]   ;;  %s2519_s10 = inlined_call_operand.vmem [shape: f32[1,32], index: 10, kind: input, shape index: {}]   ;;  %s2520_s11 = inlined_call_operand.vmem [shape: bf16[32,128], index: 11, kind: input, shape index: {}]   ;;  %s2521_s12 = inlined_call_operand.vmem [shape: f32[1,128], index: 12, kind: input, shape index: {}]   ;;  %s2522_s13 = inlined_call_operand.vmem [shape: bf16[128,32], index: 13, kind: input, shape index: {}]   ;;  %s2523_s14 = inlined_call_operand.vmem [shape: f32[1,32], index: 14, kind: input, shape index: {}]   ;;  %s2524_s15 = inlined_call_operand.vmem [shape: f32[1,32], index: 15, kind: input, shape index: {}]   ;;  %s2525_s16 = inlined_call_operand.vmem [shape: f32[1,32], index: 16, kind: input, shape index: {}]   ;;  %s2526_s17 = inlined_call_operand.hbm [shape: f32[2,8,32], index: 17, kind: output, shape index: {}]  }
   0x1   :  { %2534 = sst [smem:[#allocation11_spill]] %s2509_s0 }
   0x2   :  { %2535 = sst [smem:[#allocation12_spill]] %s2510_s1 }
   0x3   :  { %2536 = sst [smem:[#allocation13_spill]] %s2512_s3 }
   0x4   :  { %2537 = sst [smem:[#allocation14_spill]] %s2525_s16 }
   0x5   :  { %2538 = sst [smem:[#allocation15_spill]] %s2526_s17 }
   0x6   :  { %22 = vsyncpa [#allocation3], 0 }
   0x7   :  { %24 = vsyncpa [#allocation3 + $0x1], 0  ;;  %s2188_s24 = smov 0   ;;  %s2190_s25 = smov 0  }
   0x8   :  { %s2192_s26 = smov 0   ;;  %s2194_s27 = smov 0  }
   0x9 LB: > { %2539 = sst [smem:[#allocation5_spill]] %s2073_s24  ;;  %s2209_s28 = sadd.s32 4294967295, %s2085_s27   ;;  %s2085_s27 = sphi %s2194_s27, %s2556_s27   ;;  %s2081_s26 = sphi %s2192_s26, %s2558_s26   ;;  %s2077_s25 = sphi %s2190_s25, %s2560_s25   ;;  %s2073_s24 = sphi %s2188_s24, %s2559_s24  }
   0xa   : > { %2540 = sst [smem:[#allocation6_spill]] %s2081_s26  ;;  %s1726_s29 = sadd.s32 4294967294, %s2085_s27  }
   0xb   : > { %2541 = sst [smem:[#allocation7_spill]] %s2085_s27  ;;  %s2213_s0 = sadd.s32 1, %s2085_s27  }
   0xc   : > { %2542 = sst [smem:[#allocation8_spill]] %s2213_s0  ;;  %s409_s30 = sadd.s32 1, %s2081_s26 }
   0xd   : > { %s406_s18 = ssub.s32 %s2085_s27, %s2213_s0  ;;  %p419_p0 = scmp.ne.s32.totalorder %s2081_s26, %s2077_s25 }
   0xe   : > { %p407_p1 = scmp.eq.s32.totalorder %s406_s18, 0  ;;  %p420_p2 = scmp.eq.s32.totalorder %s2209_s28, 1 }
   0xf   : > { %p425_p3 = scmp.ne.s32.totalorder %s2077_s25, %s2073_s24  ;;  %p426_p4 = scmp.eq.s32.totalorder %s1726_s29, 1 }
  0x10   : > { %s2224_s19 = scalar_select %p407_p1, %s2081_s26, %s409_s30  }
  0x11   : > { %p2226_p5 = por %p420_p2, %p419_p0  ;;  %p2230_p6 = por %p426_p4, %p425_p3 }
  0x12   : > { %2543 = sst [smem:[#allocation9_spill]] %s2224_s19  ;;  %p1729_p7 = scmp.ge.s32.totalorder %s2085_s27, 1 }
  0x13   : > { %s2545_s20 = scalar_select %p2230_p6, 1, 0 }
  0x14   : > { %p507_p8 = scmp.lt.s32.totalorder %s2085_s27, 3 }
  0x15   : > { %2546 = sst [smem:[#allocation10_spill]] %s2545_s20 }
  0x16   : > { %p508_p9 = pnand %p1729_p7, %p507_p8 }
  0x17   : > { %s2547_s3 = sld [smem:[#allocation13_spill]] (!%p508_p9)  ;;  %v2087_v1 = vmov (!%p508_p9), 0.0   ;;  %vm2088_vm0 = vmmov (!%p508_p9), 0   ;;  %p566_p10 = scmp.lt.s32.totalorder (!%p508_p9), %s2209_s28, 1  ;;  %vm607_vm1 = vcmask (!%p508_p9), 261120   ;;  %v1987_v4 = vld [vmem:[%s2514_s5] sm:$0xff] (!%p508_p9)  }
  0x18   : > { %511 = sbr.rel (%p508_p9) target bundleno = 3760 (0xeb0), region = 88  ;;  %1820 = vmatprep.subr.bf16.mxu0 (!%p508_p9), %v2087_v1  ;;  %1842 = vmatprep.subr.bf16.mxu1 (!%p508_p9), %v2087_v1  ;;  %s2548_s29 = sld [smem:[#allocation11_spill]] (!%p508_p9)  ;;  %v1988_v6 = vld [vmem:[%s2514_s5 + $0x8] sm:$0xff] (!%p508_p9)   ;;  %v1734_v14 = vld [vmem:[%s2513_s4] ss:$0 sm:$0xff] (!%p508_p9)  ;;  %vm732_vm2 = vcmask (!%p508_p9), 64512  }
  0x19   : > { %1824 = vmatprep.mubr.msk.bf16.mxu0 (!%p508_p9), %vm2088_vm0, %v2087_v1  ;;  %1844 = vmatprep.mubr.msk.bf16.mxu1 (!%p508_p9), %vm2088_vm0, %v2087_v1  ;;  %s2549_s0 = sld [smem:[#allocation12_spill]] (!%p508_p9)  ;;  %v1738_v15 = vld [vmem:[%s2515_s6] ss:$0 sm:$0xff] (!%p508_p9)  ;;  %s2089_s26 = smov (!%p508_p9), 120   ;;  %vm779_vm3 = vcmask (!%p508_p9), 130048   ;;  %vm953_vm4 = vcmask (!%p508_p9), 1043456  }
  0x1a   : > { %v720_v58 = vld [vmem:[%s2516_s7 + $0x4] sm:$0xf] (!%p508_p9)  ;;  %v719_v63 = vld [vmem:[%s2516_s7] sm:$0xf] (!%p508_p9)  ;;  %s2094_s16 = smov (!%p508_p9), 104   ;;  %s2550_s23 = sld [smem:[#allocation14_spill]] (!%p508_p9) }
  0x1b   : > { %v955_v59 = vsel (!%p508_p9), %vm953_vm4, %v720_v58, 0 }
  0x1d   : > { %v1985_v0 = vld [vmem:[%s2547_s3] sm:$0xff] (!%p508_p9)   ;;  %v1986_v2 = vld [vmem:[%s2547_s3 + $0x8] sm:$0xff] (!%p508_p9)  }
  0x1e   : > { %1821 = vmatpush3.bf16.msra.mxu0 (!%p508_p9), %v1985_v0 }
  0x1f   : > { %1822 = vmatprep.subr.bf16.mxu0 %v2087_v1  ;;  %s2251_s30 = scalar_select %p566_p10, %s2209_s28, 1 }
  0x21   : > { %s1731_s18 = sshll.u32 %s2251_s30, 3  ;;  %s1777_s21 = sshll.u32 %s2251_s30, 4 }
  0x22   : > { %1823 = vmatpush3.bf16.msra.mxu0 %v1986_v2  ;;  %s569_s3 = scalar_lea.vmem %s2548_s29, %s1731_s18  ;;  %s574_s20 = scalar_lea.vmem %s2549_s0, %s1777_s21 }
  0x23   : > { %1828 = vmatprep.subr.bf16.mxu0 %v2087_v1  ;;  %v2262_v3 = vld [vmem:[%s569_s3] sm:$0xff]  ;;  %v581_v8 = vld [vmem:[%s574_s20 + $0x8] sm:$0xff]  ;;  %s577_s19 = scalar_lea.vmem %s2511_s2, %s2251_s30  ;;  %s2091_s30 = smov 88  }
  0x24   : > { %v588_v5 = vpack.c.bf16 %v2262_v3, %v2262_v3  ;;  %v580_v7 = vld [vmem:[%s574_s20] sm:$0xff]  ;;  %s2090_s20 = smov 96   ;;  %s2092_s18 = smov 112  }
  0x25   : > { %v656_v9 = vpack.c.bf16 %v581_v8, %v580_v7  ;;  %v2308_v30 = vld [vmem:[%s577_s19] ss:$0 sm:$0xff]  ;;  %s2093_s3 = smov 80   ;;  %s563_s19 = sand.u32 1, %s2077_s25  }
  0x26   : > { %1825 = vmatmul.mubr.msk.bf16.vlgmr.msra.gmra.mrb[0].mxu0 %vm607_vm1, %v588_v5  ;;  %s1774_s29 = sshll.u32 %s2209_s28, 7  ;;  %s2097_s28 = smov [#allocation2]  }
  0x27   : > { %1829 = vmatpush3.bf16.msra.mxu0 %v1987_v4  ;;  %1832 = vmatprep.mubr.msk.bf16.mxu0 %vm2088_vm0, %v2087_v1  ;;  %v1001_v4 = vsel %vm953_vm4, %v719_v63, 0 }
  0x28   : > { %1830 = vmatprep.subr.bf16.mxu0 %v2087_v1 }
  0x2b   : > { %1831 = vmatpush3.bf16.msra.mxu0 %v1988_v6 }
  0x2c   : > { %1836 = vmatprep.subr.bf16.mxu0 %v2087_v1 }
  0x2e   : > { %1833 = vmatmul.mubr.msk.bf16.vlgmr.msra.gmra.mrb[4].mxu0 %vm607_vm1, %v656_v9 }
  0x2f   : > { %1838 = vmatprep.mubr.msk.bf16.mxu0 %vm2088_vm0, %v2087_v1 }
  0xf9   : > { %v645_v10 = vpop.f32.mrb[0].mxu0 }
  0xfa   : > { %v1826_v11 = vpop.f32.mrb[1].mxu0  ;;  %v646_v17 = vadd.f32 %v1734_v14, %v645_v10 }
  0xfb   : > { %v648_v12 = vpop.f32.mrb[2].mxu0 }
  0xfc   : > { %v1827_v13 = vpop.f32.mrb[3].mxu0  ;;  %v723_v23 = vmul.f32 0.35355338, %v646_v17 }
  0xfe   : > { %v2291_v26 = vpack.c.bf16 %v723_v23, %v723_v23 }
 0x101   : > { %v712_v16 = vpop.f32.mrb[4].mxu0 }
 0x102   : > { %v1834_v18 = vpop.f32.mrb[5].mxu0  ;;  %v713_v20 = vadd.f32 %v1738_v15, %v712_v16 }
 0x103   : > { %v715_v19 = vpop.f32.mrb[6].mxu0 }
 0x104   : > { %v716_v21 = vadd.f32 %v1738_v15, %v715_v19  ;;  %v1835_v22 = vpop.f32.mrb[7].mxu0 }
 0x106   : > { %v2286_v24 = vpack.c.bf16 %v716_v21, %v713_v20 }
 0x108   : > { %843 = vrot.lane.b32.xlu0 %v2286_v24, %s2089_s26  ;;  %v737_v25 = vsel %vm732_vm2, %v2286_v24, 0 }
 0x109   : > { %1837 = vmatpush3.bf16.xpose.msra.mxu0 %v737_v25 }
 0x10a   : > { %1848 = vmatprep.subr.bf16.mxu0 %v2087_v1 }
 0x10c   : > { %841 = vrot.lane.b32.xlu0 %v2291_v26, %s2089_s26  ;;  %s2095_s26 = smov 72  }
 0x110   : > { %1839 = vmatmul.mubr.msk.bf16.vlgmr.msra.gmra.mrb[8].mxu0 %vm732_vm2, %v2291_v26 }
 0x111   : > { %1850 = vmatprep.mubr.msk.bf16.mxu0 %vm2088_vm0, %v2087_v1 }
 0x17a   : > { %v844_v27 = vpop.permute.xlu0 %843 }
 0x17b   : > { %v849_v28 = vsel %vm732_vm2, %v844_v27, 0 }
 0x17c   : > { %1849 = vmatpush3.bf16.xpose.msra.mxu0 %v849_v28 }
 0x17d   : > { %1860 = vmatprep.subr.bf16.mxu0 %v2087_v1 }
 0x17e   : > { %v842_v29 = vpop.permute.xlu0 %841 }
 0x183   : > { %1851 = vmatmul.mubr.msk.bf16.vlgmr.msra.gmra.mrb[12].mxu0 %vm732_vm2, %v842_v29 }
 0x184   : > { %1862 = vmatprep.mubr.msk.bf16.mxu0 %vm2088_vm0, %v2087_v1  ;;  %1861 = vmatpush3.bf16.msra.mxu0 %v955_v59 }
 0x185   : > { %1872 = vmatprep.subr.bf16.mxu0 %v2087_v1 }
 0x1e3   : > { %v773_v31 = vpop.f32.mrb[8].mxu0 }
 0x1e4   : > { %v774_v32 = vadd.f32 %v2308_v30, %v773_v31  ;;  %v1840_v33 = vpop.f32.mrb[9].mxu0 }
 0x1e5   : > { %v776_v34 = vpop.f32.mrb[10].mxu0 }
 0x1e6   : > { %v1841_v35 = vpop.f32.mrb[11].mxu0  ;;  %v780_v36 = vsel %vm779_vm3, %v774_v32, -inf }
 0x1e7   : > { %781 = vmax.xlane.f32.xlu1 %v780_v36 }
 0x256   : > { %v885_v37 = vpop.f32.mrb[12].mxu0 }
 0x257   : > { %v886_v38 = vadd.f32 %v2308_v30, %v885_v37  ;;  %v1852_v39 = vpop.f32.mrb[13].mxu0 }
 0x258   : > { %v888_v40 = vpop.f32.mrb[14].mxu0 }
 0x259   : > { %v1853_v41 = vpop.f32.mrb[15].mxu0  ;;  %v891_v42 = vsel %vm779_vm3, %v886_v38, -inf }
 0x25a   : > { %892 = vmax.xlane.f32.xlu1 %v891_v42 }
 0x26b   : > { %793 = vrot.lane.b32.xlu1 %v2286_v24, %s2090_s20  ;;  %s1730_s20 = sshll.u32 %s563_s19, 3 }
 0x274   : > { %v782_v43 = vpop.xlane.xlu1 %781 }
 0x275   : > { %v783_v44 = vsub.f32 %v774_v32, %v782_v43 }
 0x277   : > { %v784_v45 = vmul.f32 1.442695, %v783_v44 }
 0x279   : > { %1999 = vpow2.f32 %v784_v45 }
 0x283   : > { %v2000_v46 = vpop.eup %1999 }
 0x284   : > { %v786_v47 = vsel %vm779_vm3, %v2000_v46, 0.0 }
 0x285   : > { %787 = vadd.xlane.f32.xlu0 %v786_v47 }
 0x2e7   : > { %v893_v48 = vpop.xlane.xlu1 %892 }
 0x2e8   : > { %v894_v49 = vsub.f32 %v886_v38, %v893_v48  ;;  %v721_v48 = vld [vmem:[%s2516_s7 + $0x8] sm:$0xf] }
 0x2ea   : > { %v895_v50 = vmul.f32 1.442695, %v894_v49  ;;  %v1156_v49 = vsel %vm953_vm4, %v721_v48, 0  ;;  %v1993_v48 = vld [vmem:[%s2522_s13 + $0x10] sm:$0xff]  }
 0x2eb   : > { %v794_v51 = vpop.permute.xlu1 %793 }
 0x2ec   : > { %2001 = vpow2.f32 %v895_v50  ;;  %1843 = vmatpush3.bf16.msra.mxu1 %v794_v51 }
 0x2ed   : > { %1854 = vmatprep.subr.bf16.mxu1 %v2087_v1 }
 0x2f6   : > { %v2002_v52 = vpop.eup %2001 }
 0x2f7   : > { %v897_v53 = vsel %vm779_vm3, %v2002_v52, 0.0 }
 0x2f8   : > { %898 = vadd.xlane.f32.xlu1 %v897_v53 }
 0x309   : > { %903 = vrot.lane.b32.xlu1 %v2286_v24, %s2091_s30  ;;  %s1633_s30 = scalar_lea.sflag [#allocation3], %s563_s19 }
 0x30d   : > { %1045 = vrot.lane.b32.xlu1 %v2286_v24, %s2092_s18 }
 0x311   : > { %1043 = vrot.lane.b32.xlu1 %v2291_v26, %s2092_s18 }
 0x312   : > { %v788_v54 = vpop.xlane.xlu0 %787 }
 0x313   : > { %2003 = vrcp.f32 %v788_v54 }
 0x31d   : > { %v2004_v55 = vpop.eup %2003 }
 0x31e   : > { %v790_v56 = vmul.f32 %v2004_v55, %v2000_v46 }
 0x320   : > { %v791_v57 = vpack.c.bf16 %v790_v56, %v790_v56 }
 0x322   : > { %1845 = vmatmul.mubr.msk.bf16.vlgmr.msra.gmra.mrb[0].mxu1 %vm779_vm3, %v791_v57 }
 0x323   : > { %1856 = vmatprep.mubr.msk.bf16.mxu1 %vm2088_vm0, %v2087_v1 }
 0x385   : > { %v899_v60 = vpop.xlane.xlu1 %898 }
 0x386   : > { %2005 = vrcp.f32 %v899_v60 }
 0x389   : > { %v904_v61 = vpop.permute.xlu1 %903 }
 0x38a   : > { %1855 = vmatpush3.bf16.msra.mxu1 %v904_v61 }
 0x38b   : > { %1866 = vmatprep.subr.bf16.mxu1 %v2087_v1 }
 0x38d   : > { %v1046_v10 = vpop.permute.xlu1 %1045 }
 0x38e   : > { %v1051_v15 = vsel %vm732_vm2, %v1046_v10, 0 }
 0x390   : > { %v2006_v62 = vpop.eup %2005 }
 0x391   : > { %v901_v0 = vmul.f32 %v2006_v62, %v2002_v52  ;;  %v1044_v17 = vpop.permute.xlu1 %1043 }
 0x393   : > { %v902_v2 = vpack.c.bf16 %v901_v0, %v901_v0 }
 0x395   : > { %1857 = vmatmul.mubr.msk.bf16.vlgmr.msra.gmra.mrb[4].mxu1 %vm779_vm3, %v902_v2 }
 0x396   : > { %1867 = vmatpush3.bf16.msra.mxu1 %v1001_v4  ;;  %1868 = vmatprep.mubr.msk.bf16.mxu1 %vm2088_vm0, %v2087_v1 }
 0x397   : > { %1878 = vmatprep.subr.bf16.mxu1 %v2087_v1 }
 0x3f5   : > { %v833_v5 = vpop.f32.mrb[0].mxu1 }
 0x3f6   : > { %v839_v6 = vpack.c.bf16 %v833_v5, %v833_v5  ;;  %v1846_v7 = vpop.f32.mrb[1].mxu1 }
 0x3f7   : > { %v836_v8 = vpop.f32.mrb[2].mxu1 }
 0x3f8   : > { %v1847_v9 = vpop.f32.mrb[3].mxu1  ;;  %1869 = vmatmul.mubr.msk.bf16.vlgmr.msra.gmra.mrb[8].mxu1 %vm732_vm2, %v839_v6 }
 0x3f9   : > { %1880 = vmatprep.mubr.msk.bf16.mxu1 %vm2088_vm0, %v2087_v1 }
 0x468   : > { %v943_v11 = vpop.f32.mrb[4].mxu1 }
 0x469   : > { %v949_v12 = vpack.c.bf16 %v943_v11, %v943_v11  ;;  %v1858_v13 = vpop.f32.mrb[5].mxu1 }
 0x46a   : > { %v946_v14 = vpop.f32.mrb[6].mxu1 }
 0x46b   : > { %v1859_v16 = vpop.f32.mrb[7].mxu1  ;;  %1863 = vmatmul.mubr.msk.bf16.vlgmr.msra.gmra.mrb[16].mxu0 %vm732_vm2, %v949_v12 }
 0x46c   : > { %1873 = vmatpush3.bf16.xpose.msra.mxu0 %v1051_v15  ;;  %1874 = vmatprep.mubr.msk.bf16.mxu0 %vm2088_vm0, %v2087_v1 }
 0x46d   : > { %1884 = vmatprep.subr.bf16.mxu0 %v2087_v1 }
 0x473   : > { %1875 = vmatmul.mubr.msk.bf16.vlgmr.msra.gmra.mrb[20].mxu0 %vm732_vm2, %v1044_v17 }
 0x474   : > { %1886 = vmatprep.mubr.msk.bf16.mxu0 %vm2088_vm0, %v2087_v1  ;;  %1885 = vmatpush3.bf16.msra.mxu0 %v1156_v49  ;;  %v1994_v49 = vld [vmem:[%s2522_s13 + $0x18] sm:$0xff]  }
 0x475   : > { %1896 = vmatprep.subr.bf16.mxu0 %v2087_v1 }
 0x4cb   : > { %v1037_v18 = vpop.f32.mrb[8].mxu1 }
 0x4cc   : > { %v1870_v19 = vpop.f32.mrb[9].mxu1 }
 0x4cd   : > { %v1040_v20 = vpop.f32.mrb[10].mxu1 }
 0x4ce   : > { %v1871_v21 = vpop.f32.mrb[11].mxu1  ;;  %v1755_v20 = vld [vmem:[%s2517_s8] ss:$0 sm:$0xff] }
 0x53e   : > { %v991_v22 = vpop.f32.mrb[16].mxu0 }
 0x53f   : > { %v2349_v23 = vadd.f32 %v1037_v18, %v991_v22  ;;  %v1864_v25 = vpop.f32.mrb[17].mxu0 }
 0x540   : > { %v994_v27 = vpop.f32.mrb[18].mxu0 }
 0x541   : > { %v1865_v28 = vpop.f32.mrb[19].mxu0 }
 0x546   : > { %v1087_v29 = vpop.f32.mrb[20].mxu0 }
 0x547   : > { %v1088_v31 = vadd.f32 %v2308_v30, %v1087_v29  ;;  %v1876_v32 = vpop.f32.mrb[21].mxu0 }
 0x548   : > { %v1090_v33 = vpop.f32.mrb[22].mxu0 }
 0x549   : > { %v1877_v34 = vpop.f32.mrb[23].mxu0  ;;  %v1093_v35 = vsel %vm779_vm3, %v1088_v31, -inf }
 0x54a   : > { %1094 = vmax.xlane.f32.xlu0 %v1093_v35 }
 0x560   : > { %1105 = vrot.lane.b32.xlu0 %v2286_v24, %s2093_s3  ;;  %s565_s3 = scalar_lea.vmem [#allocation2], %s1730_s20  ;;  %s2027_s20 = sshll.u32 %s2097_s28, 4  ;;  %s2028_s20 = int_to_ptr.vmem [resolvable:$false] %s2027_s20 }
 0x561   : > { %s2029_s21 = scalar_lea.vmem %s2028_s20, 256 }
 0x564   : > { %1201 = vrot.lane.b32.xlu0 %v2286_v24, %s2094_s16 }
 0x568   : > { %1199 = vrot.lane.b32.xlu0 %v2291_v26, %s2094_s16  ;;  %s1646_s16 = sshll.u32 %s565_s3, 4  ;;  %s2468_s16 = int_to_ptr.vmem [resolvable:$true] %s1646_s16 }
 0x569   : > { %s2023_s18 = scalar_lea.vmem %s2468_s16, 128  ;;  %p2030_p0 = scmp.lt.s32.totalorder %s2468_s16, %s2028_s20 }
 0x56a   : > { %p2024_p11 = scmp.ne.s32.totalorder %s2468_s16, %s2023_s18  ;;  %p2031_p1 = scmp.lt.s32.totalorder %s2029_s21, %s2023_s18 }
 0x56c   : > { %p2025_p12 = pnand %p2024_p11, %p2226_p5  ;;  %p2032_p2 = por %p2031_p1, %p2030_p0 }
 0x56e   : > { %p2026_p13 = pneg %p2025_p12 }
 0x570   : > { %p2033_p3 = pnand %p2032_p2, %p2026_p13 }
 0x5d7   : > { %v1095_v36 = vpop.xlane.xlu0 %1094 }
 0x5d8   : > { %v1096_v37 = vsub.f32 %v1088_v31, %v1095_v36  ;;  %v1989_v36 = vld [vmem:[%s2520_s11] sm:$0xff]  }
 0x5da   : > { %v1097_v38 = vmul.f32 1.442695, %v1096_v37  ;;  %v1990_v37 = vld [vmem:[%s2520_s11 + $0x8] sm:$0xff]  }
 0x5db   : > { %v1106_v39 = vpop.permute.xlu0 %1105 }
 0x5dc   : > { %2007 = vpow2.f32 %v1097_v38  ;;  %1879 = vmatpush3.bf16.msra.mxu1 %v1106_v39 }
 0x5dd   : > { %1890 = vmatprep.subr.bf16.mxu1 %v2087_v1 }
 0x5df   : > { %v1202_v45 = vpop.permute.xlu0 %1201 }
 0x5e0   : > { %v1207_v26 = vsel %vm732_vm2, %v1202_v45, 0 }
 0x5e3   : > { %v1200_v47 = vpop.permute.xlu0 %1199 }
 0x5e6   : > { %v2008_v40 = vpop.eup %2007 }
 0x5e7   : > { %v1099_v41 = vsel %vm779_vm3, %v2008_v40, 0.0 }
 0x5e8   : > { %1100 = vadd.xlane.f32.xlu1 %v1099_v41  ;;  %v1756_v41 = vld [vmem:[%s2518_s9] ss:$0 sm:$0xff] }
 0x675   : > { %v1101_v42 = vpop.xlane.xlu1 %1100 }
 0x676   : > { %2009 = vrcp.f32 %v1101_v42 }
 0x680   : > { %v2010_v43 = vpop.eup %2009 }
 0x681   : > { %v1103_v44 = vmul.f32 %v2010_v43, %v2008_v40  ;;  %v1757_v43 = vld [vmem:[%s2519_s10] ss:$0 sm:$0xff] }
 0x683   : > { %v1104_v46 = vpack.c.bf16 %v1103_v44, %v1103_v44 }
 0x685   : > { %1881 = vmatmul.mubr.msk.bf16.vlgmr.msra.gmra.mrb[12].mxu1 %vm779_vm3, %v1104_v46 }
 0x686   : > { %1891 = vmatpush3.bf16.xpose.msra.mxu1 %v1207_v26  ;;  %1892 = vmatprep.mubr.msk.bf16.mxu1 %vm2088_vm0, %v2087_v1  ;;  %v1991_v26 = vld [vmem:[%s2522_s13] sm:$0xff]  }
 0x687   : > { %1902 = vmatprep.subr.bf16.mxu1 %v2087_v1 }
 0x68d   : > { %1893 = vmatmul.mubr.msk.bf16.vlgmr.msra.gmra.mrb[16].mxu1 %vm732_vm2, %v1200_v47  ;;  %v1992_v47 = vld [vmem:[%s2522_s13 + $0x8] sm:$0xff]  }
 0x68e   : > { %1904 = vmatprep.mubr.msk.bf16.mxu1 %vm2088_vm0, %v2087_v1 }
 0x758   : > { %v1145_v50 = vpop.f32.mrb[12].mxu1 }
 0x759   : > { %v1151_v51 = vpack.c.bf16 %v1145_v50, %v1145_v50  ;;  %v1882_v52 = vpop.f32.mrb[13].mxu1  ;;  %v1995_v50 = vld [vmem:[%s2522_s13 + $0x20] sm:$0xff]  }
 0x75a   : > { %v1148_v53 = vpop.f32.mrb[14].mxu1  ;;  %v1997_v52 = vld [vmem:[%s2522_s13 + $0x30] sm:$0xff]  }
 0x75b   : > { %v1883_v54 = vpop.f32.mrb[15].mxu1  ;;  %1887 = vmatmul.mubr.msk.bf16.vlgmr.msra.gmra.mrb[24].mxu0 %vm732_vm2, %v1151_v51  ;;  %v1996_v51 = vld [vmem:[%s2522_s13 + $0x28] sm:$0xff]   ;;  %v1998_v53 = vld [vmem:[%s2522_s13 + $0x38] sm:$0xff]  }
 0x75c   : > { %1898 = vmatprep.mubr.msk.bf16.mxu0 %vm2088_vm0, %v2087_v1  ;;  %v1758_v54 = vld [vmem:[%s2521_s12] ss:$0 sm:$0xff] }
 0x760   : > { %v1243_v55 = vpop.f32.mrb[16].mxu1 }
 0x761   : > { %v1244_v56 = vadd.f32 %v2308_v30, %v1243_v55  ;;  %v1894_v57 = vpop.f32.mrb[17].mxu1  ;;  %v722_v30 = vld [vmem:[%s2516_s7 + $0xc] sm:$0xf] }
 0x762   : > { %v1246_v58 = vpop.f32.mrb[18].mxu1  ;;  %v1312_v4 = vsel %vm953_vm4, %v722_v30, 0 }
 0x763   : > { %v1895_v59 = vpop.f32.mrb[19].mxu1  ;;  %v1249_v60 = vsel %vm779_vm3, %v1244_v56, -inf  ;;  %1903 = vmatpush3.bf16.msra.mxu1 %v1312_v4 }
 0x764   : > { %1250 = vmax.xlane.f32.xlu0 %v1249_v60  ;;  %1916 = vmatprep.subr.bf16.mxu1 %v2087_v1 }
 0x7f1   : > { %v1251_v61 = vpop.xlane.xlu0 %1250 }
 0x7f2   : > { %v1252_v62 = vsub.f32 %v1244_v56, %v1251_v61 }
 0x7f4   : > { %v1253_v63 = vmul.f32 1.442695, %v1252_v62 }
 0x7f6   : > { %2011 = vpow2.f32 %v1253_v63 }
 0x800   : > { %v2012_v0 = vpop.eup %2011 }
 0x801   : > { %v1255_v2 = vsel %vm779_vm3, %v2012_v0, 0.0 }
 0x802   : > { %1256 = vadd.xlane.f32.xlu1 %v1255_v2 }
 0x813   : > { %1261 = vrot.lane.b32.xlu1 %v2286_v24, %s2095_s26  ;;  %s2551_s26 = sld [smem:[#allocation15_spill]] }
 0x819   : > { %s2552_s0 = smov %s2551_s26  ;;  %s2466_s27 = scalar_lea.hbm %s2551_s26, %s1774_s29 }
 0x82e   : > { %v1192_v5 = vpop.f32.mrb[24].mxu0 }
 0x82f   : > { %v1198_v6 = vadd.f32 %v1192_v5, %v2349_v23  ;;  %v1888_v7 = vpop.f32.mrb[25].mxu0 }
 0x830   : > { %v1195_v8 = vpop.f32.mrb[26].mxu0 }
 0x831   : > { %v1889_v9 = vpop.f32.mrb[27].mxu0 }
 0x88f   : > { %v1257_v10 = vpop.xlane.xlu1 %1256 }
 0x890   : > { %2013 = vrcp.f32 %v1257_v10 }
 0x893   : > { %v1262_v11 = vpop.permute.xlu1 %1261 }
 0x894   : > { %1897 = vmatpush3.bf16.msra.mxu0 %v1262_v11 }
 0x895   : > { %1908 = vmatprep.subr.bf16.mxu0 %v2087_v1 }
 0x89a   : > { %v2014_v24 = vpop.eup %2013 }
 0x89b   : > { %v1259_v12 = vmul.f32 %v2014_v24, %v2012_v0 }
 0x89d   : > { %v1260_v13 = vpack.c.bf16 %v1259_v12, %v1259_v12 }
 0x89f   : > { %1899 = vmatmul.mubr.msk.bf16.vlgmr.msra.gmra.mrb[28].mxu0 %vm779_vm3, %v1260_v13 }
 0x8a0   : > { %1912 = vmatprep.mubr.msk.bf16.mxu0 %vm2088_vm0, %v2087_v1  ;;  %1909 = vmatpush3.bf16.msra.mxu0 %v1989_v36 }
 0x8a1   : > { %1910 = vmatprep.subr.bf16.mxu0 %v2087_v1 }
 0x8a4   : > { %1911 = vmatpush3.bf16.msra.mxu0 %v1990_v37 }
 0x972   : > { %v1301_v14 = vpop.f32.mrb[28].mxu0 }
 0x973   : > { %v1307_v15 = vpack.c.bf16 %v1301_v14, %v1301_v14  ;;  %v1900_v16 = vpop.f32.mrb[29].mxu0 }
 0x974   : > { %v1304_v17 = vpop.f32.mrb[30].mxu0 }
 0x975   : > { %v1901_v18 = vpop.f32.mrb[31].mxu0  ;;  %1905 = vmatmul.mubr.msk.bf16.vlgmr.msra.gmra.mrb[20].mxu1 %vm732_vm2, %v1307_v15  ;;  %v2096_v15 = vmov -1.0  }
 0x976   : > { %1932 = vmatprep.mubr.msk.bf16.mxu1 %vm2088_vm0, %v2087_v1  ;;  %1917 = vmatpush3.bf16.msra.mxu1 %v1991_v26 }
 0x977   : > { %1918 = vmatprep.subr.bf16.mxu1 %v2087_v1 }
 0x97a   : > { %1919 = vmatpush3.bf16.msra.mxu1 %v1992_v47 }
 0x97b   : > { %1920 = vmatprep.subr.bf16.mxu1 %v2087_v1 }
 0x97e   : > { %1921 = vmatpush3.bf16.msra.mxu1 %v1993_v48 }
 0x97f   : > { %1922 = vmatprep.subr.bf16.mxu1 %v2087_v1 }
 0x982   : > { %1923 = vmatpush3.bf16.msra.mxu1 %v1994_v49 }
 0x983   : > { %1924 = vmatprep.subr.bf16.mxu1 %v2087_v1 }
 0x986   : > { %1925 = vmatpush3.bf16.msra.mxu1 %v1995_v50 }
 0x987   : > { %1926 = vmatprep.subr.bf16.mxu1 %v2087_v1 }
 0x98a   : > { %1927 = vmatpush3.bf16.msra.mxu1 %v1996_v51 }
 0x98b   : > { %1928 = vmatprep.subr.bf16.mxu1 %v2087_v1 }
 0x98e   : > { %1929 = vmatpush3.bf16.msra.mxu1 %v1997_v52 }
 0x98f   : > { %1930 = vmatprep.subr.bf16.mxu1 %v2087_v1 }
 0x992   : > { %1931 = vmatpush3.bf16.msra.mxu1 %v1998_v53 }
 0xa48   : > { %v1348_v19 = vpop.f32.mrb[20].mxu1 }
 0xa49   : > { %v1354_v21 = vadd.f32 %v1348_v19, %v1198_v6  ;;  %v1906_v22 = vpop.f32.mrb[21].mxu1 }
 0xa4a   : > { %v1351_v23 = vpop.f32.mrb[22].mxu1  ;;  %v1762_v22 = vld [vmem:[%s2523_s14] ss:$0 sm:$0xff] }
 0xa4b   : > { %v1362_v25 = vadd.f32 %v1755_v20, %v1354_v21  ;;  %v1907_v27 = vpop.f32.mrb[23].mxu1 }
 0xa4d   : > { %v1363_v28 = vadd.f32 %v1362_v25, %v2262_v3 }
 0xa4f   : > { %v1366_v29 = vsel %vm607_vm1, %v1363_v28, 0.0 }
 0xa50   : > { %1367 = vadd.xlane.f32.xlu1 %v1366_v29 }
 0xadd   : > { %v1368_v31 = vpop.xlane.xlu1 %1367 }
 0xade   : > { %v1370_v32 = vmul.f32 0.03125, %v1368_v31 }
 0xae0   : > { %v1371_v33 = vsub.f32 %v1363_v28, %v1370_v32 }
 0xae2   : > { %v1372_v34 = vmul.f32 %v1371_v33, %v1371_v33 }
 0xae4   : > { %v1373_v35 = vsel %vm607_vm1, %v1372_v34, 0.0 }
 0xae5   : > { %1374 = vadd.xlane.f32.xlu0 %v1373_v35 }
 0xb72   : > { %v1375_v3 = vpop.xlane.xlu0 %1374 }
 0xb73   : > { %v1376_v38 = vmul.f32 0.03125, %v1375_v3 }
 0xb75   : > { %v1377_v39 = vadd.f32 1e-06, %v1376_v38 }
 0xb77   : > { %2015 = vrsqrt.f32 %v1377_v39 }
 0xb81   : > { %v2016_v40 = vpop.eup %2015 }
 0xb82   : > { %v1379_v42 = vmul.f32 %v2016_v40, %v1371_v33 }
 0xb84   : > { %v1386_v44 = vmul.f32 %v1756_v41, %v1379_v42  ;;  %v1771_v41 = vld [vmem:[%s2524_s15] ss:$0 sm:$0xff] }
 0xb86   : > { %v2410_v45 = vadd.f32 %v1757_v43, %v1386_v44  ;;  %v1772_v43 = vld [vmem:[%s2550_s23] ss:$0 sm:$0xff] }
 0xb88   : > { %v1399_v46 = vpack.c.bf16 %v2410_v45, %v2410_v45 }
 0xb8a   : > { %1913 = vmatmul.mubr.msk.bf16.vlgmr.msra.gmra.mrb[32].mxu0 %vm607_vm1, %v1399_v46 }
 0xc5d   : > { %v1455_v55 = vpop.f32.mrb[32].mxu0 }
 0xc5e   : > { %v1456_v56 = vadd.f32 %v1758_v54, %v1455_v55  ;;  %v1914_v57 = vpop.f32.mrb[33].mxu0 }
 0xc5f   : > { %v1458_v58 = vpop.f32.mrb[34].mxu0 }
 0xc60   : > { %v1463_v59 = vmul.f32 0.70710677, %v1456_v56  ;;  %v1915_v60 = vpop.f32.mrb[35].mxu0  ;;  %v1461_v18 = vmul.f32 0.5, %v1456_v56 }
 0xc62   : > { %v1466_v61 = vand.u32 2147483647, %v1463_v59  ;;  %vm1464_vm5 = vcmp.ge.f32.partialorder %v1463_v59, 0.0 }
 0xc63   : > { %v1465_v16 = vsel %vm1464_vm5, 1.0, %v2096_v15 }
 0xc64   : > { %v1467_v62 = vmul.f32 0.3275911, %v1466_v61  ;;  %v1480_v1 = vsub.f32 0.0, %v1466_v61 }
 0xc66   : > { %v1468_v63 = vadd.f32 1.0, %v1467_v62  ;;  %v1481_v2 = vmul.f32 %v1480_v1, %v1466_v61 }
 0xc68   : > { %2017 = vrcp.f32 %v1468_v63  ;;  %v1482_v5 = vmul.f32 1.442695, %v1481_v2 }
 0xc6a   : > { %2019 = vpow2.f32 %v1482_v5 }
 0xc72   : > { %v2018_v0 = vpop.eup %2017 }
 0xc73   : > { %v1471_v30 = vmul.f32 1.0614054, %v2018_v0 }
 0xc74   : > { %v2020_v12 = vpop.eup %2019 }
 0xc75   : > { %v1472_v4 = vadd.f32 -1.4531521, %v1471_v30 }
 0xc77   : > { %v1473_v6 = vmul.f32 %v2018_v0, %v1472_v4 }
 0xc79   : > { %v1474_v7 = vadd.f32 1.4214138, %v1473_v6 }
 0xc7b   : > { %v1475_v8 = vmul.f32 %v2018_v0, %v1474_v7 }
 0xc7d   : > { %v1476_v9 = vadd.f32 -0.28449672, %v1475_v8 }
 0xc7f   : > { %v1477_v10 = vmul.f32 %v2018_v0, %v1476_v9 }
 0xc81   : > { %v1478_v11 = vadd.f32 0.2548296, %v1477_v10 }
 0xc83   : > { %v1479_v24 = vmul.f32 %v2018_v0, %v1478_v11 }
 0xc85   : > { %v1484_v13 = vmul.f32 %v2020_v12, %v1479_v24 }
 0xc87   : > { %v1485_v14 = vsub.f32 1.0, %v1484_v13 }
 0xc89   : > { %v1486_v17 = vmul.f32 %v1485_v14, %v1465_v16 }
 0xc8b   : > { %v1487_v19 = vadd.f32 1.0, %v1486_v17 }
 0xc8d   : > { %v1488_v20 = vmul.f32 %v1487_v19, %v1461_v18 }
 0xc8f   : > { %v1506_v21 = vpack.c.bf16 %v1488_v20, %v1488_v20 }
 0xc91   : > { %1933 = vmatmul.mubr.bf16.vlgmr.msra.gmra.mrb[24].mxu1 %v1506_v21 }
 0xd64   : > { %v1595_v23 = vpop.f32.mrb[24].mxu1 }
 0xd65   : > { %v1596_v25 = vadd.f32 %v1762_v22, %v1595_v23  ;;  %v1934_v27 = vpop.f32.mrb[25].mxu1 }
 0xd66   : > { %v1598_v28 = vpop.f32.mrb[26].mxu1 }
 0xd67   : > { %v1935_v29 = vpop.f32.mrb[27].mxu1  ;;  %v1601_v31 = vadd.f32 %v1596_v25, %v2410_v45 }
 0xd69   : > { %v1604_v32 = vsel %vm607_vm1, %v1601_v31, 0.0 }
 0xd6a   : > { %1605 = vadd.xlane.f32.xlu0 %v1604_v32 }
 0xdf7   : > { %v1606_v33 = vpop.xlane.xlu0 %1605 }
 0xdf8   : > { %v1607_v34 = vmul.f32 0.03125, %v1606_v33 }
 0xdfa   : > { %v1608_v35 = vsub.f32 %v1601_v31, %v1607_v34 }
 0xdfc   : > { %v1609_v36 = vmul.f32 %v1608_v35, %v1608_v35 }
 0xdfe   : > { %v1610_v37 = vsel %vm607_vm1, %v1609_v36, 0.0 }
 0xdff   : > { %1611 = vadd.xlane.f32.xlu0 %v1610_v37 }
 0xe8c   : > { %v1612_v3 = vpop.xlane.xlu0 %1611 }
 0xe8d   : > { %v1613_v38 = vmul.f32 0.03125, %v1612_v3 }
 0xe8f   : > { %v1614_v39 = vadd.f32 1e-06, %v1613_v38 }
 0xe91   : > { %2021 = vrsqrt.f32 %v1614_v39 }
 0xe9b   : > { %v2022_v40 = vpop.eup %2021 }
 0xe9c   : > { %v1616_v42 = vmul.f32 %v2022_v40, %v1608_v35 }
 0xe9e   : > { %v1623_v44 = vmul.f32 %v1771_v41, %v1616_v42 }
 0xea0   : > { %v1630_v45 = vadd.f32 %v1772_v43, %v1623_v44 }
 0xea2   : > { %1631 = vst.msk [vmem:[%s565_s3] sm:$0xff] %vm607_vm1, %v1630_v45 }
 0xea3   : > { %2036 = shalt.err (!%p2033_p3)
}
 0xea4   : > { %s2037_s19 = scalar_lea.hbm %s2466_s27, 128  ;;  %s2041_s29 = scalar_lea.hbm %s2552_s0, 256 }
 0xea5   : > { %p2038_p4 = scmp.ne.s32.totalorder %s2466_s27, %s2037_s19  ;;  %p2042_p9 = scmp.lt.u32.totalorder %s2466_s27, %s2552_s0 }
 0xea6   : > { %p2043_p10 = scmp.lt.u32.totalorder %s2041_s29, %s2037_s19  ;;  %p2045_p12 = scmp.lt.u32.totalorder %s2037_s19, %s2466_s27 }
 0xea7   : > { %p2039_p7 = pnand %p2038_p4, %p2226_p5 }
 0xea8   : > { %p2044_p11 = por %p2043_p10, %p2042_p9 }
 0xea9   : > { %p2040_p8 = pneg %p2039_p7 }
 0xeaa   : > { %p2046_p13 = por %p2045_p12, %p2044_p11 }
 0xeac   : > { %p2047_p0 = pnand %p2046_p13, %p2040_p8 }
 0xeae   : > { %2050 = shalt.err (!%p2047_p0)
}
 0xeaf   : > { %1936 = dma.vmem_to_hbm [thread:$0]  (%p2226_p5), %s2468_s16, 128, %s2466_s27, %s1633_s30  }
 0xeb0 PF: > { %s2553_s24 = sld [smem:[#allocation7_spill]]  ;;  %s2554_s26 = sld [smem:[#allocation5_spill]] }
 0xeb6   : > { %p1942_p1 = scmp.ge.s32.totalorder %s2553_s24, 2  ;;  %s1658_s28 = sand.u32 1, %s2554_s26  }
 0xeb7   : > { %s1659_s20 = scalar_lea.sflag [#allocation3], %s1658_s28 }
 0xeb8   : > { %p1939_p2 = pnand %p1942_p1, %p2230_p6 }
 0xeba   : > { %2068 = dma.done.wait (!%p1939_p2), %s1659_s20, 128  }
 0xebb   : > { %2070 = vsyncadd (!%p1939_p2), %s1659_s20, 4294967168  ;;  %s2556_s27 = sld [smem:[#allocation8_spill]]  ;;  %s2557_s21 = sld [smem:[#allocation6_spill]] }
 0xebc   : > { %s2558_s26 = sld [smem:[#allocation9_spill]]  ;;  %s2559_s24 = smov %s2077_s25 }
 0xec1   : > { %p27_p3 = scmp.ge.s32.totalorder %s2556_s27, 4   ;;  %s2560_s25 = smov %s2557_s21 }
 0xec3   :  { %29 = sbr.rel (!%p27_p3) target bundleno = 9 (0x9), region = 129 }
 0xeca   :  { %1664 = vsyncpa [#allocation3], 1 }
 0xecb   :  { %1666 = vsyncpa [#allocation3 + $0x1], 1 }

// kernel: socml_forward.4
= control target key start
LH: loop header
LB: loop body
LE: loop exit
PB: predicated region body
PF: predicated region fallthrough
CT: control target
= control target key end

     0   :  { %s2927_s0 = inlined_call_operand.vmem [shape: f32[2,8,32], index: 0, kind: input, shape index: {}]   ;;  %s2928_s1 = inlined_call_operand.vmem [shape: f32[2,1,8], index: 1, kind: input, shape index: {}]   ;;  %s2929_s2 = inlined_call_operand.vmem [shape: bf16[32,96], index: 2, kind: input, shape index: {}]   ;;  %s2930_s3 = inlined_call_operand.hbm [shape: f32[1,96], index: 3, kind: input, shape index: {}]   ;;  %s2931_s4 = inlined_call_operand.vmem [shape: bf16[32,32], index: 4, kind: input, shape index: {}]   ;;  %s2932_s5 = inlined_call_operand.hbm [shape: f32[1,32], index: 5, kind: input, shape index: {}]   ;;  %s2933_s6 = inlined_call_operand.hbm [shape: bf16[32,32], index: 6, kind: input, shape index: {}]   ;;  %s2934_s7 = inlined_call_operand.hbm [shape: f32[1,32], index: 7, kind: input, shape index: {}]   ;;  %s2935_s8 = inlined_call_operand.hbm [shape: f32[1,32], index: 8, kind: input, shape index: {}]   ;;  %s2936_s9 = inlined_call_operand.hbm [shape: f32[1,32], index: 9, kind: input, shape index: {}]   ;;  %s2937_s10 = inlined_call_operand.vmem [shape: bf16[32,32], index: 10, kind: input, shape index: {}]   ;;  %s2938_s11 = inlined_call_operand.hbm [shape: f32[1,32], index: 11, kind: input, shape index: {}]   ;;  %s2939_s12 = inlined_call_operand.hbm [shape: f32[1,32], index: 12, kind: input, shape index: {}]   ;;  %s2940_s13 = inlined_call_operand.hbm [shape: f32[1,32], index: 13, kind: input, shape index: {}]   ;;  %s2941_s14 = inlined_call_operand.vmem [shape: f32[2,8,32], index: 14, kind: output, shape index: {}]  }
   0x1   :  { %2945 = sst [smem:[#allocation22_spill]] %s2930_s3 }
   0x2   :  { %2946 = sst [smem:[#allocation23_spill]] %s2932_s5 }
   0x3   :  { %2947 = sst [smem:[#allocation24_spill]] %s2934_s7 }
   0x4   :  { %2948 = sst [smem:[#allocation25_spill]] %s2941_s14 }
   0x5   :  { %19 = vsyncpa [#allocation3], 0 }
   0x6   :  { %20 = vsyncpa [#allocation5], 0 }
   0x7   :  { %21 = vsyncpa [#allocation8], 0 }
   0x8   :  { %22 = vsyncpa [#allocation11], 0 }
   0x9   :  { %23 = vsyncpa [#allocation14], 0  ;;  %s2502_s29 = smov 0  }
   0xa LB: > { %2949 = sst [smem:[#allocation21_spill]] %s2404_s29  ;;  %s2406_s30 = smov [#allocation4]   ;;  %s2404_s29 = sphi %s2502_s29, %s29_s29  }
   0xb   : > { %s394_s15 = sshll.u32 %s2406_s30, 4  ;;  %s2508_s16 = sadd.s32 4294967295, %s2404_s29   ;;  %s2513_s15 = int_to_ptr.vmem [resolvable:$true] %s394_s15 }
   0xc   : > { %p1781_p0 = scmp.ge.s32.totalorder %s2404_s29, 1  ;;  %p364_p1 = scmp.lt.s32.totalorder %s2404_s29, 3 }
   0xd   : > { %p2943_p2 = scmp.eq.s32.totalorder %s2508_s16, 0  ;;  %s2407_s18 = smov [#allocation7]  }
   0xe   : > { %p2515_p3 = pnand %p1781_p0, %p364_p1  ;;  %s418_s19 = sshll.u32 %s2407_s18, 4  ;;  %s2521_s19 = int_to_ptr.vmem [resolvable:$true] %s418_s19 }
   0xf   : > { %s2408_s20 = smov [#allocation10]   ;;  %s2409_s23 = smov [#allocation13]  }
  0x10   : > { %s2950_s17 = scalar_select %p2515_p3, 1, 0 }
  0x11   : > { %p2019_p4 = pneg %p2515_p3  ;;  %s440_s21 = sshll.u32 %s2408_s20, 4  ;;  %s2529_s21 = int_to_ptr.vmem [resolvable:$true] %s440_s21 }
  0x12   : > { %s465_s24 = sshll.u32 %s2409_s23, 4  ;;  %s2952_s5 = sld [smem:[#allocation23_spill]]  ;;  %s2531_s24 = int_to_ptr.vmem [resolvable:$true] %s465_s24 }
  0x13   : > { %p2525_p5 = pnand %p2943_p2, %p2019_p4 }
  0x15   : > { %p2541_p7 = pneg %p2525_p5 }
  0x18   : > { %s2126_s27 = scalar_lea.hbm %s2952_s5, 16 }
  0x19   : > { %p2127_p6 = scmp.ne.s32.totalorder %s2952_s5, %s2126_s27  ;;  %p2133_p10 = scmp.lt.u32.totalorder %s2126_s27, %s2952_s5 }
  0x1b   : > { %p2129_p8 = pnand %p2541_p7, %p2127_p6 }
  0x1d   : > { %p2130_p9 = pneg %p2129_p8 }
  0x1f   : > { %p2135_p11 = pnand %p2133_p10, %p2130_p9 }
  0x21   : > { %2138 = shalt.err (!%p2135_p11)
}
  0x22   : > { %s2139_s25 = scalar_lea.vmem %s2513_s15, 16  ;;  %s2146_s26 = scalar_lea.vmem %s2513_s15, 32 }
  0x23   : > { %p2140_p12 = scmp.ne.s32.totalorder %s2513_s15, %s2139_s25  ;;  %p2147_p1 = scmp.lt.s32.totalorder %s2513_s15, %s2513_s15 }
  0x24   : > { %p2148_p4 = scmp.lt.s32.totalorder %s2146_s26, %s2139_s25 }
  0x25   : > { %p2142_p13 = pnand %p2140_p12, %p2541_p7 }
  0x26   : > { %p2149_p6 = por %p2148_p4, %p2147_p1 }
  0x27   : > { %p2143_p0 = pneg %p2142_p13 }
  0x29   : > { %p2150_p8 = pnand %p2149_p6, %p2143_p0 }
  0x2b   : > { %2153 = shalt.err (!%p2150_p8)
}
  0x2c   : > { %2025 = dma.hbm_to_vmem [thread:$0]  (!%p2525_p5), %s2952_s5, 16, %s2513_s15, [#allocation5]  }
  0x2d   : > { %s2954_s7 = sld [smem:[#allocation24_spill]] }
  0x33   : > { %s2154_s23 = scalar_lea.hbm %s2954_s7, 16 }
  0x34   : > { %p2155_p9 = scmp.ne.s32.totalorder %s2954_s7, %s2154_s23  ;;  %p2161_p12 = scmp.lt.u32.totalorder %s2154_s23, %s2954_s7 }
  0x36   : > { %p2157_p10 = pnand %p2155_p9, %p2541_p7 }
  0x38   : > { %p2158_p11 = pneg %p2157_p10 }
  0x3a   : > { %p2163_p13 = pnand %p2161_p12, %p2158_p11 }
  0x3c   : > { %2166 = shalt.err (!%p2163_p13)
}
  0x3d   : > { %s2167_s15 = scalar_lea.vmem %s2521_s19, 16  ;;  %s2174_s14 = scalar_lea.vmem %s2521_s19, 32 }
  0x3e   : > { %p2168_p0 = scmp.ne.s32.totalorder %s2521_s19, %s2167_s15  ;;  %p2175_p6 = scmp.lt.s32.totalorder %s2521_s19, %s2521_s19 }
  0x3f   : > { %p2176_p8 = scmp.lt.s32.totalorder %s2174_s14, %s2167_s15 }
  0x40   : > { %p2170_p1 = pnand %p2168_p0, %p2541_p7 }
  0x41   : > { %p2177_p9 = por %p2176_p8, %p2175_p6 }
  0x42   : > { %p2171_p4 = pneg %p2170_p1 }
  0x44   : > { %p2178_p10 = pnand %p2177_p9, %p2171_p4 }
  0x46   : > { %2181 = shalt.err (!%p2178_p10)
}
  0x47   : > { %2031 = dma.hbm_to_vmem [thread:$0]  (!%p2525_p5), %s2954_s7, 16, %s2521_s19, [#allocation8]  }
  0x48   : > { %s2182_s20 = scalar_lea.hbm %s2936_s9, 16 }
  0x49   : > { %p2183_p11 = scmp.ne.s32.totalorder %s2936_s9, %s2182_s20  ;;  %p2189_p0 = scmp.lt.u32.totalorder %s2182_s20, %s2936_s9 }
  0x4b   : > { %p2185_p12 = pnand %p2183_p11, %p2541_p7 }
  0x4d   : > { %p2186_p13 = pneg %p2185_p12 }
  0x4f   : > { %p2191_p1 = pnand %p2189_p0, %p2186_p13 }
  0x51   : > { %2194 = shalt.err (!%p2191_p1)
}
  0x52   : > { %s2195_s19 = scalar_lea.vmem %s2529_s21, 16  ;;  %s2202_s14 = scalar_lea.vmem %s2529_s21, 32 }
  0x53   : > { %p2196_p4 = scmp.ne.s32.totalorder %s2529_s21, %s2195_s19  ;;  %p2203_p9 = scmp.lt.s32.totalorder %s2529_s21, %s2529_s21 }
  0x54   : > { %p2204_p10 = scmp.lt.s32.totalorder %s2202_s14, %s2195_s19 }
  0x55   : > { %p2198_p6 = pnand %p2196_p4, %p2541_p7 }
  0x56   : > { %p2205_p11 = por %p2204_p10, %p2203_p9 }
  0x57   : > { %p2199_p8 = pneg %p2198_p6 }
  0x59   : > { %p2206_p12 = pnand %p2205_p11, %p2199_p8 }
  0x5b   : > { %2209 = shalt.err (!%p2206_p12)
}
  0x5c   : > { %2037 = dma.hbm_to_vmem [thread:$0]  (!%p2525_p5), %s2936_s9, 16, %s2529_s21, [#allocation11]  }
  0x5d   : > { %s2210_s20 = scalar_lea.hbm %s2939_s12, 16 }
  0x5e   : > { %p2211_p13 = scmp.ne.s32.totalorder %s2939_s12, %s2210_s20  ;;  %p2217_p4 = scmp.lt.u32.totalorder %s2210_s20, %s2939_s12 }
  0x60   : > { %p2213_p0 = pnand %p2211_p13, %p2541_p7 }
  0x62   : > { %p2214_p1 = pneg %p2213_p0 }
  0x64   : > { %p2219_p6 = pnand %p2217_p4, %p2214_p1 }
  0x66   : > { %2222 = shalt.err (!%p2219_p6)
}
  0x67   : > { %s2223_s21 = scalar_lea.vmem %s2531_s24, 16  ;;  %s2230_s19 = scalar_lea.vmem %s2531_s24, 32 }
  0x68   : > { %p2224_p8 = scmp.ne.s32.totalorder %s2531_s24, %s2223_s21  ;;  %p2231_p11 = scmp.lt.s32.totalorder %s2531_s24, %s2531_s24 }
  0x69   : > { %p2232_p12 = scmp.lt.s32.totalorder %s2230_s19, %s2223_s21 }
  0x6a   : > { %p2226_p9 = pnand %p2224_p8, %p2541_p7 }
  0x6b   : > { %p2233_p13 = por %p2232_p12, %p2231_p11 }
  0x6c   : > { %p2227_p10 = pneg %p2226_p9 }
  0x6e   : > { %p2234_p0 = pnand %p2233_p13, %p2227_p10 }
  0x70   : > { %2237 = shalt.err (!%p2234_p0)
}
  0x71   : > { %2043 = dma.hbm_to_vmem [thread:$0]  (!%p2525_p5), %s2939_s12, 16, %s2531_s24, [#allocation14]  }
  0x72   : > { %s2410_s27 = smov [#allocation2]   ;;  %s2411_s30 = smov [#allocation6]  }
  0x73   : > { %s380_s28 = sshll.u32 %s2410_s27, 4  ;;  %s404_s20 = sshll.u32 %s2411_s30, 4  ;;  %s381_s28 = int_to_ptr.vmem [resolvable:$true] %s380_s28  ;;  %s405_s20 = int_to_ptr.vmem [resolvable:$true] %s404_s20 }
  0x74   : > { %s2955_s3 = sld [smem:[#allocation22_spill]] }
  0x7a   : > { %s2238_s26 = scalar_lea.hbm %s2955_s3, 16 }
  0x7b   : > { %p2239_p1 = scmp.ne.s32.totalorder %s2955_s3, %s2238_s26  ;;  %p2245_p8 = scmp.lt.u32.totalorder %s2238_s26, %s2955_s3 }
  0x7d   : > { %p2241_p4 = pnand %p2239_p1, %p2541_p7 }
  0x7f   : > { %p2242_p6 = pneg %p2241_p4 }
  0x81   : > { %p2247_p9 = pnand %p2245_p8, %p2242_p6 }
  0x83   : > { %2250 = shalt.err (!%p2247_p9)
}
  0x84   : > { %s2251_s24 = scalar_lea.vmem %s381_s28, 16  ;;  %s2258_s29 = scalar_lea.vmem %s381_s28, 32 }
  0x85   : > { %p2252_p10 = scmp.ne.s32.totalorder %s381_s28, %s2251_s24  ;;  %p2259_p13 = scmp.lt.s32.totalorder %s381_s28, %s381_s28 }
  0x86   : > { %p2260_p0 = scmp.lt.s32.totalorder %s2258_s29, %s2251_s24 }
  0x87   : > { %p2254_p11 = pnand %p2252_p10, %p2541_p7 }
  0x88   : > { %p2261_p2 = por %p2260_p0, %p2259_p13 }
  0x89   : > { %p2255_p12 = pneg %p2254_p11 }
  0x8b   : > { %p2262_p3 = pnand %p2261_p2, %p2255_p12 }
  0x8d   : > { %2265 = shalt.err (!%p2262_p3)
}
  0x8e   : > { %2022 = dma.hbm_to_vmem [thread:$0]  (!%p2525_p5), %s2955_s3, 16, %s381_s28, [#allocation3]  }
  0x8f   : > { %s2266_s26 = scalar_lea.hbm %s2933_s6, 256 }
  0x90   : > { %p2267_p1 = scmp.ne.s32.totalorder %s2933_s6, %s2266_s26  ;;  %p2273_p3 = scmp.lt.u32.totalorder %s2266_s26, %s2933_s6 }
  0x92   : > { %p2269_p4 = pnand %p2267_p1, %p2541_p7 }
  0x94   : > { %p2270_p2 = pneg %p2269_p4 }
  0x96   : > { %p2275_p6 = pnand %p2273_p3, %p2270_p2 }
  0x98   : > { %2278 = shalt.err (!%p2275_p6)
}
  0x99   : > { %s2279_s24 = scalar_lea.vmem %s405_s20, 256  ;;  %p2287_p11 = scmp.lt.s32.totalorder %s405_s20, %s405_s20 }
  0x9a   : > { %p2280_p8 = scmp.ne.s32.totalorder %s405_s20, %s2279_s24  ;;  %p2288_p12 = scmp.lt.s32.totalorder %s2279_s24, %s2279_s24 }
  0x9c   : > { %p2282_p9 = pnand %p2280_p8, %p2541_p7  ;;  %p2289_p13 = por %p2288_p12, %p2287_p11 }
  0x9e   : > { %p2283_p10 = pneg %p2282_p9 }
  0xa0   : > { %p2290_p0 = pnand %p2289_p13, %p2283_p10 }
  0xa2   : > { %2293 = shalt.err (!%p2290_p0)
}
  0xa3   : > { %s2412_s28 = smov 64   ;;  %s2413_s29 = smov 4  }
  0xa4   : > { %2028 = dma.hbm_to_vmem [thread:$0]  (!%p2525_p5), %s2933_s6, 256, %s405_s20, [#allocation5], %s2412_s28, %s2412_s28, %s2413_s29  }
  0xa5   : > { %s2414_s23 = smov [#allocation9]   ;;  %s2415_s26 = smov [#allocation12]  }
  0xa6   : > { %s429_s25 = sshll.u32 %s2414_s23, 4  ;;  %s454_s15 = sshll.u32 %s2415_s26, 4  ;;  %s430_s25 = int_to_ptr.vmem [resolvable:$true] %s429_s25  ;;  %s455_s15 = int_to_ptr.vmem [resolvable:$true] %s454_s15 }
  0xa7   : > { %s2294_s14 = scalar_lea.hbm %s2935_s8, 16 }
  0xa8   : > { %p2295_p1 = scmp.ne.s32.totalorder %s2935_s8, %s2294_s14  ;;  %p2301_p3 = scmp.lt.u32.totalorder %s2294_s14, %s2935_s8 }
  0xaa   : > { %p2297_p4 = pnand %p2295_p1, %p2541_p7 }
  0xac   : > { %p2298_p2 = pneg %p2297_p4 }
  0xae   : > { %p2303_p6 = pnand %p2301_p3, %p2298_p2 }
  0xb0   : > { %2306 = shalt.err (!%p2303_p6)
}
  0xb1   : > { %s2307_s20 = scalar_lea.vmem %s430_s25, 16  ;;  %s2314_s28 = scalar_lea.vmem %s430_s25, 32 }
  0xb2   : > { %p2308_p8 = scmp.ne.s32.totalorder %s430_s25, %s2307_s20  ;;  %p2315_p11 = scmp.lt.s32.totalorder %s430_s25, %s430_s25 }
  0xb3   : > { %p2316_p12 = scmp.lt.s32.totalorder %s2314_s28, %s2307_s20 }
  0xb4   : > { %p2310_p9 = pnand %p2308_p8, %p2541_p7 }
  0xb5   : > { %p2317_p13 = por %p2316_p12, %p2315_p11 }
  0xb6   : > { %p2311_p10 = pneg %p2310_p9 }
  0xb8   : > { %p2318_p0 = pnand %p2317_p13, %p2311_p10 }
  0xba   : > { %2321 = shalt.err (!%p2318_p0)
}
  0xbb   : > { %2034 = dma.hbm_to_vmem [thread:$0]  (!%p2525_p5), %s2935_s8, 16, %s430_s25, [#allocation8]  }
  0xbc   : > { %s2322_s27 = scalar_lea.hbm %s2938_s11, 16 }
  0xbd   : > { %p2323_p1 = scmp.ne.s32.totalorder %s2938_s11, %s2322_s27  ;;  %p2329_p3 = scmp.lt.u32.totalorder %s2322_s27, %s2938_s11 }
  0xbf   : > { %p2325_p4 = pnand %p2323_p1, %p2541_p7 }
  0xc1   : > { %p2326_p2 = pneg %p2325_p4 }
  0xc3   : > { %p2331_p6 = pnand %p2329_p3, %p2326_p2 }
  0xc5   : > { %2334 = shalt.err (!%p2331_p6)
}
  0xc6   : > { %s2335_s19 = scalar_lea.vmem %s455_s15, 16  ;;  %s2342_s25 = scalar_lea.vmem %s455_s15, 32 }
  0xc7   : > { %p2336_p8 = scmp.ne.s32.totalorder %s455_s15, %s2335_s19  ;;  %p2343_p11 = scmp.lt.s32.totalorder %s455_s15, %s455_s15 }
  0xc8   : > { %p2344_p12 = scmp.lt.s32.totalorder %s2342_s25, %s2335_s19 }
  0xc9   : > { %p2338_p9 = pnand %p2336_p8, %p2541_p7 }
  0xca   : > { %p2345_p13 = por %p2344_p12, %p2343_p11 }
  0xcb   : > { %p2339_p10 = pneg %p2338_p9 }
  0xcd   : > { %p2346_p0 = pnand %p2345_p13, %p2339_p10 }
  0xcf   : > { %2349 = shalt.err (!%p2346_p0)
}
  0xd0   : > { %2040 = dma.hbm_to_vmem [thread:$0]  (!%p2525_p5), %s2938_s11, 16, %s455_s15, [#allocation11]  }
  0xd1   : > { %s2416_s20 = smov [#allocation15]   ;;  %s2350_s5 = scalar_lea.hbm %s2940_s13, 16 }
  0xd2   : > { %s476_s28 = sshll.u32 %s2416_s20, 4  ;;  %p2351_p1 = scmp.ne.s32.totalorder %s2940_s13, %s2350_s5  ;;  %s477_s28 = int_to_ptr.vmem [resolvable:$true] %s476_s28 }
  0xd3   : > { %p2357_p3 = scmp.lt.u32.totalorder %s2350_s5, %s2940_s13 }
  0xd4   : > { %p2353_p4 = pnand %p2351_p1, %p2541_p7 }
  0xd6   : > { %p2354_p2 = pneg %p2353_p4 }
  0xd8   : > { %p2359_p6 = pnand %p2357_p3, %p2354_p2 }
  0xda   : > { %2362 = shalt.err (!%p2359_p6)
}
  0xdb   : > { %s2363_s15 = scalar_lea.vmem %s477_s28, 16  ;;  %s2370_s26 = scalar_lea.vmem %s477_s28, 32 }
  0xdc   : > { %p2364_p8 = scmp.ne.s32.totalorder %s477_s28, %s2363_s15  ;;  %p2371_p11 = scmp.lt.s32.totalorder %s477_s28, %s477_s28 }
  0xdd   : > { %p2372_p12 = scmp.lt.s32.totalorder %s2370_s26, %s2363_s15 }
  0xde   : > { %p2366_p9 = pnand %p2364_p8, %p2541_p7 }
  0xdf   : > { %p2373_p13 = por %p2372_p12, %p2371_p11 }
  0xe0   : > { %p2367_p10 = pneg %p2366_p9 }
  0xe2   : > { %p2374_p0 = pnand %p2373_p13, %p2367_p10 }
  0xe4   : > { %2377 = shalt.err (!%p2374_p0)
}
  0xe5   : > { %2046 = dma.hbm_to_vmem [thread:$0]  (!%p2525_p5), %s2940_s13, 16, %s477_s28, [#allocation14]  }
  0xe6   : > { %p2956_p1 = scmp.ne.s32.totalorder %s2950_s17, 0 }
  0xe7   : > { %p2957_p4 = scmp.eq.s32.totalorder (!%p2956_p1), %s2508_s16, 0 }
  0xe8   : > { %502 = sbr.rel (%p2956_p1) target bundleno = 4557 (0x11cd), region = 76 }
  0xef   : > { %2383 = dma.done.wait (%p2957_p4), [#allocation3], 16   ;;  %p2958_p7 = pmov %p2957_p4 }
  0xf0   : > { %p2959_p2 = pmov %p2957_p4 }
  0xf1   : > { %2385 = vsyncadd (%p2958_p7), [#allocation3], 4294967280 }
  0xf2   : > { %2387 = dma.done.wait (%p2959_p2), [#allocation5], 272   ;;  %p2960_p3 = pmov %p2959_p2 }
  0xf3   : > { %p2961_p6 = pmov %p2959_p2 }
  0xf4   : > { %2389 = vsyncadd (%p2960_p3), [#allocation5], 4294967024 }
  0xf5   : > { %2391 = dma.done.wait (%p2961_p6), [#allocation8], 32   ;;  %p2962_p5 = pmov %p2959_p2 }
  0xf6   : > { %p2963_p8 = pmov %p2959_p2 }
  0xf7   : > { %2393 = vsyncadd (%p2962_p5), [#allocation8], 4294967264 }
  0xf8   : > { %2395 = dma.done.wait (%p2963_p8), [#allocation11], 32   ;;  %p2964_p9 = pmov %p2959_p2 }
  0xf9   : > { %p2965_p10 = pmov %p2959_p2 }
  0xfa   : > { %2397 = vsyncadd (%p2964_p9), [#allocation11], 4294967264 }
  0xfb   : > { %2399 = dma.done.wait (%p2965_p10), [#allocation14], 32   ;;  %p2966_p11 = pmov %p2959_p2 }
  0xfc   : > { %p581_p12 = scmp.lt.s32.totalorder %s2508_s16, 1  ;;  %v2417_v0 = vmov 0.0   ;;  %vm2418_vm0 = vmmov 0   ;;  %v2094_v1 = vld [vmem:[%s2929_s2] sm:$0xff]   ;;  %v2095_v2 = vld [vmem:[%s2929_s2 + $0x8] sm:$0xff]   ;;  %vm619_vm1 = vcmask 261120  }
  0xfd   : > { %2401 = vsyncadd (%p2966_p11), [#allocation14], 4294967264  ;;  %1875 = vmatprep.subr.bf16.mxu0 %v2417_v0  ;;  %1879 = vmatprep.mubr.msk.bf16.mxu0 %vm2418_vm0, %v2417_v0  ;;  %v1804_v5 = vld [vmem:[#allocation2] ss:$0 sm:$0xff]  ;;  %s2419_s3 = smov 96   ;;  %vm715_vm2 = vcmask 64512  }
  0xfe   : > { %s2970_s16 = smov (!%p581_p12, %s2508_s16), 1  ;;  %1883 = vmatprep.subr.bf16.mxu1 %v2417_v0  ;;  %1885 = vmatprep.mubr.msk.bf16.mxu1 %vm2418_vm0, %v2417_v0  ;;  %s2420_s29 = smov 64   ;;  %v2098_v26 = vld [vmem:[%s2931_s4] sm:$0xff]   ;;  %v2099_v27 = vld [vmem:[%s2931_s4 + $0x8] sm:$0xff]   ;;  %vm733_vm3 = vcmask 1043456  }
  0xff   : > { %s1802_s17 = sshll.u32 %s2970_s16, 3  ;;  %1876 = vmatpush3.bf16.msra.mxu0 %v2094_v1  ;;  %v2096_v33 = vld [vmem:[#allocation6] sm:$0xff]   ;;  %v2097_v35 = vld [vmem:[#allocation6 + $0x8] sm:$0xff]   ;;  %v1816_v41 = vld [vmem:[#allocation7] ss:$0 sm:$0xff]  ;;  %s2421_s23 = smov 120  }
 0x100   : > { %s584_s25 = scalar_lea.vmem %s2927_s0, %s1802_s17  ;;  %1877 = vmatprep.subr.bf16.mxu0 %v2417_v0  ;;  %v1810_v51 = vld [vmem:[#allocation4] ss:$0 sm:$0xff]  ;;  %s587_s21 = scalar_lea.vmem %s2928_s1, %s2970_s16 }
 0x101   : > { %v2769_v3 = vld [vmem:[%s584_s25] sm:$0xff]  ;;  %s2422_s19 = smov 112   ;;  %s2423_s22 = smov 56  }
 0x102   : > { %v600_v4 = vpack.c.bf16 %v2769_v3, %v2769_v3  ;;  %s2424_s20 = smov 48   ;;  %s2425_s28 = smov 104  }
 0x103   : > { %1878 = vmatpush3.bf16.msra.mxu0 %v2095_v2  ;;  %s2426_s5 = smov 40   ;;  %s2967_s15 = sld [smem:[#allocation25_spill]] }
 0x104   : > { %1889 = vmatprep.subr.bf16.mxu0 %v2417_v0 }
 0x106   : > { %1880 = vmatmul.mubr.msk.bf16.vlgmr.msra.gmra.mrb[0].mxu0 %vm619_vm1, %v600_v4 }
 0x107   : > { %1891 = vmatprep.mubr.msk.bf16.mxu0 %vm2418_vm0, %v2417_v0 }
 0x109   : > { %s591_s26 = scalar_lea.vmem %s2967_s15, %s1802_s17 }
 0x1d9   : > { %v657_v6 = vpop.f32.mrb[0].mxu0 }
 0x1da   : > { %v658_v7 = vadd.f32 %v1804_v5, %v657_v6  ;;  %v1881_v8 = vpop.f32.mrb[1].mxu0 }
 0x1db   : > { %v660_v9 = vpop.f32.mrb[2].mxu0 }
 0x1dc   : > { %v2778_v10 = vpack.c.bf16 %v658_v7, %v658_v7  ;;  %v1882_v11 = vpop.f32.mrb[3].mxu0  ;;  %v663_v14 = vmul.f32 0.17677669, %v658_v7  ;;  %v1814_v9 = vld [vmem:[#allocation9] ss:$0 sm:$0xff] }
 0x1de   : > { %667 = vrot.lane.b32.xlu0 %v2778_v10, %s2419_s3  ;;  %v664_v15 = vpack.c.bf16 %v663_v14, %v663_v14 }
 0x250   : > { %v668_v12 = vpop.permute.xlu0 %667 }
 0x251   : > { %v673_v13 = vsel %vm619_vm1, %v668_v12, 0 }
 0x252   : > { %1884 = vmatpush3.bf16.xpose.msra.mxu1 %v673_v13 }
 0x253   : > { %1895 = vmatprep.subr.bf16.mxu1 %v2417_v0 }
 0x259   : > { %1886 = vmatmul.mubr.msk.bf16.vlgmr.msra.gmra.mrb[0].mxu1 %vm619_vm1, %v664_v15 }
 0x25a   : > { %1899 = vmatprep.mubr.msk.bf16.mxu1 %vm2418_vm0, %v2417_v0  ;;  %1896 = vmatpush3.bf16.msra.mxu1 %v2098_v26 }
 0x25b   : > { %1897 = vmatprep.subr.bf16.mxu1 %v2417_v0 }
 0x25e   : > { %1898 = vmatpush3.bf16.msra.mxu1 %v2099_v27 }
 0x25f   : > { %1911 = vmatprep.subr.bf16.mxu1 %v2417_v0 }
 0x32c   : > { %v709_v16 = vpop.f32.mrb[0].mxu1 }
 0x32d   : > { %v1887_v17 = vpop.f32.mrb[1].mxu1  ;;  %v716_v18 = vsel %vm715_vm2, %v709_v16, -inf }
 0x32e   : > { %717 = vmax.xlane.f32.xlu0 %v716_v18  ;;  %v712_v19 = vpop.f32.mrb[2].mxu1 }
 0x32f   : > { %v1888_v20 = vpop.f32.mrb[3].mxu1 }
 0x3bb   : > { %v718_v21 = vpop.xlane.xlu0 %717 }
 0x3bc   : > { %v719_v22 = vsub.f32 %v709_v16, %v718_v21 }
 0x3be   : > { %v720_v23 = vmul.f32 1.442695, %v719_v22 }
 0x3c0   : > { %2100 = vpow2.f32 %v720_v23 }
 0x3ca   : > { %v2101_v24 = vpop.eup %2100 }
 0x3cb   : > { %v722_v25 = vsel %vm715_vm2, %v2101_v24, 0.0 }
 0x3cc   : > { %723 = vadd.xlane.f32.xlu1 %v722_v25 }
 0x3dd   : > { %728 = vrot.lane.b32.xlu1 %v2778_v10, %s2420_s29 }
 0x459   : > { %v724_v28 = vpop.xlane.xlu1 %723 }
 0x45a   : > { %2102 = vrcp.f32 %v724_v28 }
 0x45d   : > { %v729_v29 = vpop.permute.xlu1 %728 }
 0x45e   : > { %v735_v30 = vsel %vm733_vm3, %v729_v29, 0  ;;  %v2837_v29 = vld [vmem:[%s587_s21] ss:$0 sm:$0xff] }
 0x45f   : > { %1890 = vmatpush3.bf16.msra.mxu0 %v735_v30 }
 0x460   : > { %1903 = vmatprep.subr.bf16.mxu0 %v2417_v0 }
 0x464   : > { %v2103_v31 = vpop.eup %2102 }
 0x465   : > { %v726_v32 = vmul.f32 %v2103_v31, %v2101_v24 }
 0x467   : > { %v727_v34 = vpack.c.bf16 %v726_v32, %v726_v32 }
 0x469   : > { %1892 = vmatmul.mubr.msk.bf16.vlgmr.msra.gmra.mrb[4].mxu0 %vm715_vm2, %v727_v34 }
 0x46a   : > { %1904 = vmatpush3.bf16.msra.mxu0 %v2096_v33  ;;  %1907 = vmatprep.mubr.msk.bf16.mxu0 %vm2418_vm0, %v2417_v0 }
 0x46b   : > { %1905 = vmatprep.subr.bf16.mxu0 %v2417_v0 }
 0x46e   : > { %1906 = vmatpush3.bf16.msra.mxu0 %v2097_v35 }
 0x46f   : > { %1917 = vmatprep.subr.bf16.mxu0 %v2417_v0 }
 0x471   : > { %1908 = vmatmul.mubr.msk.bf16.vlgmr.msra.gmra.mrb[8].mxu0 %vm619_vm1, %v668_v12  ;;  %v1815_v12 = vld [vmem:[#allocation10] ss:$0 sm:$0xff] }
 0x472   : > { %1918 = vmatpush3.bf16.msra.mxu0 %v735_v30  ;;  %1919 = vmatprep.mubr.msk.bf16.mxu0 %vm2418_vm0, %v2417_v0 }
 0x473   : > { %1929 = vmatprep.subr.bf16.mxu0 %v2417_v0 }
 0x53c   : > { %v771_v36 = vpop.f32.mrb[4].mxu0 }
 0x53d   : > { %v782_v37 = vpack.c.bf16 %v771_v36, %v771_v36  ;;  %v1893_v38 = vpop.f32.mrb[5].mxu0 }
 0x53e   : > { %v774_v39 = vpop.f32.mrb[6].mxu0 }
 0x53f   : > { %v1894_v40 = vpop.f32.mrb[7].mxu0  ;;  %1900 = vmatmul.mubr.msk.bf16.vlgmr.msra.gmra.mrb[4].mxu1 %vm619_vm1, %v782_v37 }
 0x540   : > { %1913 = vmatprep.mubr.msk.bf16.mxu1 %vm2418_vm0, %v2417_v0 }
 0x544   : > { %v932_v42 = vpop.f32.mrb[8].mxu0 }
 0x545   : > { %v933_v43 = vadd.f32 %v1816_v41, %v932_v42  ;;  %v1909_v44 = vpop.f32.mrb[9].mxu0 }
 0x546   : > { %v935_v45 = vpop.f32.mrb[10].mxu0 }
 0x547   : > { %v938_v46 = vmax.f32 %v933_v43, 0.0  ;;  %v1910_v47 = vpop.f32.mrb[11].mxu0 }
 0x549   : > { %v939_v48 = vsel %vm619_vm1, %v938_v46, 0.0 }
 0x54a   : > { %940 = vadd.xlane.f32.xlu1 %v939_v48 }
 0x5d7   : > { %v941_v49 = vpop.xlane.xlu1 %940 }
 0x5d8   : > { %v942_v50 = vmul.f32 0.03125, %v941_v49 }
 0x5da   : > { %v943_v53 = vsub.f32 %v938_v46, %v942_v50 }
 0x5dc   : > { %v944_v60 = vmul.f32 %v943_v53, %v943_v53 }
 0x5de   : > { %v945_v61 = vsel %vm619_vm1, %v944_v60, 0.0 }
 0x612   : > { %v838_v52 = vpop.f32.mrb[4].mxu1 }
 0x613   : > { %v839_v54 = vadd.f32 %v1810_v51, %v838_v52  ;;  %v1901_v55 = vpop.f32.mrb[5].mxu1 }
 0x614   : > { %v841_v56 = vpop.f32.mrb[6].mxu1 }
 0x615   : > { %v844_v57 = vmax.f32 %v839_v54, 0.0  ;;  %v1902_v58 = vpop.f32.mrb[7].mxu1  ;;  %v955_v56 = vld [vmem:[%s2937_s10 + $0x4] sm:$0xf] }
 0x617   : > { %v847_v59 = vsel %vm619_vm1, %v844_v57, 0.0 }
 0x618   : > { %848 = vadd.xlane.f32.xlu0 %v847_v59 }
 0x61c   : > { %946 = vadd.xlane.f32.xlu0 %v945_v61 }
 0x6a5   : > { %v849_v62 = vpop.xlane.xlu0 %848 }
 0x6a6   : > { %v851_v63 = vmul.f32 0.03125, %v849_v62  ;;  %v954_v62 = vld [vmem:[%s2937_s10] sm:$0xf] }
 0x6a8   : > { %v852_v1 = vsub.f32 %v844_v57, %v851_v63  ;;  %v1186_v57 = vsel %vm733_vm3, %v955_v56, 0 }
 0x6a9   : > { %v947_v2 = vpop.xlane.xlu0 %946 }
 0x6aa   : > { %v948_v4 = vmul.f32 0.03125, %v947_v2  ;;  %v853_v5 = vmul.f32 %v852_v1, %v852_v1  ;;  %v1232_v2 = vsel %vm733_vm3, %v954_v62, 0 }
 0x6ac   : > { %v949_v6 = vadd.f32 1e-05, %v948_v4  ;;  %v854_v7 = vsel %vm619_vm1, %v853_v5, 0.0 }
 0x6ad   : > { %855 = vadd.xlane.f32.xlu0 %v854_v7 }
 0x6ae   : > { %2104 = vrsqrt.f32 %v949_v6 }
 0x6b8   : > { %v2105_v8 = vpop.eup %2104 }
 0x6b9   : > { %v951_v11 = vmul.f32 %v2105_v8, %v943_v53 }
 0x6bb   : > { %v952_v13 = vmul.f32 %v1814_v9, %v951_v11 }
 0x6bd   : > { %v953_v14 = vadd.f32 %v1815_v12, %v952_v13 }
 0x6bf   : > { %v2815_v15 = vpack.c.bf16 %v953_v14, %v953_v14 }
 0x6c1   : > { %v971_v16 = vsel %vm715_vm2, %v2815_v15, 0 }
 0x6c2   : > { %1912 = vmatpush3.bf16.xpose.msra.mxu1 %v971_v16 }
 0x6c3   : > { %1073 = vrot.lane.b32.xlu0 %v2815_v15, %s2421_s23  ;;  %1923 = vmatprep.subr.bf16.mxu1 %v2417_v0 }
 0x73a   : > { %v856_v17 = vpop.xlane.xlu0 %855 }
 0x73b   : > { %v857_v18 = vmul.f32 0.03125, %v856_v17 }
 0x73d   : > { %v858_v19 = vadd.f32 1e-05, %v857_v18 }
 0x73e   : > { %v1074_v25 = vpop.permute.xlu0 %1073 }
 0x73f   : > { %2106 = vrsqrt.f32 %v858_v19  ;;  %v1079_v27 = vsel %vm715_vm2, %v1074_v25, 0 }
 0x749   : > { %v2107_v20 = vpop.eup %2106 }
 0x74a   : > { %v860_v21 = vmul.f32 %v2107_v20, %v852_v1 }
 0x74c   : > { %v867_v22 = vmul.f32 %v1814_v9, %v860_v21 }
 0x74e   : > { %v874_v23 = vadd.f32 %v1815_v12, %v867_v22 }
 0x750   : > { %v958_v24 = vmul.f32 0.35355338, %v874_v23 }
 0x752   : > { %v2821_v26 = vpack.c.bf16 %v958_v24, %v958_v24 }
 0x754   : > { %1070 = vrot.lane.b32.xlu1 %v2821_v26, %s2421_s23  ;;  %1914 = vmatmul.mubr.msk.bf16.vlgmr.msra.gmra.mrb[8].mxu1 %vm715_vm2, %v2821_v26 }
 0x755   : > { %1924 = vmatpush3.bf16.xpose.msra.mxu1 %v1079_v27  ;;  %1925 = vmatprep.mubr.msk.bf16.mxu1 %vm2418_vm0, %v2417_v0 }
 0x756   : > { %1935 = vmatprep.subr.bf16.mxu1 %v2417_v0 }
 0x7c6   : > { %v1071_v28 = vpop.permute.xlu1 %1070 }
 0x7c7   : > { %1926 = vmatmul.mubr.msk.bf16.vlgmr.msra.gmra.mrb[12].mxu1 %vm715_vm2, %v1071_v28 }
 0x7c8   : > { %1937 = vmatprep.mubr.msk.bf16.mxu1 %vm2418_vm0, %v2417_v0  ;;  %1936 = vmatpush3.bf16.msra.mxu1 %v1186_v57 }
 0x7c9   : > { %1947 = vmatprep.subr.bf16.mxu1 %v2417_v0 }
 0x827   : > { %v1007_v30 = vpop.f32.mrb[8].mxu1 }
 0x828   : > { %v1008_v31 = vadd.f32 %v2837_v29, %v1007_v30  ;;  %v1915_v32 = vpop.f32.mrb[9].mxu1 }
 0x829   : > { %v1010_v33 = vpop.f32.mrb[10].mxu1 }
 0x82a   : > { %v1916_v34 = vpop.f32.mrb[11].mxu1  ;;  %v1013_v35 = vsel %vm715_vm2, %v1008_v31, -inf }
 0x82b   : > { %1014 = vmax.xlane.f32.xlu0 %v1013_v35 }
 0x89a   : > { %v1115_v36 = vpop.f32.mrb[12].mxu1 }
 0x89b   : > { %v1116_v37 = vadd.f32 %v2837_v29, %v1115_v36  ;;  %v1927_v38 = vpop.f32.mrb[13].mxu1 }
 0x89c   : > { %v1118_v39 = vpop.f32.mrb[14].mxu1 }
 0x89d   : > { %v1928_v40 = vpop.f32.mrb[15].mxu1  ;;  %v1121_v41 = vsel %vm715_vm2, %v1116_v37, -inf }
 0x89e   : > { %1122 = vmax.xlane.f32.xlu1 %v1121_v41 }
 0x8af   : > { %1276 = vrot.lane.b32.xlu1 %v2815_v15, %s2422_s19 }
 0x8b3   : > { %1274 = vrot.lane.b32.xlu1 %v2821_v26, %s2422_s19 }
 0x8b8   : > { %v1015_v42 = vpop.xlane.xlu0 %1014 }
 0x8b9   : > { %v1016_v43 = vsub.f32 %v1008_v31, %v1015_v42 }
 0x8bb   : > { %v1017_v44 = vmul.f32 1.442695, %v1016_v43 }
 0x8bd   : > { %2108 = vpow2.f32 %v1017_v44 }
 0x8c7   : > { %v2109_v45 = vpop.eup %2108 }
 0x8c8   : > { %v1019_v46 = vsel %vm715_vm2, %v2109_v45, 0.0 }
 0x8c9   : > { %1020 = vadd.xlane.f32.xlu0 %v1019_v46 }
 0x92b   : > { %v1123_v47 = vpop.xlane.xlu1 %1122 }
 0x92c   : > { %v1124_v48 = vsub.f32 %v1116_v37, %v1123_v47 }
 0x92e   : > { %v1125_v49 = vmul.f32 1.442695, %v1124_v48 }
 0x92f   : > { %v1277_v9 = vpop.permute.xlu1 %1276 }
 0x930   : > { %2110 = vpow2.f32 %v1125_v49  ;;  %v1282_v16 = vsel %vm715_vm2, %v1277_v9, 0 }
 0x933   : > { %v1275_v18 = vpop.permute.xlu1 %1274 }
 0x93a   : > { %v2111_v50 = vpop.eup %2110 }
 0x93b   : > { %v1127_v51 = vsel %vm715_vm2, %v2111_v50, 0.0 }
 0x93c   : > { %1128 = vadd.xlane.f32.xlu0 %v1127_v51 }
 0x952   : > { %1133 = vrot.lane.b32.xlu0 %v2778_v10, %s2423_s22 }
 0x956   : > { %v1021_v52 = vpop.xlane.xlu0 %1020 }
 0x957   : > { %2112 = vrcp.f32 %v1021_v52 }
 0x961   : > { %v2113_v53 = vpop.eup %2112 }
 0x962   : > { %v1023_v54 = vmul.f32 %v2113_v53, %v2109_v45 }
 0x964   : > { %v1024_v55 = vpack.c.bf16 %v1023_v54, %v1023_v54 }
 0x966   : > { %1920 = vmatmul.mubr.msk.bf16.vlgmr.msra.gmra.mrb[12].mxu0 %vm715_vm2, %v1024_v55 }
 0x967   : > { %1931 = vmatprep.mubr.msk.bf16.mxu0 %vm2418_vm0, %v2417_v0 }
 0x9c9   : > { %v1129_v58 = vpop.xlane.xlu0 %1128 }
 0x9ca   : > { %2114 = vrcp.f32 %v1129_v58 }
 0x9cd   : > { %v1134_v59 = vpop.permute.xlu0 %1133 }
 0x9ce   : > { %v1139_v60 = vsel %vm733_vm3, %v1134_v59, 0 }
 0x9cf   : > { %1930 = vmatpush3.bf16.msra.mxu0 %v1139_v60 }
 0x9d0   : > { %1941 = vmatprep.subr.bf16.mxu0 %v2417_v0 }
 0x9d4   : > { %v2115_v61 = vpop.eup %2114 }
 0x9d5   : > { %v1131_v63 = vmul.f32 %v2115_v61, %v2111_v50 }
 0x9d7   : > { %v1132_v1 = vpack.c.bf16 %v1131_v63, %v1131_v63 }
 0x9d9   : > { %1932 = vmatmul.mubr.msk.bf16.vlgmr.msra.gmra.mrb[16].mxu0 %vm715_vm2, %v1132_v1 }
 0x9da   : > { %1942 = vmatpush3.bf16.msra.mxu0 %v1232_v2  ;;  %1943 = vmatprep.mubr.msk.bf16.mxu0 %vm2418_vm0, %v2417_v0 }
 0x9db   : > { %1953 = vmatprep.subr.bf16.mxu0 %v2417_v0 }
 0xa39   : > { %v1062_v4 = vpop.f32.mrb[12].mxu0 }
 0xa3a   : > { %v1068_v5 = vpack.c.bf16 %v1062_v4, %v1062_v4  ;;  %v1921_v6 = vpop.f32.mrb[13].mxu0 }
 0xa3b   : > { %v1065_v7 = vpop.f32.mrb[14].mxu0 }
 0xa3c   : > { %v1922_v8 = vpop.f32.mrb[15].mxu0  ;;  %1944 = vmatmul.mubr.msk.bf16.vlgmr.msra.gmra.mrb[20].mxu0 %vm715_vm2, %v1068_v5 }
 0xa3d   : > { %1955 = vmatprep.mubr.msk.bf16.mxu0 %vm2418_vm0, %v2417_v0 }
 0xaac   : > { %v1175_v11 = vpop.f32.mrb[16].mxu0 }
 0xaad   : > { %v1181_v12 = vpack.c.bf16 %v1175_v11, %v1175_v11  ;;  %v1933_v13 = vpop.f32.mrb[17].mxu0 }
 0xaae   : > { %v1178_v14 = vpop.f32.mrb[18].mxu0 }
 0xaaf   : > { %v1934_v17 = vpop.f32.mrb[19].mxu0  ;;  %1938 = vmatmul.mubr.msk.bf16.vlgmr.msra.gmra.mrb[16].mxu1 %vm715_vm2, %v1181_v12 }
 0xab0   : > { %1948 = vmatpush3.bf16.xpose.msra.mxu1 %v1282_v16  ;;  %1949 = vmatprep.mubr.msk.bf16.mxu1 %vm2418_vm0, %v2417_v0 }
 0xab1   : > { %1959 = vmatprep.subr.bf16.mxu1 %v2417_v0 }
 0xab7   : > { %1950 = vmatmul.mubr.msk.bf16.vlgmr.msra.gmra.mrb[20].mxu1 %vm715_vm2, %v1275_v18 }
 0xab8   : > { %1961 = vmatprep.mubr.msk.bf16.mxu1 %vm2418_vm0, %v2417_v0 }
 0xb0f   : > { %v1268_v19 = vpop.f32.mrb[20].mxu0 }
 0xb10   : > { %v1945_v20 = vpop.f32.mrb[21].mxu0 }
 0xb11   : > { %v1271_v21 = vpop.f32.mrb[22].mxu0 }
 0xb12   : > { %v1946_v22 = vpop.f32.mrb[23].mxu0 }
 0xb13   : > { %v1833_v22 = vld [vmem:[#allocation12] ss:$0 sm:$0xff] }
 0xb82   : > { %v1222_v23 = vpop.f32.mrb[16].mxu1 }
 0xb83   : > { %v2877_v24 = vadd.f32 %v1268_v19, %v1222_v23  ;;  %v1939_v25 = vpop.f32.mrb[17].mxu1 }
 0xb84   : > { %v1225_v27 = vpop.f32.mrb[18].mxu1 }
 0xb85   : > { %v1940_v28 = vpop.f32.mrb[19].mxu1 }
 0xb8a   : > { %v1318_v30 = vpop.f32.mrb[20].mxu1 }
 0xb8b   : > { %v1319_v31 = vadd.f32 %v2837_v29, %v1318_v30  ;;  %v1951_v32 = vpop.f32.mrb[21].mxu1 }
 0xb8c   : > { %v1321_v33 = vpop.f32.mrb[22].mxu1 }
 0xb8d   : > { %v1952_v34 = vpop.f32.mrb[23].mxu1  ;;  %v1324_v35 = vsel %vm715_vm2, %v1319_v31, -inf }
 0xb8e   : > { %1325 = vmax.xlane.f32.xlu0 %v1324_v35 }
 0xba4   : > { %1336 = vrot.lane.b32.xlu0 %v2778_v10, %s2424_s20 }
 0xba8   : > { %1432 = vrot.lane.b32.xlu0 %v2821_v26, %s2425_s28 }
 0xc1b   : > { %v1326_v36 = vpop.xlane.xlu0 %1325 }
 0xc1c   : > { %v1327_v37 = vsub.f32 %v1319_v31, %v1326_v36 }
 0xc1e   : > { %v1328_v38 = vmul.f32 1.442695, %v1327_v37 }
 0xc1f   : > { %v1337_v39 = vpop.permute.xlu0 %1336 }
 0xc20   : > { %2116 = vpow2.f32 %v1328_v38  ;;  %v1342_v40 = vsel %vm733_vm3, %v1337_v39, 0 }
 0xc21   : > { %1954 = vmatpush3.bf16.msra.mxu0 %v1342_v40 }
 0xc22   : > { %1965 = vmatprep.subr.bf16.mxu0 %v2417_v0 }
 0xc23   : > { %v1433_v48 = vpop.permute.xlu0 %1432 }
 0xc2a   : > { %v2117_v41 = vpop.eup %2116 }
 0xc2b   : > { %v1330_v42 = vsel %vm715_vm2, %v2117_v41, 0.0 }
 0xc2c   : > { %1331 = vadd.xlane.f32.xlu1 %v1330_v42 }
 0xc3d   : > { %1434 = vrot.lane.b32.xlu1 %v2815_v15, %s2425_s28  ;;  %v956_v15 = vld [vmem:[%s2937_s10 + $0x8] sm:$0xf] }
 0xc3e   : > { %v1389_v49 = vsel %vm733_vm3, %v956_v15, 0 }
 0xc3f   : > { %1960 = vmatpush3.bf16.msra.mxu1 %v1389_v49 }
 0xc40   : > { %1971 = vmatprep.subr.bf16.mxu1 %v2417_v0 }
 0xcb9   : > { %v1332_v43 = vpop.xlane.xlu1 %1331 }
 0xcba   : > { %2118 = vrcp.f32 %v1332_v43  ;;  %v1835_v43 = vld [vmem:[#allocation15] ss:$0 sm:$0xff] }
 0xcbd   : > { %v1435_v45 = vpop.permute.xlu1 %1434 }
 0xcbe   : > { %v1440_v47 = vsel %vm715_vm2, %v1435_v45, 0 }
 0xcc4   : > { %v2119_v44 = vpop.eup %2118 }
 0xcc5   : > { %v1334_v26 = vmul.f32 %v2119_v44, %v2117_v41  ;;  %v1834_v41 = vld [vmem:[#allocation13] ss:$0 sm:$0xff] }
 0xcc7   : > { %v1335_v46 = vpack.c.bf16 %v1334_v26, %v1334_v26 }
 0xcc9   : > { %1956 = vmatmul.mubr.msk.bf16.vlgmr.msra.gmra.mrb[24].mxu0 %vm715_vm2, %v1335_v46 }
 0xcca   : > { %1966 = vmatpush3.bf16.xpose.msra.mxu0 %v1440_v47  ;;  %1967 = vmatprep.mubr.msk.bf16.mxu0 %vm2418_vm0, %v2417_v0 }
 0xccb   : > { %1977 = vmatprep.subr.bf16.mxu0 %v2417_v0 }
 0xcd1   : > { %1968 = vmatmul.mubr.msk.bf16.vlgmr.msra.gmra.mrb[28].mxu0 %vm715_vm2, %v1433_v48 }
 0xcd2   : > { %1979 = vmatprep.mubr.msk.bf16.mxu0 %vm2418_vm0, %v2417_v0 }
 0xd9c   : > { %v1378_v50 = vpop.f32.mrb[24].mxu0 }
 0xd9d   : > { %v1384_v51 = vpack.c.bf16 %v1378_v50, %v1378_v50  ;;  %v1957_v52 = vpop.f32.mrb[25].mxu0 }
 0xd9e   : > { %v1381_v53 = vpop.f32.mrb[26].mxu0 }
 0xd9f   : > { %v1958_v54 = vpop.f32.mrb[27].mxu0  ;;  %1962 = vmatmul.mubr.msk.bf16.vlgmr.msra.gmra.mrb[24].mxu1 %vm715_vm2, %v1384_v51 }
 0xda0   : > { %1973 = vmatprep.mubr.msk.bf16.mxu1 %vm2418_vm0, %v2417_v0  ;;  %v957_v0 = vld [vmem:[%s2937_s10 + $0xc] sm:$0xf] }
 0xda4   : > { %v1476_v55 = vpop.f32.mrb[28].mxu0 }
 0xda5   : > { %v1477_v56 = vadd.f32 %v2837_v29, %v1476_v55  ;;  %v1969_v57 = vpop.f32.mrb[29].mxu0  ;;  %v1547_v29 = vsel %vm733_vm3, %v957_v0, 0 }
 0xda6   : > { %v1479_v58 = vpop.f32.mrb[30].mxu0  ;;  %1978 = vmatpush3.bf16.msra.mxu0 %v1547_v29 }
 0xda7   : > { %v1970_v59 = vpop.f32.mrb[31].mxu0  ;;  %v1482_v60 = vsel %vm715_vm2, %v1477_v56, -inf }
 0xda8   : > { %1483 = vmax.xlane.f32.xlu1 %v1482_v60 }
 0xe35   : > { %v1484_v61 = vpop.xlane.xlu1 %1483 }
 0xe36   : > { %v1485_v62 = vsub.f32 %v1477_v56, %v1484_v61 }
 0xe38   : > { %v1486_v63 = vmul.f32 1.442695, %v1485_v62 }
 0xe3a   : > { %2120 = vpow2.f32 %v1486_v63 }
 0xe44   : > { %v2121_v1 = vpop.eup %2120 }
 0xe45   : > { %v1488_v2 = vsel %vm715_vm2, %v2121_v1, 0.0 }
 0xe46   : > { %1489 = vadd.xlane.f32.xlu0 %v1488_v2 }
 0xe5c   : > { %1494 = vrot.lane.b32.xlu0 %v2778_v10, %s2426_s5 }
 0xe72   : > { %v1425_v4 = vpop.f32.mrb[24].mxu1 }
 0xe73   : > { %v1431_v5 = vadd.f32 %v1425_v4, %v2877_v24  ;;  %v1963_v6 = vpop.f32.mrb[25].mxu1 }
 0xe74   : > { %v1428_v7 = vpop.f32.mrb[26].mxu1 }
 0xe75   : > { %v1964_v8 = vpop.f32.mrb[27].mxu1 }
 0xed3   : > { %v1490_v9 = vpop.xlane.xlu0 %1489 }
 0xed4   : > { %2122 = vrcp.f32 %v1490_v9 }
 0xed7   : > { %v1495_v11 = vpop.permute.xlu0 %1494 }
 0xed8   : > { %v1500_v12 = vsel %vm733_vm3, %v1495_v11, 0 }
 0xed9   : > { %1972 = vmatpush3.bf16.msra.mxu1 %v1500_v12 }
 0xede   : > { %v2123_v10 = vpop.eup %2122 }
 0xedf   : > { %v1492_v13 = vmul.f32 %v2123_v10, %v2121_v1 }
 0xee1   : > { %v1493_v14 = vpack.c.bf16 %v1492_v13, %v1492_v13 }
 0xee3   : > { %1974 = vmatmul.mubr.msk.bf16.vlgmr.msra.gmra.mrb[28].mxu1 %vm715_vm2, %v1493_v14 }
 0xfb6   : > { %v1536_v16 = vpop.f32.mrb[28].mxu1 }
 0xfb7   : > { %v1542_v17 = vpack.c.bf16 %v1536_v16, %v1536_v16  ;;  %v1975_v18 = vpop.f32.mrb[29].mxu1 }
 0xfb8   : > { %v1539_v19 = vpop.f32.mrb[30].mxu1 }
 0xfb9   : > { %v1976_v20 = vpop.f32.mrb[31].mxu1  ;;  %1980 = vmatmul.mubr.msk.bf16.vlgmr.msra.gmra.mrb[32].mxu0 %vm715_vm2, %v1542_v17 }
0x108c   : > { %v1583_v21 = vpop.f32.mrb[32].mxu0 }
0x108d   : > { %v1589_v23 = vadd.f32 %v1583_v21, %v1431_v5  ;;  %v1981_v24 = vpop.f32.mrb[33].mxu0 }
0x108e   : > { %v1586_v25 = vpop.f32.mrb[34].mxu0 }
0x108f   : > { %v1597_v27 = vadd.f32 %v1833_v22, %v1589_v23  ;;  %v1982_v28 = vpop.f32.mrb[35].mxu0 }
0x1091   : > { %v1598_v30 = vadd.f32 %v1597_v27, %v2769_v3 }
0x1093   : > { %v1601_v31 = vsel %vm619_vm1, %v1598_v30, 0.0 }
0x1094   : > { %1602 = vadd.xlane.f32.xlu1 %v1601_v31 }
0x1121   : > { %v1603_v32 = vpop.xlane.xlu1 %1602 }
0x1122   : > { %v1604_v33 = vmul.f32 0.03125, %v1603_v32 }
0x1124   : > { %v1605_v34 = vsub.f32 %v1598_v30, %v1604_v33 }
0x1126   : > { %v1606_v35 = vmul.f32 %v1605_v34, %v1605_v34 }
0x1128   : > { %v1607_v36 = vsel %vm619_vm1, %v1606_v35, 0.0 }
0x1129   : > { %1608 = vadd.xlane.f32.xlu1 %v1607_v36 }
0x11b6   : > { %v1609_v37 = vpop.xlane.xlu1 %1608 }
0x11b7   : > { %v1610_v38 = vmul.f32 0.03125, %v1609_v37 }
0x11b9   : > { %v1611_v39 = vadd.f32 1e-06, %v1610_v38 }
0x11bb   : > { %2124 = vrsqrt.f32 %v1611_v39 }
0x11c5   : > { %v2125_v40 = vpop.eup %2124 }
0x11c6   : > { %v1613_v42 = vmul.f32 %v2125_v40, %v1605_v34 }
0x11c8   : > { %v1620_v3 = vmul.f32 %v1834_v41, %v1613_v42 }
0x11ca   : > { %v1627_v44 = vadd.f32 %v1835_v43, %v1620_v3 }
0x11cc   : > { %1628 = vst.msk [vmem:[%s591_s26] sm:$0xff] %vm619_vm1, %v1627_v44 }
0x11cd PF: > { %s2968_s21 = sld [smem:[#allocation21_spill]] }
0x11d3   : > { %s29_s29 = sadd.s32 1, %s2968_s21  }
0x11d4   : > { %p26_p13 = scmp.ge.s32.totalorder %s29_s29, 4  }
0x11d6   :  { %28 = sbr.rel (!%p26_p13) target bundleno = 10 (0xa), region = 146 }
0x11dd   :  { %1648 = vsyncpa [#allocation3], 1 }
0x11de   :  { %1650 = vsyncpa [#allocation3 + $0x1], 1 }
0x11df   :  { %1651 = vsyncpa [#allocation5], 1 }
0x11e0   :  { %1652 = vsyncpa [#allocation8], 1 }
0x11e1   :  { %1653 = vsyncpa [#allocation11], 1 }
0x11e2   :  { %1654 = vsyncpa [#allocation14], 1 }

// kernel: socml_forward.5
= control target key start
LH: loop header
LB: loop body
LE: loop exit
PB: predicated region body
PF: predicated region fallthrough
CT: control target
= control target key end

     0   :  { %s2062_s29 = smov 0   ;;  %s2301_s0 = inlined_call_operand.vmem [shape: f32[2,16,32], index: 0, kind: input, shape index: {}]   ;;  %s2302_s1 = inlined_call_operand.vmem [shape: f32[2,1,16], index: 1, kind: input, shape index: {}]   ;;  %s2303_s2 = inlined_call_operand.vmem [shape: bf16[32,96], index: 2, kind: input, shape index: {}]   ;;  %s2304_s3 = inlined_call_operand.vmem [shape: f32[1,96], index: 3, kind: input, shape index: {}]   ;;  %s2305_s4 = inlined_call_operand.vmem [shape: bf16[32,32], index: 4, kind: input, shape index: {}]   ;;  %s2306_s5 = inlined_call_operand.vmem [shape: f32[1,32], index: 5, kind: input, shape index: {}]   ;;  %s2307_s6 = inlined_call_operand.vmem [shape: bf16[32,32], index: 6, kind: input, shape index: {}]   ;;  %s2308_s7 = inlined_call_operand.vmem [shape: f32[1,32], index: 7, kind: input, shape index: {}]   ;;  %s2309_s8 = inlined_call_operand.vmem [shape: f32[1,32], index: 8, kind: input, shape index: {}]   ;;  %s2310_s9 = inlined_call_operand.vmem [shape: f32[1,32], index: 9, kind: input, shape index: {}]   ;;  %s2311_s10 = inlined_call_operand.vmem [shape: bf16[32,32], index: 10, kind: input, shape index: {}]   ;;  %s2312_s11 = inlined_call_operand.vmem [shape: f32[1,32], index: 11, kind: input, shape index: {}]   ;;  %s2313_s12 = inlined_call_operand.vmem [shape: f32[1,32], index: 12, kind: input, shape index: {}]   ;;  %s2314_s13 = inlined_call_operand.vmem [shape: f32[1,32], index: 13, kind: input, shape index: {}]   ;;  %s2315_s14 = inlined_call_operand.vmem [shape: f32[2,16,32], index: 14, kind: output, shape index: {}]  }
   0x1 LB: > { %s1703_s30 = sadd.s32 4294967295, %s1975_s29   ;;  %p1707_p0 = scmp.ge.s32.totalorder %s1975_s29, 1  ;;  %s1975_s29 = sphi %s2062_s29, %s24_s29  }
   0x2   : > { %p420_p1 = scmp.lt.s32.totalorder %s1975_s29, 3 }
   0x4   : > { %p421_p2 = pnand %p1707_p0, %p420_p1 }
   0x5   : > { %v1911_v0 = vld [vmem:[%s2303_s2] sm:$0xff] (!%p421_p2)   ;;  %v1977_v1 = vmov (!%p421_p2), 0.0   ;;  %v1912_v2 = vld [vmem:[%s2303_s2 + $0x8] sm:$0xff] (!%p421_p2)   ;;  %vm1978_vm0 = vmmov (!%p421_p2), 0   ;;  %p469_p3 = scmp.lt.s32.totalorder (!%p421_p2), %s1703_s30, 1  ;;  %vm510_vm1 = vcmask (!%p421_p2), 261120  }
   0x6   : > { %424 = sbr.rel (%p421_p2) target bundleno = 4342 (0x10f6), region = 76  ;;  %1785 = vmatprep.subr.bf16.mxu0 (!%p421_p2), %v1977_v1  ;;  %1793 = vmatprep.subr.bf16.mxu1 (!%p421_p2), %v1977_v1  ;;  %v1712_v6 = vld [vmem:[%s2304_s3] ss:$0 sm:$0xff] (!%p421_p2)  ;;  %s1979_s25 = smov (!%p421_p2), 96   ;;  %vm609_vm2 = vcmask (!%p421_p2), 130048   ;;  %v1914_v45 = vld [vmem:[%s2307_s6 + $0x8] sm:$0xff] (!%p421_p2)  }
   0x7   : > { %1786 = vmatpush3.bf16.msra.mxu0 (!%p421_p2), %v1911_v0  ;;  %1789 = vmatprep.mubr.msk.bf16.mxu0 (!%p421_p2), %vm1978_vm0, %v1977_v1  ;;  %s1980_s26 = smov (!%p421_p2), 64   ;;  %v1915_v35 = vld [vmem:[%s2305_s4] sm:$0xff] (!%p421_p2)   ;;  %v1916_v46 = vld [vmem:[%s2305_s4 + $0x8] sm:$0xff] (!%p421_p2)   ;;  %vm905_vm3 = vcmask (!%p421_p2), 64512   ;;  %s1981_s16 = smov (!%p421_p2), 120   ;;  %vm1148_vm4 = vcmask (!%p421_p2), 1043456  }
   0x8   : > { %1787 = vmatprep.subr.bf16.mxu0 (!%p421_p2), %v1977_v1  ;;  %1795 = vmatprep.mubr.msk.bf16.mxu1 (!%p421_p2), %vm1978_vm0, %v1977_v1  ;;  %v1913_v43 = vld [vmem:[%s2307_s6] sm:$0xff] (!%p421_p2)   ;;  %s1982_s21 = smov (!%p421_p2), 112   ;;  %s1984_s27 = smov (!%p421_p2), 48  }
   0x9   : > { %v1724_v52 = vld [vmem:[%s2308_s7] ss:$0 sm:$0xff] (!%p421_p2)  ;;  %s1985_s28 = smov (!%p421_p2), 104   ;;  %s1986_s17 = smov (!%p421_p2), 40  }
   0xa   : > { %v1718_v0 = vld [vmem:[%s2306_s5] ss:$0 sm:$0xff] (!%p421_p2) }
   0xb   : > { %1788 = vmatpush3.bf16.msra.mxu0 (!%p421_p2), %v1912_v2 }
   0xc   : > { %1799 = vmatprep.subr.bf16.mxu0 (!%p421_p2), %v1977_v1 }
   0xd   : > { %s2317_s30 = smov (!%p469_p3, %s1703_s30), 1 }
   0xe   : > { %s1746_s19 = sshll.u32 %s2317_s30, 4  ;;  %s476_s20 = scalar_lea.vmem %s2302_s1, %s2317_s30 }
   0xf   : > { %s473_s22 = scalar_lea.vmem %s2301_s0, %s1746_s19  ;;  %s481_s15 = scalar_lea.vmem %s2315_s14, %s1746_s19 }
  0x10   : > { %v2092_v3 = vld [vmem:[%s473_s22] sm:$0xff]  ;;  %v2094_v4 = vld [vmem:[%s473_s22 + $0x8] sm:$0xff]  ;;  %s1983_s22 = smov 56  }
  0x11   : > { %v491_v5 = vpack.c.bf16 %v2094_v4, %v2092_v3 }
  0x13   : > { %1790 = vmatmul.mubr.msk.bf16.vlgmr.msra.gmra.mrb[0].mxu0 %vm510_vm1, %v491_v5 }
  0x14   : > { %1801 = vmatprep.mubr.msk.bf16.mxu0 %vm1978_vm0, %v1977_v1 }
  0xe6   : > { %v548_v7 = vpop.f32.mrb[0].mxu0 }
  0xe7   : > { %v549_v8 = vadd.f32 %v1712_v6, %v548_v7  ;;  %v1791_v9 = vpop.f32.mrb[1].mxu0 }
  0xe8   : > { %v551_v10 = vpop.f32.mrb[2].mxu0 }
  0xe9   : > { %v552_v11 = vadd.f32 %v1712_v6, %v551_v10  ;;  %v1792_v12 = vpop.f32.mrb[3].mxu0  ;;  %v555_v13 = vmul.f32 0.17677669, %v549_v8 }
  0xeb   : > { %v556_v14 = vmul.f32 0.17677669, %v552_v11  ;;  %v2104_v15 = vpack.c.bf16 %v552_v11, %v549_v8 }
  0xed   : > { %v557_v16 = vpack.c.bf16 %v556_v14, %v555_v13  ;;  %560 = vrot.lane.b32.xlu0 %v2104_v15, %s1979_s25 }
 0x15f   : > { %v561_v17 = vpop.permute.xlu0 %560 }
 0x160   : > { %v566_v18 = vsel %vm510_vm1, %v561_v17, 0 }
 0x161   : > { %1794 = vmatpush3.bf16.xpose.msra.mxu1 %v566_v18 }
 0x162   : > { %1805 = vmatprep.subr.bf16.mxu1 %v1977_v1 }
 0x168   : > { %1796 = vmatmul.mubr.msk.bf16.vlgmr.msra.gmra.mrb[0].mxu1 %vm510_vm1, %v557_v16 }
 0x169   : > { %1809 = vmatprep.mubr.msk.bf16.mxu1 %vm1978_vm0, %v1977_v1  ;;  %1806 = vmatpush3.bf16.msra.mxu1 %v1915_v35 }
 0x16a   : > { %1807 = vmatprep.subr.bf16.mxu1 %v1977_v1 }
 0x16d   : > { %1808 = vmatpush3.bf16.msra.mxu1 %v1916_v46  ;;  %v1723_v46 = vld [vmem:[%s2310_s9] ss:$0 sm:$0xff] }
 0x16e   : > { %1821 = vmatprep.subr.bf16.mxu1 %v1977_v1 }
 0x23b   : > { %v602_v19 = vpop.f32.mrb[0].mxu1 }
 0x23c   : > { %v1797_v20 = vpop.f32.mrb[1].mxu1  ;;  %v610_v21 = vsel %vm609_vm2, %v602_v19, -inf }
 0x23d   : > { %611 = vmax.xlane.f32.xlu0 %v610_v21  ;;  %v605_v22 = vpop.f32.mrb[2].mxu1 }
 0x23e   : > { %v1798_v23 = vpop.f32.mrb[3].mxu1  ;;  %v613_v24 = vsel %vm609_vm2, %v605_v22, -inf }
 0x23f   : > { %614 = vmax.xlane.f32.xlu1 %v613_v24 }
 0x2ca   : > { %v612_v25 = vpop.xlane.xlu0 %611 }
 0x2cb   : > { %v616_v26 = vsub.f32 %v602_v19, %v612_v25 }
 0x2cc   : > { %v615_v27 = vpop.xlane.xlu1 %614 }
 0x2cd   : > { %v618_v28 = vmul.f32 1.442695, %v616_v26  ;;  %v617_v29 = vsub.f32 %v605_v22, %v615_v27 }
 0x2cf   : > { %1917 = vpow2.f32 %v618_v28  ;;  %v620_v30 = vmul.f32 1.442695, %v617_v29 }
 0x2d1   : > { %1919 = vpow2.f32 %v620_v30 }
 0x2d9   : > { %v1918_v31 = vpop.eup %1917 }
 0x2da   : > { %v622_v32 = vsel %vm609_vm2, %v1918_v31, 0.0 }
 0x2db   : > { %v1920_v33 = vpop.eup %1919  ;;  %623 = vadd.xlane.f32.xlu1 %v622_v32 }
 0x2dc   : > { %v625_v34 = vsel %vm609_vm2, %v1920_v33, 0.0 }
 0x2df   : > { %626 = vadd.xlane.f32.xlu1 %v625_v34 }
 0x2f0   : > { %633 = vrot.lane.b32.xlu1 %v2104_v15, %s1980_s26 }
 0x368   : > { %v624_v36 = vpop.xlane.xlu1 %623 }
 0x369   : > { %1921 = vrcp.f32 %v624_v36 }
 0x36c   : > { %v627_v37 = vpop.xlane.xlu1 %626 }
 0x36d   : > { %1923 = vrcp.f32 %v627_v37 }
 0x370   : > { %v634_v38 = vpop.permute.xlu1 %633 }
 0x371   : > { %1800 = vmatpush3.bf16.msra.mxu0 %v634_v38 }
 0x372   : > { %1813 = vmatprep.subr.bf16.mxu0 %v1977_v1 }
 0x373   : > { %v1922_v39 = vpop.eup %1921 }
 0x374   : > { %v630_v41 = vmul.f32 %v1922_v39, %v1918_v31 }
 0x377   : > { %v1924_v40 = vpop.eup %1923 }
 0x378   : > { %v631_v42 = vmul.f32 %v1924_v40, %v1920_v33 }
 0x37a   : > { %v632_v44 = vpack.c.bf16 %v631_v42, %v630_v41  ;;  %v1722_v42 = vld [vmem:[%s2309_s8] ss:$0 sm:$0xff] }
 0x37c   : > { %1802 = vmatmul.mubr.msk.bf16.vlgmr.msra.gmra.mrb[4].mxu0 %vm609_vm2, %v632_v44 }
 0x37d   : > { %1814 = vmatpush3.bf16.msra.mxu0 %v1913_v43  ;;  %1817 = vmatprep.mubr.msk.bf16.mxu0 %vm1978_vm0, %v1977_v1 }
 0x37e   : > { %1815 = vmatprep.subr.bf16.mxu0 %v1977_v1 }
 0x381   : > { %1816 = vmatpush3.bf16.msra.mxu0 %v1914_v45 }
 0x382   : > { %1827 = vmatprep.subr.bf16.mxu0 %v1977_v1 }
 0x384   : > { %1818 = vmatmul.mubr.msk.bf16.vlgmr.msra.gmra.mrb[8].mxu0 %vm510_vm1, %v561_v17 }
 0x385   : > { %1828 = vmatpush3.bf16.msra.mxu0 %v634_v38  ;;  %1829 = vmatprep.mubr.msk.bf16.mxu0 %vm1978_vm0, %v1977_v1 }
 0x386   : > { %1839 = vmatprep.subr.bf16.mxu0 %v1977_v1 }
 0x44f   : > { %v673_v47 = vpop.f32.mrb[4].mxu0 }
 0x450   : > { %v1803_v48 = vpop.f32.mrb[5].mxu0 }
 0x451   : > { %v676_v49 = vpop.f32.mrb[6].mxu0 }
 0x452   : > { %v685_v50 = vpack.c.bf16 %v676_v49, %v673_v47  ;;  %v1804_v51 = vpop.f32.mrb[7].mxu0 }
 0x454   : > { %1810 = vmatmul.mubr.msk.bf16.vlgmr.msra.gmra.mrb[4].mxu1 %vm510_vm1, %v685_v50 }
 0x455   : > { %1823 = vmatprep.mubr.msk.bf16.mxu1 %vm1978_vm0, %v1977_v1 }
 0x457   : > { %v852_v53 = vpop.f32.mrb[8].mxu0 }
 0x458   : > { %v853_v54 = vadd.f32 %v1724_v52, %v852_v53  ;;  %v1819_v55 = vpop.f32.mrb[9].mxu0 }
 0x459   : > { %v855_v56 = vpop.f32.mrb[10].mxu0 }
 0x45a   : > { %v859_v57 = vmax.f32 %v853_v54, 0.0  ;;  %v856_v58 = vadd.f32 %v1724_v52, %v855_v56  ;;  %v1820_v59 = vpop.f32.mrb[11].mxu0 }
 0x45c   : > { %v860_v60 = vmax.f32 %v856_v58, 0.0  ;;  %v861_v61 = vsel %vm510_vm1, %v859_v57, 0.0 }
 0x45d   : > { %862 = vadd.xlane.f32.xlu1 %v861_v61 }
 0x45e   : > { %v864_v62 = vsel %vm510_vm1, %v860_v60, 0.0 }
 0x45f   : > { %865 = vadd.xlane.f32.xlu0 %v864_v62 }
 0x4ea   : > { %v863_v63 = vpop.xlane.xlu1 %862 }
 0x4eb   : > { %v867_v5 = vmul.f32 0.03125, %v863_v63 }
 0x4ec   : > { %v866_v8 = vpop.xlane.xlu0 %865 }
 0x4ed   : > { %v869_v13 = vsub.f32 %v859_v57, %v867_v5  ;;  %v868_v14 = vmul.f32 0.03125, %v866_v8 }
 0x4ef   : > { %v870_v18 = vsub.f32 %v860_v60, %v868_v14  ;;  %v871_v20 = vmul.f32 %v869_v13, %v869_v13 }
 0x4f1   : > { %v873_v21 = vsel %vm510_vm1, %v871_v20, 0.0  ;;  %v872_v22 = vmul.f32 %v870_v18, %v870_v18 }
 0x4f3   : > { %v876_v23 = vsel %vm510_vm1, %v872_v22, 0.0 }
 0x527   : > { %v741_v2 = vpop.f32.mrb[4].mxu1 }
 0x528   : > { %v742_v6 = vadd.f32 %v1718_v0, %v741_v2  ;;  %v1811_v7 = vpop.f32.mrb[5].mxu1 }
 0x529   : > { %v744_v9 = vpop.f32.mrb[6].mxu1 }
 0x52a   : > { %v748_v10 = vmax.f32 %v742_v6, 0.0  ;;  %v745_v11 = vadd.f32 %v1718_v0, %v744_v9  ;;  %v1812_v12 = vpop.f32.mrb[7].mxu1 }
 0x52c   : > { %v749_v16 = vmax.f32 %v745_v11, 0.0  ;;  %v752_v17 = vsel %vm510_vm1, %v748_v10, 0.0  ;;  %v2186_v11 = vld [vmem:[%s476_s20] ss:$0 sm:$0xff] }
 0x52d   : > { %753 = vadd.xlane.f32.xlu0 %v752_v17 }
 0x52e   : > { %v755_v19 = vsel %vm510_vm1, %v749_v16, 0.0 }
 0x531   : > { %756 = vadd.xlane.f32.xlu0 %v755_v19 }
 0x535   : > { %874 = vadd.xlane.f32.xlu0 %v873_v21 }
 0x539   : > { %877 = vadd.xlane.f32.xlu0 %v876_v23 }
 0x5ba   : > { %v754_v24 = vpop.xlane.xlu0 %753 }
 0x5bb   : > { %v759_v25 = vmul.f32 0.03125, %v754_v24 }
 0x5bd   : > { %v761_v26 = vsub.f32 %v748_v10, %v759_v25 }
 0x5be   : > { %v757_v27 = vpop.xlane.xlu0 %756 }
 0x5bf   : > { %v760_v28 = vmul.f32 0.03125, %v757_v27  ;;  %v763_v29 = vmul.f32 %v761_v26, %v761_v26 }
 0x5c1   : > { %v762_v30 = vsub.f32 %v749_v16, %v760_v28  ;;  %v765_v31 = vsel %vm510_vm1, %v763_v29, 0.0 }
 0x5c2   : > { %766 = vadd.xlane.f32.xlu0 %v765_v31  ;;  %v875_v32 = vpop.xlane.xlu0 %874 }
 0x5c3   : > { %v879_v33 = vmul.f32 0.03125, %v875_v32  ;;  %v764_v34 = vmul.f32 %v762_v30, %v762_v30 }
 0x5c5   : > { %v881_v35 = vadd.f32 1e-05, %v879_v33  ;;  %v768_v36 = vsel %vm510_vm1, %v764_v34, 0.0 }
 0x5c6   : > { %769 = vadd.xlane.f32.xlu0 %v768_v36  ;;  %v878_v37 = vpop.xlane.xlu0 %877 }
 0x5c7   : > { %1925 = vrsqrt.f32 %v881_v35  ;;  %v880_v38 = vmul.f32 0.03125, %v878_v37 }
 0x5c9   : > { %v882_v39 = vadd.f32 1e-05, %v880_v38 }
 0x5cb   : > { %1927 = vrsqrt.f32 %v882_v39 }
 0x5d1   : > { %v1926_v40 = vpop.eup %1925 }
 0x5d2   : > { %v885_v41 = vmul.f32 %v1926_v40, %v869_v13 }
 0x5d4   : > { %v887_v45 = vmul.f32 %v1722_v42, %v885_v41 }
 0x5d5   : > { %v1928_v43 = vpop.eup %1927 }
 0x5d6   : > { %v886_v44 = vmul.f32 %v1928_v43, %v870_v18  ;;  %v889_v48 = vadd.f32 %v1723_v46, %v887_v45 }
 0x5d8   : > { %v888_v47 = vmul.f32 %v1722_v42, %v886_v44 }
 0x5da   : > { %v890_v49 = vadd.f32 %v1723_v46, %v888_v47 }
 0x5dc   : > { %v2164_v50 = vpack.c.bf16 %v890_v49, %v889_v48 }
 0x5de   : > { %1025 = vrot.lane.b32.xlu0 %v2164_v50, %s1981_s16  ;;  %v910_v51 = vsel %vm905_vm3, %v2164_v50, 0 }
 0x5df   : > { %1822 = vmatpush3.bf16.xpose.msra.mxu1 %v910_v51 }
 0x5e0   : > { %1833 = vmatprep.subr.bf16.mxu1 %v1977_v1 }
 0x64f   : > { %v767_v52 = vpop.xlane.xlu0 %766 }
 0x650   : > { %v771_v53 = vmul.f32 0.03125, %v767_v52 }
 0x652   : > { %v773_v54 = vadd.f32 1e-05, %v771_v53 }
 0x653   : > { %v770_v55 = vpop.xlane.xlu0 %769 }
 0x654   : > { %1929 = vrsqrt.f32 %v773_v54  ;;  %v772_v56 = vmul.f32 0.03125, %v770_v55 }
 0x656   : > { %v774_v57 = vadd.f32 1e-05, %v772_v56 }
 0x657   : > { %v1026_v7 = vpop.permute.xlu0 %1025 }
 0x658   : > { %1931 = vrsqrt.f32 %v774_v57  ;;  %v1031_v9 = vsel %vm905_vm3, %v1026_v7, 0  ;;  %v892_v57 = vld [vmem:[%s2311_s10 + $0x4] sm:$0xf] }
 0x65e   : > { %v1930_v58 = vpop.eup %1929 }
 0x65f   : > { %v777_v59 = vmul.f32 %v1930_v58, %v761_v26  ;;  %v1150_v58 = vsel %vm1148_vm4, %v892_v57, 0 }
 0x661   : > { %v785_v60 = vmul.f32 %v1722_v42, %v777_v59 }
 0x662   : > { %v1932_v61 = vpop.eup %1931 }
 0x663   : > { %v778_v62 = vmul.f32 %v1932_v61, %v762_v30  ;;  %v793_v0 = vadd.f32 %v1723_v46, %v785_v60 }
 0x665   : > { %v786_v63 = vmul.f32 %v1722_v42, %v778_v62  ;;  %v895_v5 = vmul.f32 0.35355338, %v793_v0  ;;  %v891_v0 = vld [vmem:[%s2311_s10] sm:$0xf] }
 0x666   : > { %v1197_v7 = vsel %vm1148_vm4, %v891_v0, 0 }
 0x667   : > { %v794_v2 = vadd.f32 %v1723_v46, %v786_v63 }
 0x669   : > { %v896_v6 = vmul.f32 0.35355338, %v794_v2 }
 0x66b   : > { %v2170_v8 = vpack.c.bf16 %v896_v6, %v895_v5 }
 0x66d   : > { %1022 = vrot.lane.b32.xlu1 %v2170_v8, %s1981_s16  ;;  %1824 = vmatmul.mubr.msk.bf16.vlgmr.msra.gmra.mrb[8].mxu1 %vm905_vm3, %v2170_v8 }
 0x66e   : > { %1834 = vmatpush3.bf16.xpose.msra.mxu1 %v1031_v9  ;;  %1835 = vmatprep.mubr.msk.bf16.mxu1 %vm1978_vm0, %v1977_v1 }
 0x66f   : > { %1845 = vmatprep.subr.bf16.mxu1 %v1977_v1 }
 0x6df   : > { %v1023_v10 = vpop.permute.xlu1 %1022 }
 0x6e0   : > { %1836 = vmatmul.mubr.msk.bf16.vlgmr.msra.gmra.mrb[12].mxu1 %vm905_vm3, %v1023_v10 }
 0x6e1   : > { %1847 = vmatprep.mubr.msk.bf16.mxu1 %vm1978_vm0, %v1977_v1  ;;  %1846 = vmatpush3.bf16.msra.mxu1 %v1150_v58 }
 0x6e2   : > { %1857 = vmatprep.subr.bf16.mxu1 %v1977_v1 }
 0x740   : > { %v946_v12 = vpop.f32.mrb[8].mxu1 }
 0x741   : > { %v947_v13 = vadd.f32 %v2186_v11, %v946_v12  ;;  %v1825_v14 = vpop.f32.mrb[9].mxu1 }
 0x742   : > { %v949_v16 = vpop.f32.mrb[10].mxu1 }
 0x743   : > { %v950_v17 = vadd.f32 %v2186_v11, %v949_v16  ;;  %v1826_v18 = vpop.f32.mrb[11].mxu1  ;;  %v953_v19 = vsel %vm609_vm2, %v947_v13, -inf }
 0x744   : > { %954 = vmax.xlane.f32.xlu1 %v953_v19 }
 0x745   : > { %v956_v20 = vsel %vm609_vm2, %v950_v17, -inf }
 0x746   : > { %957 = vmax.xlane.f32.xlu0 %v956_v20 }
 0x7b3   : > { %v1067_v21 = vpop.f32.mrb[12].mxu1 }
 0x7b4   : > { %v1068_v22 = vadd.f32 %v2186_v11, %v1067_v21  ;;  %v1837_v23 = vpop.f32.mrb[13].mxu1 }
 0x7b5   : > { %v1070_v24 = vpop.f32.mrb[14].mxu1 }
 0x7b6   : > { %v1071_v25 = vadd.f32 %v2186_v11, %v1070_v24  ;;  %v1838_v26 = vpop.f32.mrb[15].mxu1  ;;  %v1074_v27 = vsel %vm609_vm2, %v1068_v22, -inf }
 0x7b7   : > { %1075 = vmax.xlane.f32.xlu0 %v1074_v27 }
 0x7b8   : > { %v1077_v28 = vsel %vm609_vm2, %v1071_v25, -inf }
 0x7b9   : > { %1078 = vmax.xlane.f32.xlu1 %v1077_v28 }
 0x7d1   : > { %v955_v29 = vpop.xlane.xlu1 %954 }
 0x7d2   : > { %v959_v30 = vsub.f32 %v947_v13, %v955_v29 }
 0x7d3   : > { %v958_v31 = vpop.xlane.xlu0 %957 }
 0x7d4   : > { %v961_v32 = vmul.f32 1.442695, %v959_v30  ;;  %v960_v33 = vsub.f32 %v950_v17, %v958_v31 }
 0x7d6   : > { %1933 = vpow2.f32 %v961_v32  ;;  %v963_v34 = vmul.f32 1.442695, %v960_v33 }
 0x7d8   : > { %1935 = vpow2.f32 %v963_v34 }
 0x7e0   : > { %v1934_v35 = vpop.eup %1933 }
 0x7e1   : > { %v965_v36 = vsel %vm609_vm2, %v1934_v35, 0.0 }
 0x7e2   : > { %v1936_v37 = vpop.eup %1935  ;;  %966 = vadd.xlane.f32.xlu0 %v965_v36 }
 0x7e3   : > { %v968_v38 = vsel %vm609_vm2, %v1936_v37, 0.0 }
 0x7e4   : > { %969 = vadd.xlane.f32.xlu1 %v968_v38 }
 0x844   : > { %v1076_v39 = vpop.xlane.xlu0 %1075 }
 0x845   : > { %v1080_v40 = vsub.f32 %v1068_v22, %v1076_v39 }
 0x846   : > { %v1079_v41 = vpop.xlane.xlu1 %1078 }
 0x847   : > { %v1082_v42 = vmul.f32 1.442695, %v1080_v40  ;;  %v1081_v43 = vsub.f32 %v1071_v25, %v1079_v41 }
 0x849   : > { %1937 = vpow2.f32 %v1082_v42  ;;  %v1084_v44 = vmul.f32 1.442695, %v1081_v43 }
 0x84b   : > { %1939 = vpow2.f32 %v1084_v44 }
 0x853   : > { %v1938_v45 = vpop.eup %1937 }
 0x854   : > { %v1086_v46 = vsel %vm609_vm2, %v1938_v45, 0.0 }
 0x855   : > { %v1940_v47 = vpop.eup %1939  ;;  %1087 = vadd.xlane.f32.xlu0 %v1086_v46 }
 0x856   : > { %v1089_v48 = vsel %vm609_vm2, %v1940_v47, 0.0 }
 0x857   : > { %1090 = vadd.xlane.f32.xlu1 %v1089_v48 }
 0x868   : > { %1242 = vrot.lane.b32.xlu1 %v2164_v50, %s1982_s21 }
 0x86b   : > { %1097 = vrot.lane.b32.xlu0 %v2104_v15, %s1983_s22 }
 0x86c   : > { %1240 = vrot.lane.b32.xlu1 %v2170_v8, %s1982_s21 }
 0x86f   : > { %v967_v49 = vpop.xlane.xlu0 %966 }
 0x870   : > { %1941 = vrcp.f32 %v967_v49 }
 0x871   : > { %v970_v51 = vpop.xlane.xlu1 %969 }
 0x872   : > { %1943 = vrcp.f32 %v970_v51 }
 0x87a   : > { %v1942_v52 = vpop.eup %1941 }
 0x87b   : > { %v973_v54 = vmul.f32 %v1942_v52, %v1934_v35 }
 0x87c   : > { %v1944_v53 = vpop.eup %1943 }
 0x87d   : > { %v974_v55 = vmul.f32 %v1944_v53, %v1936_v37 }
 0x87f   : > { %v975_v56 = vpack.c.bf16 %v974_v55, %v973_v54 }
 0x881   : > { %1830 = vmatmul.mubr.msk.bf16.vlgmr.msra.gmra.mrb[12].mxu0 %vm609_vm2, %v975_v56 }
 0x882   : > { %1841 = vmatprep.mubr.msk.bf16.mxu0 %vm1978_vm0, %v1977_v1 }
 0x8e2   : > { %v1088_v59 = vpop.xlane.xlu0 %1087 }
 0x8e3   : > { %1945 = vrcp.f32 %v1088_v59 }
 0x8e4   : > { %v1091_v60 = vpop.xlane.xlu1 %1090 }
 0x8e5   : > { %1947 = vrcp.f32 %v1091_v60 }
 0x8e6   : > { %v1098_v61 = vpop.permute.xlu0 %1097 }
 0x8e7   : > { %1840 = vmatpush3.bf16.msra.mxu0 %v1098_v61 }
 0x8e8   : > { %1851 = vmatprep.subr.bf16.mxu0 %v1977_v1  ;;  %v1243_v18 = vpop.permute.xlu1 %1242 }
 0x8e9   : > { %v1248_v22 = vsel %vm905_vm3, %v1243_v18, 0 }
 0x8ec   : > { %v1241_v23 = vpop.permute.xlu1 %1240 }
 0x8ed   : > { %v1946_v62 = vpop.eup %1945 }
 0x8ee   : > { %v1094_v2 = vmul.f32 %v1946_v62, %v1938_v45  ;;  %v893_v62 = vld [vmem:[%s2311_s10 + $0x8] sm:$0xf] }
 0x8ef   : > { %v1948_v63 = vpop.eup %1947 }
 0x8f0   : > { %v1095_v5 = vmul.f32 %v1948_v63, %v1940_v47  ;;  %v1366_v63 = vsel %vm1148_vm4, %v893_v62, 0 }
 0x8f2   : > { %v1096_v6 = vpack.c.bf16 %v1095_v5, %v1094_v2 }
 0x8f4   : > { %1842 = vmatmul.mubr.msk.bf16.vlgmr.msra.gmra.mrb[16].mxu0 %vm609_vm2, %v1096_v6 }
 0x8f5   : > { %1852 = vmatpush3.bf16.msra.mxu0 %v1197_v7  ;;  %1853 = vmatprep.mubr.msk.bf16.mxu0 %vm1978_vm0, %v1977_v1 }
 0x8f6   : > { %1863 = vmatprep.subr.bf16.mxu0 %v1977_v1 }
 0x954   : > { %v1013_v9 = vpop.f32.mrb[12].mxu0 }
 0x955   : > { %v1831_v10 = vpop.f32.mrb[13].mxu0 }
 0x956   : > { %v1016_v12 = vpop.f32.mrb[14].mxu0 }
 0x957   : > { %v1020_v13 = vpack.c.bf16 %v1016_v12, %v1013_v9  ;;  %v1832_v14 = vpop.f32.mrb[15].mxu0 }
 0x959   : > { %1854 = vmatmul.mubr.msk.bf16.vlgmr.msra.gmra.mrb[20].mxu0 %vm905_vm3, %v1020_v13 }
 0x95a   : > { %1865 = vmatprep.mubr.msk.bf16.mxu0 %vm1978_vm0, %v1977_v1 }
 0x9c7   : > { %v1137_v16 = vpop.f32.mrb[16].mxu0 }
 0x9c8   : > { %v1843_v17 = vpop.f32.mrb[17].mxu0 }
 0x9c9   : > { %v1140_v19 = vpop.f32.mrb[18].mxu0 }
 0x9ca   : > { %v1144_v20 = vpack.c.bf16 %v1140_v19, %v1137_v16  ;;  %v1844_v21 = vpop.f32.mrb[19].mxu0 }
 0x9cc   : > { %1848 = vmatmul.mubr.msk.bf16.vlgmr.msra.gmra.mrb[16].mxu1 %vm905_vm3, %v1144_v20 }
 0x9cd   : > { %1858 = vmatpush3.bf16.xpose.msra.mxu1 %v1248_v22  ;;  %1859 = vmatprep.mubr.msk.bf16.mxu1 %vm1978_vm0, %v1977_v1 }
 0x9ce   : > { %1869 = vmatprep.subr.bf16.mxu1 %v1977_v1 }
 0x9d4   : > { %1860 = vmatmul.mubr.msk.bf16.vlgmr.msra.gmra.mrb[20].mxu1 %vm905_vm3, %v1241_v23 }
 0x9d5   : > { %1871 = vmatprep.mubr.msk.bf16.mxu1 %vm1978_vm0, %v1977_v1  ;;  %1870 = vmatpush3.bf16.msra.mxu1 %v1366_v63 }
 0x9d6   : > { %1881 = vmatprep.subr.bf16.mxu1 %v1977_v1 }
 0xa2c   : > { %v1233_v24 = vpop.f32.mrb[20].mxu0 }
 0xa2d   : > { %v1855_v25 = vpop.f32.mrb[21].mxu0 }
 0xa2e   : > { %v1236_v26 = vpop.f32.mrb[22].mxu0 }
 0xa2f   : > { %v1856_v27 = vpop.f32.mrb[23].mxu0 }
 0xa30   : > { %v894_v27 = vld [vmem:[%s2311_s10 + $0xc] sm:$0xf] }
 0xa9f   : > { %v1186_v28 = vpop.f32.mrb[16].mxu1 }
 0xaa0   : > { %v2231_v29 = vadd.f32 %v1233_v24, %v1186_v28  ;;  %v1849_v30 = vpop.f32.mrb[17].mxu1  ;;  %v1537_v28 = vsel %vm1148_vm4, %v894_v27, 0 }
 0xaa1   : > { %v1189_v31 = vpop.f32.mrb[18].mxu1 }
 0xaa2   : > { %v2233_v32 = vadd.f32 %v1236_v26, %v1189_v31  ;;  %v1850_v33 = vpop.f32.mrb[19].mxu1 }
 0xaa7   : > { %v1284_v34 = vpop.f32.mrb[20].mxu1 }
 0xaa8   : > { %v1285_v35 = vadd.f32 %v2186_v11, %v1284_v34  ;;  %v1861_v36 = vpop.f32.mrb[21].mxu1 }
 0xaa9   : > { %v1287_v37 = vpop.f32.mrb[22].mxu1 }
 0xaaa   : > { %v1288_v38 = vadd.f32 %v2186_v11, %v1287_v37  ;;  %v1862_v39 = vpop.f32.mrb[23].mxu1  ;;  %v1291_v40 = vsel %vm609_vm2, %v1285_v35, -inf }
 0xaab   : > { %1292 = vmax.xlane.f32.xlu0 %v1291_v40 }
 0xaac   : > { %v1294_v41 = vsel %vm609_vm2, %v1288_v38, -inf }
 0xaad   : > { %1295 = vmax.xlane.f32.xlu1 %v1294_v41 }
 0xabe   : > { %1314 = vrot.lane.b32.xlu1 %v2104_v15, %s1984_s27 }
 0xac2   : > { %1411 = vrot.lane.b32.xlu1 %v2170_v8, %s1985_s28 }
 0xb38   : > { %v1293_v42 = vpop.xlane.xlu0 %1292 }
 0xb39   : > { %v1297_v43 = vsub.f32 %v1285_v35, %v1293_v42 }
 0xb3a   : > { %v1296_v44 = vpop.xlane.xlu1 %1295 }
 0xb3b   : > { %v1299_v45 = vmul.f32 1.442695, %v1297_v43  ;;  %v1298_v46 = vsub.f32 %v1288_v38, %v1296_v44 }
 0xb3d   : > { %1949 = vpow2.f32 %v1299_v45  ;;  %v1301_v47 = vmul.f32 1.442695, %v1298_v46 }
 0xb3e   : > { %v1315_v48 = vpop.permute.xlu1 %1314 }
 0xb3f   : > { %1951 = vpow2.f32 %v1301_v47  ;;  %1864 = vmatpush3.bf16.msra.mxu0 %v1315_v48  ;;  %v1741_v48 = vld [vmem:[%s2312_s11] ss:$0 sm:$0xff] }
 0xb40   : > { %1875 = vmatprep.subr.bf16.mxu0 %v1977_v1 }
 0xb47   : > { %v1950_v49 = vpop.eup %1949 }
 0xb48   : > { %v1303_v51 = vsel %vm609_vm2, %v1950_v49, 0.0 }
 0xb49   : > { %v1952_v52 = vpop.eup %1951  ;;  %1304 = vadd.xlane.f32.xlu0 %v1303_v51 }
 0xb4a   : > { %v1306_v53 = vsel %vm609_vm2, %v1952_v52, 0.0 }
 0xb4d   : > { %1307 = vadd.xlane.f32.xlu0 %v1306_v53 }
 0xb63   : > { %1413 = vrot.lane.b32.xlu0 %v2164_v50, %s1985_s28  ;;  %v1412_v50 = vpop.permute.xlu1 %1411 }
 0xbd6   : > { %v1305_v8 = vpop.xlane.xlu0 %1304 }
 0xbd7   : > { %1953 = vrcp.f32 %v1305_v8 }
 0xbda   : > { %v1308_v54 = vpop.xlane.xlu0 %1307 }
 0xbdb   : > { %1955 = vrcp.f32 %v1308_v54 }
 0xbde   : > { %v1414_v59 = vpop.permute.xlu0 %1413 }
 0xbdf   : > { %v1419_v61 = vsel %vm905_vm3, %v1414_v59, 0 }
 0xbe1   : > { %v1954_v55 = vpop.eup %1953 }
 0xbe2   : > { %v1311_v57 = vmul.f32 %v1954_v55, %v1950_v49 }
 0xbe5   : > { %v1956_v56 = vpop.eup %1955 }
 0xbe6   : > { %v1312_v58 = vmul.f32 %v1956_v56, %v1952_v52 }
 0xbe8   : > { %v1313_v60 = vpack.c.bf16 %v1312_v58, %v1311_v57 }
 0xbea   : > { %1866 = vmatmul.mubr.msk.bf16.vlgmr.msra.gmra.mrb[24].mxu0 %vm609_vm2, %v1313_v60 }
 0xbeb   : > { %1876 = vmatpush3.bf16.xpose.msra.mxu0 %v1419_v61  ;;  %1877 = vmatprep.mubr.msk.bf16.mxu0 %vm1978_vm0, %v1977_v1 }
 0xbec   : > { %1887 = vmatprep.subr.bf16.mxu0 %v1977_v1 }
 0xbf2   : > { %1878 = vmatmul.mubr.msk.bf16.vlgmr.msra.gmra.mrb[28].mxu0 %vm905_vm3, %v1412_v50 }
 0xbf3   : > { %1889 = vmatprep.mubr.msk.bf16.mxu0 %vm1978_vm0, %v1977_v1  ;;  %1888 = vmatpush3.bf16.msra.mxu0 %v1537_v28 }
 0xcbd   : > { %v1354_v0 = vpop.f32.mrb[24].mxu0 }
 0xcbe   : > { %v1867_v2 = vpop.f32.mrb[25].mxu0 }
 0xcbf   : > { %v1357_v5 = vpop.f32.mrb[26].mxu0 }
 0xcc0   : > { %v1361_v6 = vpack.c.bf16 %v1357_v5, %v1354_v0  ;;  %v1868_v7 = vpop.f32.mrb[27].mxu0 }
 0xcc2   : > { %1872 = vmatmul.mubr.msk.bf16.vlgmr.msra.gmra.mrb[24].mxu1 %vm905_vm3, %v1361_v6 }
 0xcc3   : > { %1883 = vmatprep.mubr.msk.bf16.mxu1 %vm1978_vm0, %v1977_v1 }
 0xcc5   : > { %v1455_v9 = vpop.f32.mrb[28].mxu0 }
 0xcc6   : > { %v1456_v10 = vadd.f32 %v2186_v11, %v1455_v9  ;;  %v1879_v12 = vpop.f32.mrb[29].mxu0 }
 0xcc7   : > { %v1458_v13 = vpop.f32.mrb[30].mxu0 }
 0xcc8   : > { %v1459_v14 = vadd.f32 %v2186_v11, %v1458_v13  ;;  %v1880_v16 = vpop.f32.mrb[31].mxu0  ;;  %v1462_v17 = vsel %vm609_vm2, %v1456_v10, -inf }
 0xcc9   : > { %1463 = vmax.xlane.f32.xlu1 %v1462_v17  ;;  %v1742_v16 = vld [vmem:[%s2313_s12] ss:$0 sm:$0xff] }
 0xcca   : > { %v1465_v18 = vsel %vm609_vm2, %v1459_v14, -inf }
 0xccb   : > { %1466 = vmax.xlane.f32.xlu0 %v1465_v18  ;;  %v1743_v18 = vld [vmem:[%s2314_s13] ss:$0 sm:$0xff] }
 0xd56   : > { %v1464_v19 = vpop.xlane.xlu1 %1463 }
 0xd57   : > { %v1468_v20 = vsub.f32 %v1456_v10, %v1464_v19 }
 0xd58   : > { %v1467_v21 = vpop.xlane.xlu0 %1466 }
 0xd59   : > { %v1470_v22 = vmul.f32 1.442695, %v1468_v20  ;;  %v1469_v23 = vsub.f32 %v1459_v14, %v1467_v21 }
 0xd5b   : > { %1957 = vpow2.f32 %v1470_v22  ;;  %v1472_v1 = vmul.f32 1.442695, %v1469_v23 }
 0xd5d   : > { %1959 = vpow2.f32 %v1472_v1 }
 0xd65   : > { %v1958_v24 = vpop.eup %1957 }
 0xd66   : > { %v1474_v25 = vsel %vm609_vm2, %v1958_v24, 0.0 }
 0xd67   : > { %v1960_v26 = vpop.eup %1959  ;;  %1475 = vadd.xlane.f32.xlu0 %v1474_v25 }
 0xd68   : > { %v1477_v11 = vsel %vm609_vm2, %v1960_v26, 0.0 }
 0xd69   : > { %1478 = vadd.xlane.f32.xlu1 %v1477_v11 }
 0xd7d   : > { %1485 = vrot.lane.b32.xlu0 %v2104_v15, %s1986_s17 }
 0xd95   : > { %v1402_v30 = vpop.f32.mrb[24].mxu1 }
 0xd96   : > { %v1409_v31 = vadd.f32 %v1402_v30, %v2231_v29  ;;  %v1873_v33 = vpop.f32.mrb[25].mxu1 }
 0xd97   : > { %v1405_v34 = vpop.f32.mrb[26].mxu1 }
 0xd98   : > { %v1410_v35 = vadd.f32 %v1405_v34, %v2233_v32  ;;  %v1874_v36 = vpop.f32.mrb[27].mxu1 }
 0xdf4   : > { %v1476_v37 = vpop.xlane.xlu0 %1475 }
 0xdf5   : > { %1961 = vrcp.f32 %v1476_v37 }
 0xdf6   : > { %v1479_v38 = vpop.xlane.xlu1 %1478 }
 0xdf7   : > { %1963 = vrcp.f32 %v1479_v38 }
 0xdf8   : > { %v1486_v15 = vpop.permute.xlu0 %1485 }
 0xdf9   : > { %1882 = vmatpush3.bf16.msra.mxu1 %v1486_v15 }
 0xdff   : > { %v1962_v39 = vpop.eup %1961 }
 0xe00   : > { %v1482_v41 = vmul.f32 %v1962_v39, %v1958_v24 }
 0xe01   : > { %v1964_v40 = vpop.eup %1963 }
 0xe02   : > { %v1483_v42 = vmul.f32 %v1964_v40, %v1960_v26 }
 0xe04   : > { %v1484_v43 = vpack.c.bf16 %v1483_v42, %v1482_v41 }
 0xe06   : > { %1884 = vmatmul.mubr.msk.bf16.vlgmr.msra.gmra.mrb[28].mxu1 %vm609_vm2, %v1484_v43 }
 0xed9   : > { %v1525_v44 = vpop.f32.mrb[28].mxu1 }
 0xeda   : > { %v1885_v29 = vpop.f32.mrb[29].mxu1 }
 0xedb   : > { %v1528_v45 = vpop.f32.mrb[30].mxu1 }
 0xedc   : > { %v1532_v46 = vpack.c.bf16 %v1528_v45, %v1525_v44  ;;  %v1886_v47 = vpop.f32.mrb[31].mxu1 }
 0xede   : > { %1890 = vmatmul.mubr.msk.bf16.vlgmr.msra.gmra.mrb[32].mxu0 %vm905_vm3, %v1532_v46 }
 0xfb1   : > { %v1573_v32 = vpop.f32.mrb[32].mxu0 }
 0xfb2   : > { %v1580_v49 = vadd.f32 %v1573_v32, %v1409_v31  ;;  %v1891_v51 = vpop.f32.mrb[33].mxu0 }
 0xfb3   : > { %v1576_v52 = vpop.f32.mrb[34].mxu0 }
 0xfb4   : > { %v1589_v53 = vadd.f32 %v1741_v48, %v1580_v49  ;;  %v1581_v8 = vadd.f32 %v1576_v52, %v1410_v35  ;;  %v1892_v54 = vpop.f32.mrb[35].mxu0 }
 0xfb6   : > { %v1590_v55 = vadd.f32 %v1741_v48, %v1581_v8  ;;  %v1591_v56 = vadd.f32 %v1589_v53, %v2092_v3 }
 0xfb8   : > { %v1595_v57 = vsel %vm510_vm1, %v1591_v56, 0.0  ;;  %v1592_v58 = vadd.f32 %v1590_v55, %v2094_v4 }
 0xfb9   : > { %1596 = vadd.xlane.f32.xlu1 %v1595_v57 }
 0xfba   : > { %v1598_v59 = vsel %vm510_vm1, %v1592_v58, 0.0 }
 0xfbd   : > { %1599 = vadd.xlane.f32.xlu1 %v1598_v59 }
0x1046   : > { %v1597_v60 = vpop.xlane.xlu1 %1596 }
0x1047   : > { %v1601_v61 = vmul.f32 0.03125, %v1597_v60 }
0x1049   : > { %v1603_v50 = vsub.f32 %v1591_v56, %v1601_v61 }
0x104a   : > { %v1600_v62 = vpop.xlane.xlu1 %1599 }
0x104b   : > { %v1602_v63 = vmul.f32 0.03125, %v1600_v62  ;;  %v1605_v0 = vmul.f32 %v1603_v50, %v1603_v50 }
0x104d   : > { %v1604_v2 = vsub.f32 %v1592_v58, %v1602_v63  ;;  %v1607_v5 = vsel %vm510_vm1, %v1605_v0, 0.0 }
0x104e   : > { %1608 = vadd.xlane.f32.xlu1 %v1607_v5 }
0x104f   : > { %v1606_v6 = vmul.f32 %v1604_v2, %v1604_v2 }
0x1051   : > { %v1610_v3 = vsel %vm510_vm1, %v1606_v6, 0.0 }
0x1052   : > { %1611 = vadd.xlane.f32.xlu1 %v1610_v3 }
0x10db   : > { %v1609_v4 = vpop.xlane.xlu1 %1608 }
0x10dc   : > { %v1613_v7 = vmul.f32 0.03125, %v1609_v4 }
0x10de   : > { %v1615_v9 = vadd.f32 1e-06, %v1613_v7 }
0x10df   : > { %v1612_v10 = vpop.xlane.xlu1 %1611 }
0x10e0   : > { %1965 = vrsqrt.f32 %v1615_v9  ;;  %v1614_v12 = vmul.f32 0.03125, %v1612_v10 }
0x10e2   : > { %v1616_v13 = vadd.f32 1e-06, %v1614_v12 }
0x10e4   : > { %1967 = vrsqrt.f32 %v1616_v13 }
0x10ea   : > { %v1966_v14 = vpop.eup %1965 }
0x10eb   : > { %v1619_v17 = vmul.f32 %v1966_v14, %v1603_v50 }
0x10ed   : > { %v1627_v19 = vmul.f32 %v1742_v16, %v1619_v17 }
0x10ee   : > { %v1968_v20 = vpop.eup %1967 }
0x10ef   : > { %v1635_v21 = vadd.f32 %v1743_v18, %v1627_v19  ;;  %v1620_v22 = vmul.f32 %v1968_v20, %v1604_v2 }
0x10f1   : > { %1637 = vst.msk [vmem:[%s481_s15] sm:$0xff] %vm510_vm1, %v1635_v21  ;;  %v1628_v23 = vmul.f32 %v1742_v16, %v1620_v22 }
0x10f3   : > { %v1636_v1 = vadd.f32 %v1743_v18, %v1628_v23 }
0x10f5   : > { %1638 = vst.msk [vmem:[%s481_s15 + $0x8] sm:$0xff] %vm510_vm1, %v1636_v1 }
0x10f6 PF: > { %s24_s29 = sadd.s32 1, %s1975_s29  }
0x10f7   : > { %p21_p4 = scmp.ge.s32.totalorder %s24_s29, 4  }
0x10f9   :  { %23 = sbr.rel (!%p21_p4) target bundleno = 1 (0x1), region = 109 }

// kernel: socml_forward.7
= control target key start
LH: loop header
LB: loop body
LE: loop exit
PB: predicated region body
PF: predicated region fallthrough
CT: control target
= control target key end

     0   :  { %s2704_s0 = inlined_call_operand.vmem [shape: f32[2,16,32], index: 0, kind: input, shape index: {}]   ;;  %s2705_s1 = inlined_call_operand.vmem [shape: f32[2,8,32], index: 1, kind: input, shape index: {}]   ;;  %s2706_s2 = inlined_call_operand.vmem [shape: f32[2,1,8], index: 2, kind: input, shape index: {}]   ;;  %s2707_s3 = inlined_call_operand.vmem [shape: bf16[32,32], index: 3, kind: input, shape index: {}]   ;;  %s2708_s4 = inlined_call_operand.vmem [shape: f32[1,32], index: 4, kind: input, shape index: {}]   ;;  %s2709_s5 = inlined_call_operand.vmem [shape: bf16[32,64], index: 5, kind: input, shape index: {}]   ;;  %s2710_s6 = inlined_call_operand.vmem [shape: f32[1,64], index: 6, kind: input, shape index: {}]   ;;  %s2711_s7 = inlined_call_operand.vmem [shape: bf16[32,32], index: 7, kind: input, shape index: {}]   ;;  %s2712_s8 = inlined_call_operand.vmem [shape: f32[1,32], index: 8, kind: input, shape index: {}]   ;;  %s2713_s9 = inlined_call_operand.vmem [shape: f32[1,32], index: 9, kind: input, shape index: {}]   ;;  %s2714_s10 = inlined_call_operand.vmem [shape: f32[1,32], index: 10, kind: input, shape index: {}]   ;;  %s2715_s11 = inlined_call_operand.vmem [shape: bf16[32,128], index: 11, kind: input, shape index: {}]   ;;  %s2716_s12 = inlined_call_operand.vmem [shape: f32[1,128], index: 12, kind: input, shape index: {}]   ;;  %s2717_s13 = inlined_call_operand.vmem [shape: bf16[128,32], index: 13, kind: input, shape index: {}]   ;;  %s2718_s14 = inlined_call_operand.vmem [shape: f32[1,32], index: 14, kind: input, shape index: {}]   ;;  %s2719_s15 = inlined_call_operand.vmem [shape: f32[1,32], index: 15, kind: input, shape index: {}]   ;;  %s2720_s16 = inlined_call_operand.vmem [shape: f32[1,32], index: 16, kind: input, shape index: {}]   ;;  %s2721_s17 = inlined_call_operand.hbm [shape: f32[2,16,32], index: 17, kind: output, shape index: {}]  }
   0x1   :  { %2728 = sst [smem:[#allocation11_spill]] %s2704_s0 }
   0x2   :  { %2729 = sst [smem:[#allocation12_spill]] %s2705_s1 }
   0x3   :  { %2730 = sst [smem:[#allocation13_spill]] %s2707_s3 }
   0x4   :  { %22 = vsyncpa [#allocation3], 0 }
   0x5   :  { %24 = vsyncpa [#allocation3 + $0x1], 0  ;;  %s2350_s24 = smov 0   ;;  %s2352_s25 = smov 0  }
   0x6   :  { %s2354_s26 = smov 0   ;;  %s2356_s27 = smov 0  }
   0x7 LB: > { %2731 = sst [smem:[#allocation5_spill]] %s2233_s24  ;;  %s2371_s28 = sadd.s32 4294967295, %s2245_s27   ;;  %s2245_s27 = sphi %s2356_s27, %s2745_s27   ;;  %s2241_s26 = sphi %s2354_s26, %s2747_s26   ;;  %s2237_s25 = sphi %s2352_s25, %s2749_s25   ;;  %s2233_s24 = sphi %s2350_s24, %s2748_s24  }
   0x8   : > { %2732 = sst [smem:[#allocation6_spill]] %s2241_s26  ;;  %s1858_s29 = sadd.s32 4294967294, %s2245_s27  }
   0x9   : > { %2733 = sst [smem:[#allocation7_spill]] %s2245_s27  ;;  %s2375_s0 = sadd.s32 1, %s2245_s27  }
   0xa   : > { %2734 = sst [smem:[#allocation8_spill]] %s2375_s0  ;;  %s409_s30 = sadd.s32 1, %s2241_s26 }
   0xb   : > { %s406_s18 = ssub.s32 %s2245_s27, %s2375_s0  ;;  %p419_p0 = scmp.ne.s32.totalorder %s2241_s26, %s2237_s25 }
   0xc   : > { %p407_p1 = scmp.eq.s32.totalorder %s406_s18, 0  ;;  %p420_p2 = scmp.eq.s32.totalorder %s2371_s28, 1 }
   0xd   : > { %p425_p3 = scmp.ne.s32.totalorder %s2237_s25, %s2233_s24  ;;  %p426_p4 = scmp.eq.s32.totalorder %s1858_s29, 1 }
   0xe   : > { %s2386_s19 = scalar_select %p407_p1, %s2241_s26, %s409_s30  }
   0xf   : > { %p2388_p5 = por %p420_p2, %p419_p0  ;;  %p2392_p6 = por %p426_p4, %p425_p3 }
  0x10   : > { %2735 = sst [smem:[#allocation9_spill]] %s2386_s19  ;;  %p1861_p7 = scmp.ge.s32.totalorder %s2245_s27, 1 }
  0x11   : > { %s2737_s20 = scalar_select %p2392_p6, 1, 0 }
  0x12   : > { %p507_p8 = scmp.lt.s32.totalorder %s2245_s27, 3 }
  0x13   : > { %2738 = sst [smem:[#allocation10_spill]] %s2737_s20 }
  0x14   : > { %p508_p9 = pnand %p1861_p7, %p507_p8 }
  0x15   : > { %s2739_s3 = sld [smem:[#allocation13_spill]] (!%p508_p9)  ;;  %v2247_v1 = vmov (!%p508_p9), 0.0   ;;  %vm2248_vm0 = vmmov (!%p508_p9), 0   ;;  %p566_p10 = scmp.lt.s32.totalorder (!%p508_p9), %s2371_s28, 1  ;;  %vm607_vm1 = vcmask (!%p508_p9), 261120   ;;  %v2123_v5 = vld [vmem:[%s2709_s5] sm:$0xff] (!%p508_p9)  }
  0x16   : > { %511 = sbr.rel (%p508_p9) target bundleno = 3780 (0xec4), region = 88  ;;  %1954 = vmatprep.subr.bf16.mxu0 (!%p508_p9), %v2247_v1  ;;  %1976 = vmatprep.subr.bf16.mxu1 (!%p508_p9), %v2247_v1  ;;  %s2740_s29 = sld [smem:[#allocation11_spill]] (!%p508_p9)  ;;  %v2124_v7 = vld [vmem:[%s2709_s5 + $0x8] sm:$0xff] (!%p508_p9)   ;;  %v1866_v10 = vld [vmem:[%s2708_s4] ss:$0 sm:$0xff] (!%p508_p9)  ;;  %vm733_vm2 = vcmask (!%p508_p9), 64512  }
  0x17   : > { %1958 = vmatprep.mubr.msk.bf16.mxu0 (!%p508_p9), %vm2248_vm0, %v2247_v1  ;;  %1978 = vmatprep.mubr.msk.bf16.mxu1 (!%p508_p9), %vm2248_vm0, %v2247_v1  ;;  %s2741_s24 = sld [smem:[#allocation12_spill]] (!%p508_p9)  ;;  %v1870_v19 = vld [vmem:[%s2710_s6] ss:$0 sm:$0xff] (!%p508_p9)  ;;  %s2249_s0 = smov (!%p508_p9), 120   ;;  %vm810_vm3 = vcmask (!%p508_p9), 1043456  }
  0x18   : > { %s2251_s23 = smov (!%p508_p9), 96   ;;  %s2253_s26 = smov (!%p508_p9), 80  }
  0x19   : > { %s2255_s20 = smov (!%p508_p9), 72  }
  0x1b   : > { %v2121_v0 = vld [vmem:[%s2739_s3] sm:$0xff] (!%p508_p9)   ;;  %v2122_v2 = vld [vmem:[%s2739_s3 + $0x8] sm:$0xff] (!%p508_p9)  }
  0x1c   : > { %1955 = vmatpush3.bf16.msra.mxu0 (!%p508_p9), %v2121_v0 }
  0x1d   : > { %1956 = vmatprep.subr.bf16.mxu0 %v2247_v1  ;;  %s2413_s30 = scalar_select %p566_p10, %s2371_s28, 1 }
  0x1f   : > { %s1910_s18 = sshll.u32 %s2413_s30, 4  ;;  %s1865_s21 = sshll.u32 %s2413_s30, 3 }
  0x20   : > { %1957 = vmatpush3.bf16.msra.mxu0 %v2122_v2  ;;  %s570_s3 = scalar_lea.vmem %s2740_s29, %s1910_s18  ;;  %s574_s27 = scalar_lea.vmem %s2741_s24, %s1865_s21 }
  0x21   : > { %1962 = vmatprep.subr.bf16.mxu0 %v2247_v1  ;;  %v2421_v3 = vld [vmem:[%s570_s3] sm:$0xff]  ;;  %v2423_v4 = vld [vmem:[%s570_s3 + $0x8] sm:$0xff]  ;;  %s577_s21 = scalar_lea.vmem %s2706_s2, %s2413_s30  ;;  %s2250_s30 = smov 88  }
  0x22   : > { %v588_v6 = vpack.c.bf16 %v2423_v4, %v2421_v3  ;;  %v581_v8 = vld [vmem:[%s574_s27] sm:$0xff]  ;;  %s2252_s29 = smov 112   ;;  %s2254_s27 = smov 104  }
  0x23   : > { %v657_v9 = vpack.c.bf16 %v581_v8, %v581_v8  ;;  %v2472_v31 = vld [vmem:[%s577_s21] ss:$0 sm:$0xff]  ;;  %s563_s3 = sand.u32 1, %s2237_s25   ;;  %s2257_s24 = smov [#allocation2]  }
  0x24   : > { %1959 = vmatmul.mubr.msk.bf16.vlgmr.msra.gmra.mrb[0].mxu0 %vm607_vm1, %v588_v6  ;;  %s2663_s18 = scalar_lea.sflag [#allocation3], %s563_s3 }
  0x25   : > { %1963 = vmatpush3.bf16.msra.mxu0 %v2123_v5  ;;  %1966 = vmatprep.mubr.msk.bf16.mxu0 %vm2248_vm0, %v2247_v1 }
  0x26   : > { %1964 = vmatprep.subr.bf16.mxu0 %v2247_v1 }
  0x29   : > { %1965 = vmatpush3.bf16.msra.mxu0 %v2124_v7 }
  0x2a   : > { %1970 = vmatprep.subr.bf16.mxu0 %v2247_v1 }
  0x2c   : > { %1967 = vmatmul.mubr.msk.bf16.vlgmr.msra.gmra.mrb[4].mxu0 %vm607_vm1, %v657_v9 }
  0x2d   : > { %1972 = vmatprep.mubr.msk.bf16.mxu0 %vm2248_vm0, %v2247_v1 }
  0xf7   : > { %v645_v11 = vpop.f32.mrb[0].mxu0 }
  0xf8   : > { %v646_v12 = vadd.f32 %v1866_v10, %v645_v11  ;;  %v1960_v13 = vpop.f32.mrb[1].mxu0 }
  0xf9   : > { %v648_v14 = vpop.f32.mrb[2].mxu0 }
  0xfa   : > { %v649_v15 = vadd.f32 %v1866_v10, %v648_v14  ;;  %v1961_v16 = vpop.f32.mrb[3].mxu0  ;;  %v723_v17 = vmul.f32 0.35355338, %v646_v12 }
  0xfc   : > { %v724_v18 = vmul.f32 0.35355338, %v649_v15 }
  0xfe   : > { %v2450_v20 = vpack.c.bf16 %v724_v18, %v723_v17 }
  0xff   : > { %v713_v21 = vpop.f32.mrb[4].mxu0 }
 0x100   : > { %v714_v22 = vadd.f32 %v1870_v19, %v713_v21  ;;  %v1968_v23 = vpop.f32.mrb[5].mxu0 }
 0x101   : > { %v716_v24 = vpop.f32.mrb[6].mxu0 }
 0x102   : > { %v2452_v25 = vpack.c.bf16 %v714_v22, %v714_v22  ;;  %v1969_v26 = vpop.f32.mrb[7].mxu0 }
 0x104   : > { %859 = vrot.lane.b32.xlu0 %v2452_v25, %s2249_s0  ;;  %v738_v27 = vsel %vm733_vm2, %v2452_v25, 0 }
 0x105   : > { %1971 = vmatpush3.bf16.xpose.msra.mxu0 %v738_v27  ;;  %v719_v27 = vld [vmem:[%s2711_s7] sm:$0xf] }
 0x106   : > { %1982 = vmatprep.subr.bf16.mxu0 %v2247_v1 }
 0x108   : > { %857 = vrot.lane.b32.xlu0 %v2450_v20, %s2249_s0 }
 0x10c   : > { %1973 = vmatmul.mubr.msk.bf16.vlgmr.msra.gmra.mrb[8].mxu0 %vm733_vm2, %v2450_v20 }
 0x10d   : > { %1984 = vmatprep.mubr.msk.bf16.mxu0 %vm2248_vm0, %v2247_v1 }
 0x176   : > { %v860_v28 = vpop.permute.xlu0 %859 }
 0x177   : > { %v865_v29 = vsel %vm733_vm2, %v860_v28, 0  ;;  %v1032_v28 = vsel %vm810_vm3, %v719_v27, 0 }
 0x178   : > { %1983 = vmatpush3.bf16.xpose.msra.mxu0 %v865_v29  ;;  %v720_v29 = vld [vmem:[%s2711_s7 + $0x4] sm:$0xf] }
 0x179   : > { %1994 = vmatprep.subr.bf16.mxu0 %v2247_v1 }
 0x17a   : > { %v858_v30 = vpop.permute.xlu0 %857 }
 0x17f   : > { %1985 = vmatmul.mubr.msk.bf16.vlgmr.msra.gmra.mrb[12].mxu0 %vm733_vm2, %v858_v30  ;;  %v985_v30 = vsel %vm810_vm3, %v720_v29, 0 }
 0x180   : > { %1996 = vmatprep.mubr.msk.bf16.mxu0 %vm2248_vm0, %v2247_v1  ;;  %1995 = vmatpush3.bf16.msra.mxu0 %v985_v30 }
 0x181   : > { %2006 = vmatprep.subr.bf16.mxu0 %v2247_v1 }
 0x1df   : > { %v774_v32 = vpop.f32.mrb[8].mxu0 }
 0x1e0   : > { %v775_v33 = vadd.f32 %v2472_v31, %v774_v32  ;;  %v1974_v34 = vpop.f32.mrb[9].mxu0 }
 0x1e1   : > { %v777_v35 = vpop.f32.mrb[10].mxu0 }
 0x1e2   : > { %v778_v36 = vadd.f32 %v2472_v31, %v777_v35  ;;  %v1975_v37 = vpop.f32.mrb[11].mxu0  ;;  %v781_v38 = vsel %vm733_vm2, %v775_v33, -inf }
 0x1e3   : > { %782 = vmax.xlane.f32.xlu1 %v781_v38 }
 0x1e4   : > { %v784_v39 = vsel %vm733_vm2, %v778_v36, -inf }
 0x1e7   : > { %785 = vmax.xlane.f32.xlu1 %v784_v39 }
 0x252   : > { %v901_v40 = vpop.f32.mrb[12].mxu0 }
 0x253   : > { %v902_v41 = vadd.f32 %v2472_v31, %v901_v40  ;;  %v1986_v42 = vpop.f32.mrb[13].mxu0 }
 0x254   : > { %v904_v43 = vpop.f32.mrb[14].mxu0 }
 0x255   : > { %v905_v44 = vadd.f32 %v2472_v31, %v904_v43  ;;  %v1987_v45 = vpop.f32.mrb[15].mxu0  ;;  %v908_v46 = vsel %vm733_vm2, %v902_v41, -inf }
 0x256   : > { %909 = vmax.xlane.f32.xlu0 %v908_v46 }
 0x257   : > { %v911_v47 = vsel %vm733_vm2, %v905_v44, -inf }
 0x258   : > { %912 = vmax.xlane.f32.xlu1 %v911_v47 }
 0x26c   : > { %931 = vrot.lane.b32.xlu0 %v2452_v25, %s2250_s30 }
 0x270   : > { %v783_v48 = vpop.xlane.xlu1 %782 }
 0x271   : > { %v787_v49 = vsub.f32 %v775_v33, %v783_v48 }
 0x273   : > { %v789_v50 = vmul.f32 1.442695, %v787_v49 }
 0x274   : > { %v786_v51 = vpop.xlane.xlu1 %785 }
 0x275   : > { %2135 = vpow2.f32 %v789_v50  ;;  %v788_v52 = vsub.f32 %v778_v36, %v786_v51 }
 0x277   : > { %v791_v53 = vmul.f32 1.442695, %v788_v52 }
 0x279   : > { %2137 = vpow2.f32 %v791_v53 }
 0x27f   : > { %v2136_v54 = vpop.eup %2135 }
 0x280   : > { %v793_v55 = vsel %vm733_vm2, %v2136_v54, 0.0 }
 0x281   : > { %794 = vadd.xlane.f32.xlu1 %v793_v55 }
 0x283   : > { %v2138_v56 = vpop.eup %2137 }
 0x284   : > { %v796_v57 = vsel %vm733_vm2, %v2138_v56, 0.0 }
 0x285   : > { %797 = vadd.xlane.f32.xlu1 %v796_v57 }
 0x2e3   : > { %v910_v58 = vpop.xlane.xlu0 %909 }
 0x2e4   : > { %v914_v59 = vsub.f32 %v902_v41, %v910_v58 }
 0x2e5   : > { %v913_v60 = vpop.xlane.xlu1 %912 }
 0x2e6   : > { %v916_v61 = vmul.f32 1.442695, %v914_v59  ;;  %v915_v62 = vsub.f32 %v905_v44, %v913_v60 }
 0x2e7   : > { %v932_v17 = vpop.permute.xlu0 %931 }
 0x2e8   : > { %2139 = vpow2.f32 %v916_v61  ;;  %v918_v63 = vmul.f32 1.442695, %v915_v62  ;;  %v937_v21 = vsel %vm810_vm3, %v932_v17, 0 }
 0x2ea   : > { %2141 = vpow2.f32 %v918_v63 }
 0x2f2   : > { %v2140_v0 = vpop.eup %2139 }
 0x2f3   : > { %v920_v2 = vsel %vm733_vm2, %v2140_v0, 0.0 }
 0x2f4   : > { %v2142_v5 = vpop.eup %2141  ;;  %921 = vadd.xlane.f32.xlu1 %v920_v2 }
 0x2f5   : > { %v923_v6 = vsel %vm733_vm2, %v2142_v5, 0.0 }
 0x2f8   : > { %924 = vadd.xlane.f32.xlu1 %v923_v6 }
 0x309   : > { %805 = vrot.lane.b32.xlu1 %v2452_v25, %s2251_s23 }
 0x30d   : > { %1077 = vrot.lane.b32.xlu1 %v2452_v25, %s2252_s29 }
 0x30e   : > { %v795_v7 = vpop.xlane.xlu1 %794 }
 0x311   : > { %1075 = vrot.lane.b32.xlu1 %v2450_v20, %s2252_s29 }
 0x312   : > { %v798_v8 = vpop.xlane.xlu1 %797 }
 0x313   : > { %2143 = vrcp.f32 %v798_v8 }
 0x314   : > { %2145 = vrcp.f32 %v795_v7 }
 0x31d   : > { %v2144_v10 = vpop.eup %2143 }
 0x31e   : > { %v2146_v12 = vpop.eup %2145  ;;  %v802_v13 = vmul.f32 %v2144_v10, %v2138_v56 }
 0x31f   : > { %v801_v16 = vmul.f32 %v2146_v12, %v2136_v54 }
 0x321   : > { %v803_v18 = vpack.c.bf16 %v802_v13, %v801_v16 }
 0x381   : > { %v922_v9 = vpop.xlane.xlu1 %921 }
 0x382   : > { %2147 = vrcp.f32 %v922_v9 }
 0x385   : > { %v925_v11 = vpop.xlane.xlu1 %924 }
 0x386   : > { %2149 = vrcp.f32 %v925_v11 }
 0x389   : > { %v806_v14 = vpop.permute.xlu1 %805 }
 0x38a   : > { %v812_v15 = vsel %vm810_vm3, %v806_v14, 0 }
 0x38b   : > { %1977 = vmatpush3.bf16.msra.mxu1 %v812_v15 }
 0x38c   : > { %1988 = vmatprep.subr.bf16.mxu1 %v2247_v1  ;;  %v2148_v19 = vpop.eup %2147 }
 0x38d   : > { %v928_v23 = vmul.f32 %v2148_v19, %v2140_v0  ;;  %v1078_v39 = vpop.permute.xlu1 %1077 }
 0x38e   : > { %1979 = vmatmul.mubr.msk.bf16.vlgmr.msra.gmra.mrb[0].mxu1 %vm733_vm2, %v803_v18  ;;  %v1083_v43 = vsel %vm733_vm2, %v1078_v39, 0 }
 0x38f   : > { %1989 = vmatpush3.bf16.msra.mxu1 %v937_v21  ;;  %1990 = vmatprep.mubr.msk.bf16.mxu1 %vm2248_vm0, %v2247_v1 }
 0x390   : > { %v2150_v22 = vpop.eup %2149  ;;  %2000 = vmatprep.subr.bf16.mxu1 %v2247_v1 }
 0x391   : > { %v929_v24 = vmul.f32 %v2150_v22, %v2142_v5  ;;  %v1076_v44 = vpop.permute.xlu1 %1075 }
 0x393   : > { %v930_v26 = vpack.c.bf16 %v929_v24, %v928_v23  ;;  %v721_v24 = vld [vmem:[%s2711_s7 + $0x8] sm:$0xf] }
 0x396   : > { %1991 = vmatmul.mubr.msk.bf16.vlgmr.msra.gmra.mrb[4].mxu1 %vm733_vm2, %v930_v26  ;;  %v1203_v26 = vsel %vm810_vm3, %v721_v24, 0 }
 0x397   : > { %2002 = vmatprep.mubr.msk.bf16.mxu1 %vm2248_vm0, %v2247_v1  ;;  %2001 = vmatpush3.bf16.msra.mxu1 %v1032_v28 }
 0x398   : > { %2012 = vmatprep.subr.bf16.mxu1 %v2247_v1 }
 0x461   : > { %v848_v32 = vpop.f32.mrb[0].mxu1 }
 0x462   : > { %v1980_v33 = vpop.f32.mrb[1].mxu1 }
 0x463   : > { %v851_v34 = vpop.f32.mrb[2].mxu1 }
 0x464   : > { %v855_v35 = vpack.c.bf16 %v851_v34, %v848_v32  ;;  %v1981_v36 = vpop.f32.mrb[3].mxu1 }
 0x466   : > { %2003 = vmatmul.mubr.msk.bf16.vlgmr.msra.gmra.mrb[8].mxu1 %vm733_vm2, %v855_v35 }
 0x467   : > { %2014 = vmatprep.mubr.msk.bf16.mxu1 %vm2248_vm0, %v2247_v1 }
 0x469   : > { %v973_v37 = vpop.f32.mrb[4].mxu1 }
 0x46a   : > { %v1992_v38 = vpop.f32.mrb[5].mxu1 }
 0x46b   : > { %v976_v40 = vpop.f32.mrb[6].mxu1 }
 0x46c   : > { %v980_v41 = vpack.c.bf16 %v976_v40, %v973_v37  ;;  %v1993_v42 = vpop.f32.mrb[7].mxu1 }
 0x46e   : > { %1997 = vmatmul.mubr.msk.bf16.vlgmr.msra.gmra.mrb[16].mxu0 %vm733_vm2, %v980_v41 }
 0x46f   : > { %2007 = vmatpush3.bf16.xpose.msra.mxu0 %v1083_v43  ;;  %2008 = vmatprep.mubr.msk.bf16.mxu0 %vm2248_vm0, %v2247_v1 }
 0x470   : > { %2018 = vmatprep.subr.bf16.mxu0 %v2247_v1 }
 0x476   : > { %2009 = vmatmul.mubr.msk.bf16.vlgmr.msra.gmra.mrb[20].mxu0 %vm733_vm2, %v1076_v44 }
 0x477   : > { %2020 = vmatprep.mubr.msk.bf16.mxu0 %vm2248_vm0, %v2247_v1  ;;  %2019 = vmatpush3.bf16.msra.mxu0 %v1203_v26 }
 0x478   : > { %2030 = vmatprep.subr.bf16.mxu0 %v2247_v1 }
 0x539   : > { %v1068_v45 = vpop.f32.mrb[8].mxu1 }
 0x53a   : > { %v2004_v46 = vpop.f32.mrb[9].mxu1 }
 0x53b   : > { %v1071_v47 = vpop.f32.mrb[10].mxu1 }
 0x53c   : > { %v2005_v48 = vpop.f32.mrb[11].mxu1 }
 0x541   : > { %v1021_v49 = vpop.f32.mrb[16].mxu0 }
 0x542   : > { %v2521_v50 = vadd.f32 %v1068_v45, %v1021_v49  ;;  %v1998_v51 = vpop.f32.mrb[17].mxu0 }
 0x543   : > { %v1024_v52 = vpop.f32.mrb[18].mxu0  ;;  %v722_v51 = vld [vmem:[%s2711_s7 + $0xc] sm:$0xf] }
 0x544   : > { %v2523_v53 = vadd.f32 %v1071_v47, %v1024_v52  ;;  %v1999_v54 = vpop.f32.mrb[19].mxu0  ;;  %v1376_v52 = vsel %vm810_vm3, %v722_v51, 0 }
 0x549   : > { %v1119_v55 = vpop.f32.mrb[20].mxu0 }
 0x54a   : > { %v1120_v56 = vadd.f32 %v2472_v31, %v1119_v55  ;;  %v2010_v57 = vpop.f32.mrb[21].mxu0 }
 0x54b   : > { %v1122_v58 = vpop.f32.mrb[22].mxu0 }
 0x54c   : > { %v1123_v59 = vadd.f32 %v2472_v31, %v1122_v58  ;;  %v2011_v60 = vpop.f32.mrb[23].mxu0  ;;  %v1126_v61 = vsel %vm733_vm2, %v1120_v56, -inf }
 0x54d   : > { %1127 = vmax.xlane.f32.xlu1 %v1126_v61 }
 0x54e   : > { %v1129_v62 = vsel %vm733_vm2, %v1123_v59, -inf }
 0x54f   : > { %1130 = vmax.xlane.f32.xlu0 %v1129_v62 }
 0x5da   : > { %v1128_v63 = vpop.xlane.xlu1 %1127 }
 0x5db   : > { %v1132_v0 = vsub.f32 %v1120_v56, %v1128_v63 }
 0x5dc   : > { %v1131_v2 = vpop.xlane.xlu0 %1130 }
 0x5dd   : > { %v1134_v5 = vmul.f32 1.442695, %v1132_v0  ;;  %v1133_v6 = vsub.f32 %v1123_v59, %v1131_v2 }
 0x5df   : > { %2151 = vpow2.f32 %v1134_v5  ;;  %v1136_v7 = vmul.f32 1.442695, %v1133_v6 }
 0x5e1   : > { %2153 = vpow2.f32 %v1136_v7 }
 0x5e9   : > { %v2152_v8 = vpop.eup %2151 }
 0x5ea   : > { %v1138_v9 = vsel %vm733_vm2, %v2152_v8, 0.0 }
 0x5eb   : > { %v2154_v10 = vpop.eup %2153  ;;  %1139 = vadd.xlane.f32.xlu1 %v1138_v9 }
 0x5ec   : > { %v1141_v11 = vsel %vm733_vm2, %v2154_v10, 0.0 }
 0x5ed   : > { %1142 = vadd.xlane.f32.xlu0 %v1141_v11  ;;  %v1887_v11 = vld [vmem:[%s2712_s8] ss:$0 sm:$0xff] }
 0x5fc   : > { %1149 = vrot.lane.b32.xlu1 %v2452_v25, %s2253_s26  ;;  %s2187_s26 = sshll.u32 %s2257_s24, 4  ;;  %s2188_s26 = int_to_ptr.vmem [resolvable:$false] %s2187_s26 }
 0x600   : > { %1248 = vrot.lane.b32.xlu1 %v2450_v20, %s2254_s27 }
 0x603   : > { %1250 = vrot.lane.b32.xlu0 %v2452_v25, %s2254_s27  ;;  %s1862_s27 = sshll.u32 %s563_s3, 4 }
 0x604   : > { %s565_s21 = scalar_lea.vmem [#allocation2], %s1862_s27  ;;  %s2189_s27 = scalar_lea.vmem %s2188_s26, 512 }
 0x605   : > { %s1775_s30 = sshll.u32 %s565_s21, 4  ;;  %s2660_s30 = int_to_ptr.vmem [resolvable:$true] %s1775_s30 }
 0x606   : > { %p2190_p0 = scmp.lt.s32.totalorder %s2660_s30, %s2188_s26 }
 0x678   : > { %v1140_v12 = vpop.xlane.xlu1 %1139 }
 0x679   : > { %2155 = vrcp.f32 %v1140_v12 }
 0x67a   : > { %v1143_v13 = vpop.xlane.xlu0 %1142 }
 0x67b   : > { %2157 = vrcp.f32 %v1143_v13 }
 0x67c   : > { %v1150_v14 = vpop.permute.xlu1 %1149 }
 0x67d   : > { %v1155_v15 = vsel %vm810_vm3, %v1150_v14, 0 }
 0x67e   : > { %2013 = vmatpush3.bf16.msra.mxu1 %v1155_v15  ;;  %v1251_v21 = vpop.permute.xlu0 %1250 }
 0x67f   : > { %2024 = vmatprep.subr.bf16.mxu1 %v2247_v1  ;;  %v1256_v20 = vsel %vm733_vm2, %v1251_v21, 0 }
 0x680   : > { %v1249_v23 = vpop.permute.xlu1 %1248 }
 0x683   : > { %v2156_v16 = vpop.eup %2155 }
 0x684   : > { %v1146_v18 = vmul.f32 %v2156_v16, %v2152_v8 }
 0x685   : > { %v2158_v17 = vpop.eup %2157 }
 0x686   : > { %v1147_v19 = vmul.f32 %v2158_v17, %v2154_v10 }
 0x688   : > { %v1148_v22 = vpack.c.bf16 %v1147_v19, %v1146_v18 }
 0x68a   : > { %2015 = vmatmul.mubr.msk.bf16.vlgmr.msra.gmra.mrb[12].mxu1 %vm733_vm2, %v1148_v22 }
 0x68b   : > { %2025 = vmatpush3.bf16.xpose.msra.mxu1 %v1256_v20  ;;  %2026 = vmatprep.mubr.msk.bf16.mxu1 %vm2248_vm0, %v2247_v1 }
 0x68c   : > { %2036 = vmatprep.subr.bf16.mxu1 %v2247_v1 }
 0x692   : > { %2027 = vmatmul.mubr.msk.bf16.vlgmr.msra.gmra.mrb[16].mxu1 %vm733_vm2, %v1249_v23 }
 0x693   : > { %2038 = vmatprep.mubr.msk.bf16.mxu1 %vm2248_vm0, %v2247_v1  ;;  %2037 = vmatpush3.bf16.msra.mxu1 %v1376_v52  ;;  %v2127_v52 = vld [vmem:[%s2717_s13] sm:$0xff]  }
 0x694   : > { %2050 = vmatprep.subr.bf16.mxu1 %v2247_v1 }
 0x75d   : > { %v1191_v27 = vpop.f32.mrb[12].mxu1 }
 0x75e   : > { %v2016_v28 = vpop.f32.mrb[13].mxu1 }
 0x75f   : > { %v1194_v29 = vpop.f32.mrb[14].mxu1 }
 0x760   : > { %v1198_v30 = vpack.c.bf16 %v1194_v29, %v1191_v27  ;;  %v2017_v32 = vpop.f32.mrb[15].mxu1 }
 0x762   : > { %2021 = vmatmul.mubr.msk.bf16.vlgmr.msra.gmra.mrb[24].mxu0 %vm733_vm2, %v1198_v30 }
 0x763   : > { %2032 = vmatprep.mubr.msk.bf16.mxu0 %vm2248_vm0, %v2247_v1 }
 0x765   : > { %v1292_v33 = vpop.f32.mrb[16].mxu1 }
 0x766   : > { %v1293_v34 = vadd.f32 %v2472_v31, %v1292_v33  ;;  %v2028_v35 = vpop.f32.mrb[17].mxu1 }
 0x767   : > { %v1295_v36 = vpop.f32.mrb[18].mxu1 }
 0x768   : > { %v1296_v37 = vadd.f32 %v2472_v31, %v1295_v36  ;;  %v2029_v38 = vpop.f32.mrb[19].mxu1  ;;  %v1299_v39 = vsel %vm733_vm2, %v1293_v34, -inf }
 0x769   : > { %1300 = vmax.xlane.f32.xlu1 %v1299_v39 }
 0x76a   : > { %v1302_v40 = vsel %vm733_vm2, %v1296_v37, -inf }
 0x76b   : > { %1303 = vmax.xlane.f32.xlu0 %v1302_v40 }
 0x7f6   : > { %v1301_v41 = vpop.xlane.xlu1 %1300 }
 0x7f7   : > { %v1305_v42 = vsub.f32 %v1293_v34, %v1301_v41  ;;  %v2126_v34 = vld [vmem:[%s2715_s11 + $0x8] sm:$0xff]  }
 0x7f8   : > { %v1304_v43 = vpop.xlane.xlu0 %1303 }
 0x7f9   : > { %v1307_v44 = vmul.f32 1.442695, %v1305_v42  ;;  %v1306_v45 = vsub.f32 %v1296_v37, %v1304_v43  ;;  %v1888_v43 = vld [vmem:[%s2713_s9] ss:$0 sm:$0xff] }
 0x7fb   : > { %2159 = vpow2.f32 %v1307_v44  ;;  %v1309_v46 = vmul.f32 1.442695, %v1306_v45 }
 0x7fd   : > { %2161 = vpow2.f32 %v1309_v46 }
 0x805   : > { %v2160_v47 = vpop.eup %2159 }
 0x806   : > { %v1311_v48 = vsel %vm733_vm2, %v2160_v47, 0.0 }
 0x807   : > { %v2162_v49 = vpop.eup %2161  ;;  %1312 = vadd.xlane.f32.xlu0 %v1311_v48 }
 0x808   : > { %v1314_v31 = vsel %vm733_vm2, %v2162_v49, 0.0 }
 0x809   : > { %1315 = vadd.xlane.f32.xlu1 %v1314_v31 }
 0x81d   : > { %1322 = vrot.lane.b32.xlu0 %v2452_v25, %s2255_s20  ;;  %s1911_s20 = sshll.u32 %s2371_s28, 8  ;;  %s2183_s28 = scalar_lea.vmem %s2660_s30, 256 }
 0x81e   : > { %s2658_s22 = scalar_lea.hbm %s2721_s17, %s1911_s20  ;;  %p2184_p11 = scmp.ne.s32.totalorder %s2660_s30, %s2183_s28 }
 0x81f   : > { %p2191_p1 = scmp.lt.s32.totalorder %s2189_s27, %s2183_s28 }
 0x820   : > { %p2185_p12 = pnand %p2184_p11, %p2388_p5 }
 0x821   : > { %p2192_p2 = por %p2191_p1, %p2190_p0 }
 0x822   : > { %p2186_p13 = pneg %p2185_p12 }
 0x824   : > { %p2193_p3 = pnand %p2192_p2, %p2186_p13 }
 0x835   : > { %v1239_v54 = vpop.f32.mrb[24].mxu0 }
 0x836   : > { %v1246_v55 = vadd.f32 %v1239_v54, %v2521_v50  ;;  %v2022_v56 = vpop.f32.mrb[25].mxu0  ;;  %v2128_v54 = vld [vmem:[%s2717_s13 + $0x8] sm:$0xff]  }
 0x837   : > { %v1242_v57 = vpop.f32.mrb[26].mxu0  ;;  %v2130_v56 = vld [vmem:[%s2717_s13 + $0x18] sm:$0xff]  }
 0x838   : > { %v1247_v58 = vadd.f32 %v1242_v57, %v2523_v53  ;;  %v2023_v59 = vpop.f32.mrb[27].mxu0  ;;  %v2131_v57 = vld [vmem:[%s2717_s13 + $0x20] sm:$0xff]  }
 0x839   : > { %v2133_v59 = vld [vmem:[%s2717_s13 + $0x30] sm:$0xff]  }
 0x894   : > { %v1313_v60 = vpop.xlane.xlu0 %1312 }
 0x895   : > { %2163 = vrcp.f32 %v1313_v60  ;;  %v2134_v60 = vld [vmem:[%s2717_s13 + $0x38] sm:$0xff]  }
 0x896   : > { %v1316_v25 = vpop.xlane.xlu1 %1315 }
 0x897   : > { %2165 = vrcp.f32 %v1316_v25  ;;  %v1890_v25 = vld [vmem:[%s2716_s12] ss:$0 sm:$0xff] }
 0x898   : > { %v1323_v61 = vpop.permute.xlu0 %1322 }
 0x899   : > { %v1328_v62 = vsel %vm810_vm3, %v1323_v61, 0 }
 0x89a   : > { %2031 = vmatpush3.bf16.msra.mxu0 %v1328_v62 }
 0x89b   : > { %2042 = vmatprep.subr.bf16.mxu0 %v2247_v1 }
 0x89f   : > { %v2164_v63 = vpop.eup %2163 }
 0x8a0   : > { %v1319_v2 = vmul.f32 %v2164_v63, %v2160_v47  ;;  %v1889_v47 = vld [vmem:[%s2714_s10] ss:$0 sm:$0xff] }
 0x8a1   : > { %v2166_v0 = vpop.eup %2165 }
 0x8a2   : > { %v1320_v5 = vmul.f32 %v2166_v0, %v2162_v49 }
 0x8a4   : > { %v1321_v50 = vpack.c.bf16 %v1320_v5, %v1319_v2 }
 0x8a6   : > { %2033 = vmatmul.mubr.msk.bf16.vlgmr.msra.gmra.mrb[28].mxu0 %vm733_vm2, %v1321_v50 }
 0x8a7   : > { %2046 = vmatprep.mubr.msk.bf16.mxu0 %vm2248_vm0, %v2247_v1 }
 0x979   : > { %v1364_v53 = vpop.f32.mrb[28].mxu0 }
 0x97a   : > { %v2034_v6 = vpop.f32.mrb[29].mxu0 }
 0x97b   : > { %v1367_v7 = vpop.f32.mrb[30].mxu0 }
 0x97c   : > { %v1371_v8 = vpack.c.bf16 %v1367_v7, %v1364_v53  ;;  %v2035_v9 = vpop.f32.mrb[31].mxu0 }
 0x97e   : > { %2039 = vmatmul.mubr.msk.bf16.vlgmr.msra.gmra.mrb[20].mxu1 %vm733_vm2, %v1371_v8 }
 0x97f   : > { %2066 = vmatprep.mubr.msk.bf16.mxu1 %vm2248_vm0, %v2247_v1  ;;  %2051 = vmatpush3.bf16.msra.mxu1 %v2127_v52 }
 0x980   : > { %2052 = vmatprep.subr.bf16.mxu1 %v2247_v1 }
 0x983   : > { %2053 = vmatpush3.bf16.msra.mxu1 %v2128_v54 }
 0x984   : > { %2054 = vmatprep.subr.bf16.mxu1 %v2247_v1 }
 0xa51   : > { %v1412_v10 = vpop.f32.mrb[20].mxu1 }
 0xa52   : > { %v1419_v12 = vadd.f32 %v1412_v10, %v1246_v55  ;;  %v2040_v13 = vpop.f32.mrb[21].mxu1  ;;  %v2129_v55 = vld [vmem:[%s2717_s13 + $0x10] sm:$0xff]  }
 0xa53   : > { %v1415_v14 = vpop.f32.mrb[22].mxu1  ;;  %2055 = vmatpush3.bf16.msra.mxu1 %v2129_v55 }
 0xa54   : > { %v1428_v15 = vadd.f32 %v1887_v11, %v1419_v12  ;;  %v1420_v16 = vadd.f32 %v1415_v14, %v1247_v58  ;;  %v2041_v17 = vpop.f32.mrb[23].mxu1  ;;  %2056 = vmatprep.subr.bf16.mxu1 %v2247_v1  ;;  %v2132_v58 = vld [vmem:[%s2717_s13 + $0x28] sm:$0xff]  }
 0xa56   : > { %v1429_v18 = vadd.f32 %v1887_v11, %v1420_v16  ;;  %v1430_v19 = vadd.f32 %v1428_v15, %v2421_v3 }
 0xa57   : > { %2057 = vmatpush3.bf16.msra.mxu1 %v2130_v56 }
 0xa58   : > { %v1434_v21 = vsel %vm607_vm1, %v1430_v19, 0.0  ;;  %v1431_v22 = vadd.f32 %v1429_v18, %v2423_v4  ;;  %v2125_v4 = vld [vmem:[%s2715_s11] sm:$0xff]   ;;  %2058 = vmatprep.subr.bf16.mxu1 %v2247_v1 }
 0xa59   : > { %1435 = vadd.xlane.f32.xlu1 %v1434_v21  ;;  %2043 = vmatpush3.bf16.msra.mxu0 %v2125_v4 }
 0xa5a   : > { %v1437_v20 = vsel %vm607_vm1, %v1431_v22, 0.0  ;;  %2044 = vmatprep.subr.bf16.mxu0 %v2247_v1 }
 0xa5b   : > { %2059 = vmatpush3.bf16.msra.mxu1 %v2131_v57 }
 0xa5c   : > { %2060 = vmatprep.subr.bf16.mxu1 %v2247_v1 }
 0xa5d   : > { %1438 = vadd.xlane.f32.xlu1 %v1437_v20  ;;  %2045 = vmatpush3.bf16.msra.mxu0 %v2126_v34 }
 0xa5f   : > { %2061 = vmatpush3.bf16.msra.mxu1 %v2132_v58  ;;  %v1894_v58 = vld [vmem:[%s2718_s14] ss:$0 sm:$0xff] }
 0xa60   : > { %2062 = vmatprep.subr.bf16.mxu1 %v2247_v1 }
 0xa63   : > { %2063 = vmatpush3.bf16.msra.mxu1 %v2133_v59 }
 0xa64   : > { %2064 = vmatprep.subr.bf16.mxu1 %v2247_v1 }
 0xa67   : > { %2065 = vmatpush3.bf16.msra.mxu1 %v2134_v60 }
 0xae6   : > { %v1436_v23 = vpop.xlane.xlu1 %1435 }
 0xae7   : > { %v1441_v24 = vmul.f32 0.03125, %v1436_v23 }
 0xae9   : > { %v1443_v26 = vsub.f32 %v1430_v19, %v1441_v24 }
 0xaea   : > { %v1439_v27 = vpop.xlane.xlu1 %1438 }
 0xaeb   : > { %v1442_v28 = vmul.f32 0.03125, %v1439_v27  ;;  %v1445_v29 = vmul.f32 %v1443_v26, %v1443_v26 }
 0xaed   : > { %v1444_v30 = vsub.f32 %v1431_v22, %v1442_v28  ;;  %v1447_v32 = vsel %vm607_vm1, %v1445_v29, 0.0 }
 0xaee   : > { %1448 = vadd.xlane.f32.xlu1 %v1447_v32 }
 0xaef   : > { %v1446_v33 = vmul.f32 %v1444_v30, %v1444_v30 }
 0xaf1   : > { %v1450_v3 = vsel %vm607_vm1, %v1446_v33, 0.0 }
 0xaf2   : > { %1451 = vadd.xlane.f32.xlu1 %v1450_v3 }
 0xb7b   : > { %v1449_v35 = vpop.xlane.xlu1 %1448 }
 0xb7c   : > { %v1453_v36 = vmul.f32 0.03125, %v1449_v35 }
 0xb7e   : > { %v1455_v37 = vadd.f32 1e-06, %v1453_v36 }
 0xb7f   : > { %v1452_v38 = vpop.xlane.xlu1 %1451 }
 0xb80   : > { %2167 = vrsqrt.f32 %v1455_v37  ;;  %v1454_v39 = vmul.f32 0.03125, %v1452_v38 }
 0xb82   : > { %v1456_v40 = vadd.f32 1e-06, %v1454_v39 }
 0xb84   : > { %2169 = vrsqrt.f32 %v1456_v40 }
 0xb8a   : > { %v2168_v41 = vpop.eup %2167 }
 0xb8b   : > { %v1459_v42 = vmul.f32 %v2168_v41, %v1443_v26  ;;  %v2256_v41 = vmov -1.0  }
 0xb8d   : > { %v1467_v45 = vmul.f32 %v1888_v43, %v1459_v42 }
 0xb8e   : > { %v2170_v44 = vpop.eup %2169 }
 0xb8f   : > { %v1460_v46 = vmul.f32 %v2170_v44, %v1444_v30  ;;  %v2596_v49 = vadd.f32 %v1889_v47, %v1467_v45 }
 0xb91   : > { %v1468_v48 = vmul.f32 %v1888_v43, %v1460_v46 }
 0xb93   : > { %v2598_v31 = vadd.f32 %v1889_v47, %v1468_v48 }
 0xb95   : > { %v1482_v51 = vpack.c.bf16 %v2598_v31, %v2596_v49 }
 0xb97   : > { %2047 = vmatmul.mubr.msk.bf16.vlgmr.msra.gmra.mrb[32].mxu0 %vm607_vm1, %v1482_v51 }
 0xc6a   : > { %v1538_v61 = vpop.f32.mrb[32].mxu0 }
 0xc6b   : > { %v1539_v62 = vadd.f32 %v1890_v25, %v1538_v61  ;;  %v2048_v63 = vpop.f32.mrb[33].mxu0 }
 0xc6c   : > { %v1541_v0 = vpop.f32.mrb[34].mxu0 }
 0xc6d   : > { %v1548_v2 = vmul.f32 0.70710677, %v1539_v62  ;;  %v1542_v5 = vadd.f32 %v1890_v25, %v1541_v0  ;;  %v2049_v50 = vpop.f32.mrb[35].mxu0  ;;  %v1545_v51 = vmul.f32 0.5, %v1539_v62 }
 0xc6f   : > { %v1554_v53 = vand.u32 2147483647, %v1548_v2  ;;  %v1549_v6 = vmul.f32 0.70710677, %v1542_v5  ;;  %vm1550_vm4 = vcmp.ge.f32.partialorder %v1548_v2, 0.0  ;;  %v1546_v52 = vmul.f32 0.5, %v1542_v5 }
 0xc70   : > { %v1552_v42 = vsel %vm1550_vm4, 1.0, %v2256_v41 }
 0xc71   : > { %v1556_v7 = vmul.f32 0.3275911, %v1554_v53  ;;  %v1555_v1 = vand.u32 2147483647, %v1549_v6  ;;  %v1582_v11 = vsub.f32 0.0, %v1554_v53  ;;  %vm1551_vm5 = vcmp.ge.f32.partialorder %v1549_v6, 0.0 }
 0xc72   : > { %v1553_v46 = vsel %vm1551_vm5, 1.0, %v2256_v41 }
 0xc73   : > { %v1558_v8 = vadd.f32 1.0, %v1556_v7  ;;  %v1557_v9 = vmul.f32 0.3275911, %v1555_v1  ;;  %v1583_v12 = vsub.f32 0.0, %v1555_v1  ;;  %v1584_v14 = vmul.f32 %v1582_v11, %v1554_v53 }
 0xc75   : > { %2171 = vrcp.f32 %v1558_v8  ;;  %v1559_v10 = vadd.f32 1.0, %v1557_v9  ;;  %v1585_v18 = vmul.f32 %v1583_v12, %v1555_v1  ;;  %v1586_v19 = vmul.f32 1.442695, %v1584_v14 }
 0xc77   : > { %2173 = vrcp.f32 %v1559_v10  ;;  %v1588_v24 = vmul.f32 1.442695, %v1585_v18 }
 0xc78   : > { %2175 = vpow2.f32 %v1586_v19  ;;  %v1903_v19 = vld [vmem:[%s2719_s15] ss:$0 sm:$0xff] }
 0xc79   : > { %2177 = vpow2.f32 %v1588_v24 }
 0xc7f   : > { %v2172_v13 = vpop.eup %2171 }
 0xc80   : > { %v1564_v15 = vmul.f32 1.0614054, %v2172_v13 }
 0xc81   : > { %v2174_v16 = vpop.eup %2173 }
 0xc82   : > { %v1566_v17 = vadd.f32 -1.4531521, %v1564_v15  ;;  %v1565_v21 = vmul.f32 1.0614054, %v2174_v16  ;;  %v2176_v35 = vpop.eup %2175 }
 0xc83   : > { %v2178_v39 = vpop.eup %2177 }
 0xc84   : > { %v1568_v22 = vmul.f32 %v2172_v13, %v1566_v17  ;;  %v1567_v20 = vadd.f32 -1.4531521, %v1565_v21 }
 0xc86   : > { %v1570_v23 = vadd.f32 1.4214138, %v1568_v22  ;;  %v1569_v26 = vmul.f32 %v2174_v16, %v1567_v20  ;;  %v1904_v22 = vld [vmem:[%s2720_s16] ss:$0 sm:$0xff] }
 0xc88   : > { %v1572_v27 = vmul.f32 %v2172_v13, %v1570_v23  ;;  %v1571_v28 = vadd.f32 1.4214138, %v1569_v26 }
 0xc8a   : > { %v1574_v29 = vadd.f32 -0.28449672, %v1572_v27  ;;  %v1573_v30 = vmul.f32 %v2174_v16, %v1571_v28 }
 0xc8c   : > { %v1576_v32 = vmul.f32 %v2172_v13, %v1574_v29  ;;  %v1575_v33 = vadd.f32 -0.28449672, %v1573_v30 }
 0xc8e   : > { %v1578_v3 = vadd.f32 0.2548296, %v1576_v32  ;;  %v1577_v4 = vmul.f32 %v2174_v16, %v1575_v33 }
 0xc90   : > { %v1580_v34 = vmul.f32 %v2172_v13, %v1578_v3  ;;  %v1579_v36 = vadd.f32 0.2548296, %v1577_v4 }
 0xc92   : > { %v1590_v37 = vmul.f32 %v2176_v35, %v1580_v34  ;;  %v1581_v38 = vmul.f32 %v2174_v16, %v1579_v36 }
 0xc94   : > { %v1592_v40 = vsub.f32 1.0, %v1590_v37  ;;  %v1591_v43 = vmul.f32 %v2178_v39, %v1581_v38 }
 0xc96   : > { %v1594_v44 = vmul.f32 %v1592_v40, %v1552_v42  ;;  %v1593_v45 = vsub.f32 1.0, %v1591_v43 }
 0xc98   : > { %v1596_v47 = vadd.f32 1.0, %v1594_v44  ;;  %v1595_v48 = vmul.f32 %v1593_v45, %v1553_v46 }
 0xc9a   : > { %v1597_v54 = vadd.f32 1.0, %v1595_v48  ;;  %v1598_v55 = vmul.f32 %v1596_v47, %v1545_v51 }
 0xc9c   : > { %v1599_v56 = vmul.f32 %v1597_v54, %v1546_v52 }
 0xc9e   : > { %v1617_v57 = vpack.c.bf16 %v1599_v56, %v1598_v55 }
 0xca0   : > { %2067 = vmatmul.mubr.bf16.vlgmr.msra.gmra.mrb[24].mxu1 %v1617_v57 }
 0xd73   : > { %v1706_v59 = vpop.f32.mrb[24].mxu1 }
 0xd74   : > { %v1707_v60 = vadd.f32 %v1894_v58, %v1706_v59  ;;  %v2068_v25 = vpop.f32.mrb[25].mxu1 }
 0xd75   : > { %v1709_v61 = vpop.f32.mrb[26].mxu1 }
 0xd76   : > { %v1710_v63 = vadd.f32 %v1894_v58, %v1709_v61  ;;  %v2069_v0 = vpop.f32.mrb[27].mxu1  ;;  %v1713_v2 = vadd.f32 %v1707_v60, %v2596_v49 }
 0xd78   : > { %v1717_v62 = vsel %vm607_vm1, %v1713_v2, 0.0  ;;  %v1714_v5 = vadd.f32 %v1710_v63, %v2598_v31 }
 0xd79   : > { %1718 = vadd.xlane.f32.xlu1 %v1717_v62 }
 0xd7a   : > { %v1720_v50 = vsel %vm607_vm1, %v1714_v5, 0.0 }
 0xd7d   : > { %1721 = vadd.xlane.f32.xlu1 %v1720_v50 }
 0xe06   : > { %v1719_v53 = vpop.xlane.xlu1 %1718 }
 0xe07   : > { %v1723_v6 = vmul.f32 0.03125, %v1719_v53 }
 0xe09   : > { %v1725_v7 = vsub.f32 %v1713_v2, %v1723_v6 }
 0xe0a   : > { %v1722_v1 = vpop.xlane.xlu1 %1721 }
 0xe0b   : > { %v1724_v8 = vmul.f32 0.03125, %v1722_v1  ;;  %v1727_v9 = vmul.f32 %v1725_v7, %v1725_v7 }
 0xe0d   : > { %v1726_v10 = vsub.f32 %v1714_v5, %v1724_v8  ;;  %v1729_v11 = vsel %vm607_vm1, %v1727_v9, 0.0 }
 0xe0e   : > { %1730 = vadd.xlane.f32.xlu0 %v1729_v11 }
 0xe0f   : > { %v1728_v49 = vmul.f32 %v1726_v10, %v1726_v10 }
 0xe11   : > { %v1732_v12 = vsel %vm607_vm1, %v1728_v49, 0.0 }
 0xe12   : > { %1733 = vadd.xlane.f32.xlu1 %v1732_v12 }
 0xe9b   : > { %v1731_v31 = vpop.xlane.xlu0 %1730 }
 0xe9c   : > { %v1735_v13 = vmul.f32 0.03125, %v1731_v31 }
 0xe9e   : > { %v1737_v14 = vadd.f32 1e-06, %v1735_v13 }
 0xe9f   : > { %v1734_v15 = vpop.xlane.xlu1 %1733 }
 0xea0   : > { %2179 = vrsqrt.f32 %v1737_v14  ;;  %v1736_v16 = vmul.f32 0.03125, %v1734_v15 }
 0xea2   : > { %v1738_v17 = vadd.f32 1e-06, %v1736_v16 }
 0xea4   : > { %2181 = vrsqrt.f32 %v1738_v17 }
 0xeaa   : > { %v2180_v18 = vpop.eup %2179 }
 0xeab   : > { %v1741_v21 = vmul.f32 %v2180_v18, %v1725_v7 }
 0xead   : > { %v1749_v20 = vmul.f32 %v1903_v19, %v1741_v21 }
 0xeae   : > { %v2182_v23 = vpop.eup %2181 }
 0xeaf   : > { %v1757_v24 = vadd.f32 %v1904_v22, %v1749_v20  ;;  %v1742_v26 = vmul.f32 %v2182_v23, %v1726_v10 }
 0xeb1   : > { %v1750_v27 = vmul.f32 %v1903_v19, %v1742_v26  ;;  %1759 = vst.msk [vmem:[%s565_s21] sm:$0xff] %vm607_vm1, %v1757_v24 }
 0xeb3   : > { %v1758_v28 = vadd.f32 %v1904_v22, %v1750_v27 }
 0xeb5   : > { %1760 = vst.msk [vmem:[%s565_s21 + $0x8] sm:$0xff] %vm607_vm1, %v1758_v28 }
 0xeb6   : > { %2196 = shalt.err (!%p2193_p3)
}
 0xeb7   : > { %s2197_s3 = scalar_lea.hbm %s2658_s22, 256  ;;  %s2201_s20 = scalar_lea.hbm %s2721_s17, 512 }
 0xeb8   : > { %p2198_p4 = scmp.ne.s32.totalorder %s2658_s22, %s2197_s3  ;;  %p2202_p9 = scmp.lt.u32.totalorder %s2658_s22, %s2721_s17 }
 0xeb9   : > { %p2203_p10 = scmp.lt.u32.totalorder %s2201_s20, %s2197_s3  ;;  %p2205_p12 = scmp.lt.u32.totalorder %s2197_s3, %s2658_s22 }
 0xeba   : > { %p2199_p7 = pnand %p2198_p4, %p2388_p5 }
 0xebb   : > { %p2204_p11 = por %p2203_p10, %p2202_p9 }
 0xebc   : > { %p2200_p8 = pneg %p2199_p7 }
 0xebd   : > { %p2206_p13 = por %p2205_p12, %p2204_p11 }
 0xebf   : > { %p2207_p0 = pnand %p2206_p13, %p2200_p8 }
 0xec1   : > { %2210 = shalt.err (!%p2207_p0)
}
 0xec2   : > { %s2258_s29 = smov 128   ;;  %s2259_s28 = smov 8  }
 0xec3   : > { %2070 = dma.vmem_to_hbm [thread:$0]  (%p2388_p5), %s2660_s30, 256, %s2658_s22, %s2663_s18, %s2258_s29, %s2258_s29, %s2259_s28  }
 0xec4 PF: > { %s2742_s24 = sld [smem:[#allocation7_spill]]  ;;  %s2743_s26 = sld [smem:[#allocation5_spill]] }
 0xeca   : > { %p2076_p1 = scmp.ge.s32.totalorder %s2742_s24, 2  ;;  %s1790_s0 = sand.u32 1, %s2743_s26  }
 0xecb   : > { %s1791_s3 = scalar_lea.sflag [#allocation3], %s1790_s0 }
 0xecc   : > { %p2073_p2 = pnand %p2076_p1, %p2392_p6 }
 0xece   : > { %2228 = dma.done.wait (!%p2073_p2), %s1791_s3, 256  }
 0xecf   : > { %2230 = vsyncadd (!%p2073_p2), %s1791_s3, 4294967040  ;;  %s2745_s27 = sld [smem:[#allocation8_spill]]  ;;  %s2746_s19 = sld [smem:[#allocation6_spill]] }
 0xed0   : > { %s2747_s26 = sld [smem:[#allocation9_spill]]  ;;  %s2748_s24 = smov %s2237_s25 }
 0xed5   : > { %p27_p3 = scmp.ge.s32.totalorder %s2745_s27, 4   ;;  %s2749_s25 = smov %s2746_s19 }
 0xed7   :  { %29 = sbr.rel (!%p27_p3) target bundleno = 7 (0x7), region = 129 }
 0xede   :  { %1796 = vsyncpa [#allocation3], 1 }
 0xedf   :  { %1798 = vsyncpa [#allocation3 + $0x1], 1 }

</bundles_post_ra>
